<compile_context>
chip_gen: v7x
topology: tpu7x:2x2x1
jax: 0.10.0
libtpu: 0.0.40
codegen_flags: <defaults>
</compile_context>

<pallas_src>
import functools
import math

import jax
import jax.numpy as jnp
from jax import lax
from jax.experimental import pallas as pl
from jax.experimental.pallas import tpu as pltpu


# ----------------------------------------------------------------------------
# Pallas kernels
# ----------------------------------------------------------------------------
def _mm_bias_kernel(x_ref, w_ref, b_ref, o_ref, *, act):
    y = jnp.dot(x_ref[...], w_ref[...], preferred_element_type=jnp.float32)
    y = y + b_ref[...]
    if act == "relu":
        y = jnp.maximum(y, 0.0)
    o_ref[...] = y.astype(o_ref.dtype)


@functools.lru_cache(maxsize=1)
def _big_tile_m():
    # v5e: keep 128-row tiles (native 4x128^2 MXU); v6e/v7x: 256 feeds the
    # 256-wide MXU better and gives >=2 parallel blocks for v7x's two TCs.
    try:
        kind = jax.devices()[0].device_kind.lower()
    except Exception:
        return 128
    return 128 if "v5" in kind else 256


def matmul_bias(x, w, b, act="none", out_dtype=jnp.float32):
    """(M,K) @ (K,N) + b with optional ReLU on the MXU.

    bf16 operands / f32 accumulation. Small M (<=128) is a single un-padded
    block; large M is tiled with a "parallel" grid axis.
    """
    M, K = x.shape
    _, N = w.shape
    if M > 128:
        big = _big_tile_m()
        tm = big if (M % big == 0 and M >= 2 * big) else 128
        Mp = pl.cdiv(M, tm) * tm
    else:
        Mp = ((M + 15) // 16) * 16      # bf16 sublane-packing friendly
        tm = Mp
    if Mp != M:
        x = jnp.pad(x, ((0, Mp - M), (0, 0)))
    # TODO(synk): K-tiling with a VMEM f32 accumulator for real ResNet50/FPN
    #             shapes (K up to 4608) so the resident weight fits v7x's VMEM.
    out = pl.pallas_call(
        functools.partial(_mm_bias_kernel, act=act),
        out_shape=jax.ShapeDtypeStruct((Mp, N), out_dtype),
        grid=(Mp // tm,),
        in_specs=[
            pl.BlockSpec((tm, K), lambda i: (i, 0)),
            pl.BlockSpec((K, N), lambda i: (0, 0)),
            pl.BlockSpec((1, N), lambda i: (0, 0)),
        ],
        out_specs=pl.BlockSpec((tm, N), lambda i: (i, 0)),
        compiler_params=pltpu.CompilerParams(dimension_semantics=("parallel",)),
    )(x.astype(jnp.bfloat16), w.astype(jnp.bfloat16),
      b.reshape(1, N).astype(jnp.float32))
    return out[:M]


_BBOX_CLIP = float(math.log(1000.0 / 16.0))


def _decode_rows(a, d, img_h, img_w):
    # Lane-dense decode: a, d are (4, N); rows = (x1,y1,x2,y2)/(dx,dy,dw,dh).
    x1, y1, x2, y2 = a[0:1, :], a[1:2, :], a[2:3, :], a[3:4, :]
    dx, dy, dw, dh = d[0:1, :], d[1:2, :], d[2:3, :], d[3:4, :]
    w = x2 - x1
    h = y2 - y1
    cx = x1 + 0.5 * w
    cy = y1 + 0.5 * h
    dw = jnp.minimum(dw, _BBOX_CLIP)
    dh = jnp.minimum(dh, _BBOX_CLIP)
    pcx = dx * w + cx
    pcy = dy * h + cy
    pw = jnp.exp(dw) * w
    ph = jnp.exp(dh) * h
    nx1 = jnp.clip(pcx - 0.5 * pw, 0.0, img_w)
    ny1 = jnp.clip(pcy - 0.5 * ph, 0.0, img_h)
    nx2 = jnp.clip(pcx + 0.5 * pw, 0.0, img_w)
    ny2 = jnp.clip(pcy + 0.5 * ph, 0.0, img_h)
    return nx1, ny1, nx2, ny2


def _decode_cols(a, d, img_h, img_w):
    # Box-major decode: a, d are (P, 4); returns (P, 1) coordinate columns.
    x1, y1, x2, y2 = a[:, 0:1], a[:, 1:2], a[:, 2:3], a[:, 3:4]
    dx, dy, dw, dh = d[:, 0:1], d[:, 1:2], d[:, 2:3], d[:, 3:4]
    w = x2 - x1
    h = y2 - y1
    cx = x1 + 0.5 * w
    cy = y1 + 0.5 * h
    dw = jnp.minimum(dw, _BBOX_CLIP)
    dh = jnp.minimum(dh, _BBOX_CLIP)
    pcx = dx * w + cx
    pcy = dy * h + cy
    pw = jnp.exp(dw) * w
    ph = jnp.exp(dh) * h
    nx1 = jnp.clip(pcx - 0.5 * pw, 0.0, img_w)
    ny1 = jnp.clip(pcy - 0.5 * ph, 0.0, img_h)
    nx2 = jnp.clip(pcx + 0.5 * pw, 0.0, img_w)
    ny2 = jnp.clip(pcy + 0.5 * ph, 0.0, img_h)
    return nx1, ny1, nx2, ny2


def _decode_kernel(a_ref, d_ref, o_ref, *, img_h, img_w):
    nx1, ny1, nx2, ny2 = _decode_rows(a_ref[...], d_ref[...], img_h, img_w)
    o_ref[...] = jnp.concatenate([nx1, ny1, nx2, ny2], axis=0)


def decode_boxes_pl(anchors_t, deltas_t, img_h, img_w):
    """Lane-dense box decode: inputs and output are (4, N)."""
    N = anchors_t.shape[1]
    return pl.pallas_call(
        functools.partial(_decode_kernel, img_h=float(img_h), img_w=float(img_w)),
        out_shape=jax.ShapeDtypeStruct((4, N), jnp.float32),
        grid=(1,),
        in_specs=[
            pl.BlockSpec((4, N), lambda i: (0, 0)),
            pl.BlockSpec((4, N), lambda i: (0, 0)),
        ],
        out_specs=pl.BlockSpec((4, N), lambda i: (0, 0)),
    )(anchors_t.astype(jnp.float32), deltas_t.astype(jnp.float32))


def _postprocess_kernel(p_ref, pt_ref, d_ref, dt_ref, s_ref, box_ref, keep_ref,
                        *, img_h, img_w, iou_thr, score_thr):
    P = s_ref.shape[1]
    # Decode in lane-dense layout -> final boxes written as (4, P).
    rx1, ry1, rx2, ry2 = _decode_rows(pt_ref[...], dt_ref[...], img_h, img_w)
    box_ref[...] = jnp.concatenate([rx1, ry1, rx2, ry2], axis=0)
    # Same decode in box-major layout -> (P, 1) views for the pairwise IoU.
    cx1, cy1, cx2, cy2 = _decode_cols(p_ref[...], d_ref[...], img_h, img_w)

    area_i = (cx2 - cx1) * (cy2 - cy1)                  # (P, 1)
    area_j = (rx2 - rx1) * (ry2 - ry1)                  # (1, P)
    ix1 = jnp.maximum(cx1, rx1)
    iy1 = jnp.maximum(cy1, ry1)
    ix2 = jnp.minimum(cx2, rx2)
    iy2 = jnp.minimum(cy2, ry2)
    inter = jnp.maximum(ix2 - ix1, 0.0) * jnp.maximum(iy2 - iy1, 0.0)
    iou = inter / jnp.maximum(area_i + area_j - inter, 1e-6)    # (P, P) in VMEM

    lane = lax.broadcasted_iota(jnp.int32, (1, P), 1)
    # Score threshold before NMS (torchvision order), then greedy suppression.
    keep = (s_ref[...] > score_thr).astype(jnp.float32)
    # Boxes are pre-sorted by descending score; P is small and static.
    for i in range(P):
        cur = jnp.sum(jnp.where(lane == i, keep, 0.0))
        suppress = (iou[i:i + 1, :] > iou_thr) & (lane > i) & (cur > 0.0)
        keep = jnp.where(suppress, 0.0, keep)
    keep_ref[...] = keep


def postprocess_pl(proposals_s, deltas_s, scores_s, img_h, img_w,
                   iou_thr=0.5, score_thr=0.05):
    """Fused decode + IoU + greedy NMS + score threshold (one kernel)."""
    P = proposals_s.shape[0]
    boxes_t, keep = pl.pallas_call(
        functools.partial(_postprocess_kernel, img_h=float(img_h),
                          img_w=float(img_w), iou_thr=float(iou_thr),
                          score_thr=float(score_thr)),
        out_shape=(jax.ShapeDtypeStruct((4, P), jnp.float32),
                   jax.ShapeDtypeStruct((1, P), jnp.float32)),
        grid=(1,),
        in_specs=[
            pl.BlockSpec((P, 4), lambda i: (0, 0)),
            pl.BlockSpec((4, P), lambda i: (0, 0)),
            pl.BlockSpec((P, 4), lambda i: (0, 0)),
            pl.BlockSpec((4, P), lambda i: (0, 0)),
            pl.BlockSpec((1, P), lambda i: (0, 0)),
        ],
        out_specs=(pl.BlockSpec((4, P), lambda i: (0, 0)),
                   pl.BlockSpec((1, P), lambda i: (0, 0))),
    )(proposals_s.astype(jnp.float32), proposals_s.T.astype(jnp.float32),
      deltas_s.astype(jnp.float32), deltas_s.T.astype(jnp.float32),
      scores_s.reshape(1, P).astype(jnp.float32))
    return boxes_t.T, keep.reshape(P) > 0.5


# ----------------------------------------------------------------------------
# JAX glue (im2col, anchors, ROI gather)
# ----------------------------------------------------------------------------
def im2col(x, ksize, stride, pad):
    # x: (H, W, C) -> (Ho*Wo, ksize*ksize*C), row-major over (Ho, Wo).
    H, W, C = x.shape
    xp = jnp.pad(x, ((pad, pad), (pad, pad), (0, 0)))
    Ho = (H + 2 * pad - ksize) // stride + 1
    Wo = (W + 2 * pad - ksize) // stride + 1
    cols = []
    for ky in range(ksize):
        for kx in range(ksize):
            cols.append(xp[ky:ky + stride * Ho:stride, kx:kx + stride * Wo:stride, :])
    col = jnp.concatenate(cols, axis=-1)
    return col.reshape(Ho * Wo, ksize * ksize * C), Ho, Wo


def conv2d(x, w, b, stride=1, pad=1, act="relu", out_dtype=jnp.bfloat16):
    # x: (H, W, Cin); w: (kh, kw, Cin, Cout) -- matmul on the MXU via im2col.
    kh, kw, Cin, Cout = w.shape
    col, Ho, Wo = im2col(x, kh, stride, pad)
    y = matmul_bias(col, w.reshape(kh * kw * Cin, Cout), b, act=act,
                    out_dtype=out_dtype)
    return y.reshape(Ho, Wo, Cout)


def make_anchors(Hf, Wf, stride, scales):
    ys = jnp.arange(Hf, dtype=jnp.float32) * stride
    xs = jnp.arange(Wf, dtype=jnp.float32) * stride
    yy, xx = jnp.meshgrid(ys, xs, indexing="ij")
    centers = jnp.stack([xx, yy, xx, yy], axis=-1).reshape(-1, 1, 4)
    base = jnp.stack(
        [jnp.array([-s / 2, -s / 2, s / 2, s / 2], jnp.float32) for s in scales]
    )
    return (centers + base[None]).reshape(-1, 4)  # location-major, anchor-minor


def roi_pool_nearest(feat, boxes, stride, pool):
    # TODO(synk): bilinear ROIAlign -> nearest-neighbor gather in plain JAX.
    Hf, Wf, Cf = feat.shape
    P = boxes.shape[0]
    x1, y1, x2, y2 = boxes[:, 0], boxes[:, 1], boxes[:, 2], boxes[:, 3]
    g = (jnp.arange(pool, dtype=jnp.float32) + 0.5) / pool
    sx = x1[:, None] + g[None, :] * (x2 - x1)[:, None]
    sy = y1[:, None] + g[None, :] * (y2 - y1)[:, None]
    ix = jnp.clip(jnp.round(sx / stride - 0.5), 0, Wf - 1).astype(jnp.int32)
    iy = jnp.clip(jnp.round(sy / stride - 0.5), 0, Hf - 1).astype(jnp.int32)
    gathered = feat[iy[:, :, None], ix[:, None, :], :]  # (P, pool, pool, Cf)
    return gathered.reshape(P, pool * pool * Cf)


# ----------------------------------------------------------------------------
# Parameters (synthetic, deterministic)
# ----------------------------------------------------------------------------
NUM_CLASSES = 5          # stand-in for COCO's 91 (class 0 = background)
NUM_ANCHORS = 3
POOL = 4
NUM_PROPOSALS = 16
HIDDEN = 64
ANCHOR_SCALES = (16.0, 32.0, 64.0)


def init_params(key):
    ks = jax.random.split(key, 9)

    def w(k, shape, scale=0.05):
        return (jax.random.normal(k, shape) * scale).astype(jnp.float32)

    z = lambda n: jnp.zeros((n,), jnp.float32)
    return {
        "c1w": w(ks[0], (3, 3, 3, 16)),   "c1b": z(16),
        "c2w": w(ks[1], (3, 3, 16, 32)),  "c2b": z(32),
        "c3w": w(ks[2], (3, 3, 32, 32)),  "c3b": z(32),
        "rpnw": w(ks[3], (3, 3, 32, 32)), "rpnb": z(32),
        "rpn_cls_w": w(ks[4], (32, NUM_ANCHORS)),     "rpn_cls_b": z(NUM_ANCHORS),
        "rpn_reg_w": w(ks[5], (32, 4 * NUM_ANCHORS)), "rpn_reg_b": z(4 * NUM_ANCHORS),
        "fc1w": w(ks[6], (POOL * POOL * 32, HIDDEN)), "fc1b": z(HIDDEN),
        "clsw": w(ks[7], (HIDDEN, NUM_CLASSES)),      "clsb": z(NUM_CLASSES),
        "boxw": w(ks[8], (HIDDEN, NUM_CLASSES * 4)),  "boxb": z(NUM_CLASSES * 4),
    }


# ----------------------------------------------------------------------------
# Forward pass: returns (boxes, labels, scores) like detections[0][...]
# ----------------------------------------------------------------------------
def faster_rcnn_forward(params, x):
    # x: (3, H, W) float32 in [0, 1] (single CHW image, as torchvision expects).
    C, H, W = x.shape
    mean = jnp.array([0.485, 0.456, 0.406], jnp.float32).reshape(3, 1, 1)
    inv_std = jnp.array([1.0 / 0.229, 1.0 / 0.224, 1.0 / 0.225],
                        jnp.float32).reshape(3, 1, 1)
    # Per-channel affine normalization: left to XLA, which fuses it into the
    # conv1 im2col slicing (no standalone Pallas launch / HBM pass).
    xn = (x - mean) * inv_std
    feat = jnp.transpose(xn, (1, 2, 0))      # -> HWC

    # Backbone (stride 8 overall), every conv is a bf16 Pallas matmul.
    feat = conv2d(feat, params["c1w"], params["c1b"], stride=2, pad=1, act="relu")
    feat = conv2d(feat, params["c2w"], params["c2b"], stride=2, pad=1, act="relu")
    feat = conv2d(feat, params["c3w"], params["c3b"], stride=2, pad=1, act="relu")
    stride = H // feat.shape[0]

    # RPN head: conv + ONE fused cls+reg matmul; columns split outside.
    rpn_feat = conv2d(feat, params["rpnw"], params["rpnb"], stride=1, pad=1, act="relu")
    Hf, Wf, Cf = rpn_feat.shape
    flat = rpn_feat.reshape(Hf * Wf, Cf)
    rpn_w = jnp.concatenate([params["rpn_cls_w"], params["rpn_reg_w"]], axis=1)
    rpn_b = jnp.concatenate([params["rpn_cls_b"], params["rpn_reg_b"]], axis=0)
    rpn_out = matmul_bias(flat, rpn_w, rpn_b)                     # (HW, A + 4A)
    obj_logits = rpn_out[:, :NUM_ANCHORS].reshape(-1)             # (HW*A,)
    rpn_deltas = rpn_out[:, NUM_ANCHORS:].reshape(Hf * Wf * NUM_ANCHORS, 4)

    anchors = make_anchors(Hf, Wf, stride, ANCHOR_SCALES)

    # Sigmoid is monotone -> top-k on raw logits selects the same proposals;
    # decode only the selected anchors (identical boxes, far less work).
    _, top_idx = lax.top_k(obj_logits, NUM_PROPOSALS)
    anchors_sel = anchors[top_idx]                                # (P, 4)
    deltas_sel = rpn_deltas[top_idx]                              # (P, 4)
    proposals_t = decode_boxes_pl(anchors_sel.T, deltas_sel.T, H, W)  # (4, P)
    proposals = proposals_t.T                                     # (P, 4)

    # ROI heads: fc1 + ONE fused cls+box matmul; columns split outside.
    roi_feat = roi_pool_nearest(feat, proposals, stride, POOL)    # (P, pool*pool*Cf)
    h1 = matmul_bias(roi_feat, params["fc1w"], params["fc1b"], act="relu",
                     out_dtype=jnp.bfloat16)
    head_w = jnp.concatenate([params["clsw"], params["boxw"]], axis=1)
    head_b = jnp.concatenate([params["clsb"], params["boxb"]], axis=0)
    head_out = matmul_bias(h1, head_w, head_b)                    # (P, C + 4C)
    cls_logits = head_out[:, :NUM_CLASSES]
    box_deltas = head_out[:, NUM_CLASSES:]

    cls_prob = jax.nn.softmax(cls_logits, axis=-1)   # 16x5: left to XLA
    fg = cls_prob[:, 1:]                             # drop background
    labels = jnp.argmax(fg, axis=1) + 1              # (P,) in [1, num_classes)
    scores = jnp.max(fg, axis=1)

    P = proposals.shape[0]
    dl = box_deltas.reshape(P, NUM_CLASSES, 4)
    idx = jnp.broadcast_to(labels[:, None, None], (P, 1, 4))
    deltas_cls = jnp.take_along_axis(dl, idx, axis=1)[:, 0, :]    # (P, 4)

    # Sort by score, then one fused Pallas kernel does decode + IoU + NMS.
    order = jnp.argsort(-scores)
    proposals_s = proposals[order]
    deltas_s = deltas_cls[order]
    scores_s = scores[order]
    labels_s = labels[order]
    boxes_s, keep = postprocess_pl(proposals_s, deltas_s, scores_s, H, W)

    final_boxes = jnp.where(keep[:, None], boxes_s, 0.0)
    final_labels = jnp.where(keep, labels_s, 0).astype(jnp.int32)  # torch int64 -> int32
    final_scores = jnp.where(keep, scores_s, 0.0)
    return final_boxes, final_labels, final_scores


if __name__ == "__main__":
    key = jax.random.PRNGKey(0)
    pkey, xkey = jax.random.split(key)
    params = init_params(pkey)
    x = jax.random.uniform(xkey, (3, 64, 64), dtype=jnp.float32)

    fwd = jax.jit(functools.partial(faster_rcnn_forward, params))
    boxes, labels, scores = fwd(x)
    jax.block_until_ready((boxes, labels, scores))

    assert boxes.shape == (NUM_PROPOSALS, 4)
    assert labels.shape == (NUM_PROPOSALS,)
    assert scores.shape == (NUM_PROPOSALS,)
    print("KERNEL_OK")
</pallas_src>

<mosaic_0001>
module attributes {stable_mosaic.version = 11 : i64} {
  func.func @_mm_bias_kernel(%arg0: i32, %arg1: memref<256x27xbf16, #tpu.memory_space<vmem>>, %arg2: memref<27x16xbf16, #tpu.memory_space<vmem>>, %arg3: memref<1x16xf32, #tpu.memory_space<vmem>>, %arg4: memref<256x16xbf16, #tpu.memory_space<vmem>>) attributes {dimension_semantics = [#tpu.dimension_semantics<parallel>], iteration_bounds = array<i64: 4>, scalar_prefetch = 0 : i64, scratch_operands = 0 : i64, tpu.core_type = #tpu.core_type<tc>, window_params = [{transform_indices = @transform_0, window_bounds = array<i64: 256, 27>}, {pipeline_mode = #tpu.pipeline_mode<synchronous>, transform_indices = @transform_1, window_bounds = array<i64: 27, 16>}, {pipeline_mode = #tpu.pipeline_mode<synchronous>, transform_indices = @transform_2, window_bounds = array<i64: 1, 16>}, {transform_indices = @transform_3, window_bounds = array<i64: 256, 16>}]} {
    %c0 = arith.constant 0 : index
    %c0_0 = arith.constant 0 : index
    %0 = vector.load %arg1[%c0, %c0_0] : memref<256x27xbf16, #tpu.memory_space<vmem>>, vector<256x27xbf16>
    %c0_1 = arith.constant 0 : index
    %c0_2 = arith.constant 0 : index
    %1 = vector.load %arg2[%c0_1, %c0_2] : memref<27x16xbf16, #tpu.memory_space<vmem>>, vector<27x16xbf16>
    %cst = arith.constant dense<0.000000e+00> : vector<256x16xf32>
    %2 = tpu.matmul %0, %1, %cst {dimension_numbers = #tpu.dot_dimension_numbers<[1], [0], [0], [1], [0, 0, 1, 1], [], []>} : vector<256x27xbf16>, vector<27x16xbf16>, vector<256x16xf32> -> vector<256x16xf32>
    %c0_3 = arith.constant 0 : index
    %c0_4 = arith.constant 0 : index
    %3 = vector.load %arg3[%c0_3, %c0_4] : memref<1x16xf32, #tpu.memory_space<vmem>>, vector<1x16xf32>
    %4 = vector.broadcast %3 : vector<1x16xf32> to vector<256x16xf32>
    %5 = arith.addf %2, %4 : vector<256x16xf32>
    %cst_5 = arith.constant 0.000000e+00 : f32
    %6 = vector.broadcast %cst_5 : f32 to vector<256x16xf32>
    %7 = arith.maximumf %5, %6 : vector<256x16xf32>
    %8 = arith.truncf %7 : vector<256x16xf32> to vector<256x16xbf16>
    %c0_6 = arith.constant 0 : index
    %c0_7 = arith.constant 0 : index
    %9 = vector.load %arg4[%c0_6, %c0_7] : memref<256x16xbf16, #tpu.memory_space<vmem>>, vector<256x16xbf16>
    tpu.vector_store %arg4[%c0_6, %c0_7], %8 {strides = array<i32>} : memref<256x16xbf16, #tpu.memory_space<vmem>>, vector<256x16xbf16>,
    return
  }
  func.func @transform_0(%arg0: i32) -> (i32, i32) {
    %c0_i32 = arith.constant 0 : i32
    %c0_i32_0 = arith.constant 0 : i32
    return %arg0, %c0_i32 : i32, i32
  }
  func.func @transform_1(%arg0: i32) -> (i32, i32) {
    %c0_i32 = arith.constant 0 : i32
    %c0_i32_0 = arith.constant 0 : i32
    %c0_i32_1 = arith.constant 0 : i32
    return %c0_i32, %c0_i32_0 : i32, i32
  }
  func.func @transform_2(%arg0: i32) -> (i32, i32) {
    %c0_i32 = arith.constant 0 : i32
    %c0_i32_0 = arith.constant 0 : i32
    %c0_i32_1 = arith.constant 0 : i32
    return %c0_i32, %c0_i32_0 : i32, i32
  }
  func.func @transform_3(%arg0: i32) -> (i32, i32) {
    %c0_i32 = arith.constant 0 : i32
    %c0_i32_0 = arith.constant 0 : i32
    return %arg0, %c0_i32 : i32, i32
  }
}

module attributes {stable_mosaic.version = 11 : i64} {
  func.func @_mm_bias_kernel(%arg0: i32, %arg1: memref<128x144xbf16, #tpu.memory_space<vmem>>, %arg2: memref<144x32xbf16, #tpu.memory_space<vmem>>, %arg3: memref<1x32xf32, #tpu.memory_space<vmem>>, %arg4: memref<128x32xbf16, #tpu.memory_space<vmem>>) attributes {dimension_semantics = [#tpu.dimension_semantics<parallel>], iteration_bounds = array<i64: 2>, scalar_prefetch = 0 : i64, scratch_operands = 0 : i64, tpu.core_type = #tpu.core_type<tc>, window_params = [{transform_indices = @transform_0, window_bounds = array<i64: 128, 144>}, {pipeline_mode = #tpu.pipeline_mode<synchronous>, transform_indices = @transform_1, window_bounds = array<i64: 144, 32>}, {pipeline_mode = #tpu.pipeline_mode<synchronous>, transform_indices = @transform_2, window_bounds = array<i64: 1, 32>}, {transform_indices = @transform_3, window_bounds = array<i64: 128, 32>}]} {
    %c0 = arith.constant 0 : index
    %c0_0 = arith.constant 0 : index
    %0 = vector.load %arg1[%c0, %c0_0] : memref<128x144xbf16, #tpu.memory_space<vmem>>, vector<128x144xbf16>
    %c0_1 = arith.constant 0 : index
    %c0_2 = arith.constant 0 : index
    %1 = vector.load %arg2[%c0_1, %c0_2] : memref<144x32xbf16, #tpu.memory_space<vmem>>, vector<144x32xbf16>
    %cst = arith.constant dense<0.000000e+00> : vector<128x32xf32>
    %2 = tpu.matmul %0, %1, %cst {dimension_numbers = #tpu.dot_dimension_numbers<[1], [0], [0], [1], [0, 0, 1, 1], [], []>} : vector<128x144xbf16>, vector<144x32xbf16>, vector<128x32xf32> -> vector<128x32xf32>
    %c0_3 = arith.constant 0 : index
    %c0_4 = arith.constant 0 : index
    %3 = vector.load %arg3[%c0_3, %c0_4] : memref<1x32xf32, #tpu.memory_space<vmem>>, vector<1x32xf32>
    %4 = vector.broadcast %3 : vector<1x32xf32> to vector<128x32xf32>
    %5 = arith.addf %2, %4 : vector<128x32xf32>
    %cst_5 = arith.constant 0.000000e+00 : f32
    %6 = vector.broadcast %cst_5 : f32 to vector<128x32xf32>
    %7 = arith.maximumf %5, %6 : vector<128x32xf32>
    %8 = arith.truncf %7 : vector<128x32xf32> to vector<128x32xbf16>
    %c0_6 = arith.constant 0 : index
    %c0_7 = arith.constant 0 : index
    %9 = vector.load %arg4[%c0_6, %c0_7] : memref<128x32xbf16, #tpu.memory_space<vmem>>, vector<128x32xbf16>
    tpu.vector_store %arg4[%c0_6, %c0_7], %8 {strides = array<i32>} : memref<128x32xbf16, #tpu.memory_space<vmem>>, vector<128x32xbf16>,
    return
  }
  func.func @transform_0(%arg0: i32) -> (i32, i32) {
    %c0_i32 = arith.constant 0 : i32
    %c0_i32_0 = arith.constant 0 : i32
    return %arg0, %c0_i32 : i32, i32
  }
  func.func @transform_1(%arg0: i32) -> (i32, i32) {
    %c0_i32 = arith.constant 0 : i32
    %c0_i32_0 = arith.constant 0 : i32
    %c0_i32_1 = arith.constant 0 : i32
    return %c0_i32, %c0_i32_0 : i32, i32
  }
  func.func @transform_2(%arg0: i32) -> (i32, i32) {
    %c0_i32 = arith.constant 0 : i32
    %c0_i32_0 = arith.constant 0 : i32
    %c0_i32_1 = arith.constant 0 : i32
    return %c0_i32, %c0_i32_0 : i32, i32
  }
  func.func @transform_3(%arg0: i32) -> (i32, i32) {
    %c0_i32 = arith.constant 0 : i32
    %c0_i32_0 = arith.constant 0 : i32
    return %arg0, %c0_i32 : i32, i32
  }
}

module attributes {stable_mosaic.version = 11 : i64} {
  func.func @_mm_bias_kernel(%arg0: i32, %arg1: memref<64x288xbf16, #tpu.memory_space<vmem>>, %arg2: memref<288x32xbf16, #tpu.memory_space<vmem>>, %arg3: memref<1x32xf32, #tpu.memory_space<vmem>>, %arg4: memref<64x32xbf16, #tpu.memory_space<vmem>>) attributes {dimension_semantics = [#tpu.dimension_semantics<parallel>], iteration_bounds = array<i64: 1>, scalar_prefetch = 0 : i64, scratch_operands = 0 : i64, tpu.core_type = #tpu.core_type<tc>, window_params = [{transform_indices = @transform_0, window_bounds = array<i64: 64, 288>}, {pipeline_mode = #tpu.pipeline_mode<synchronous>, transform_indices = @transform_1, window_bounds = array<i64: 288, 32>}, {pipeline_mode = #tpu.pipeline_mode<synchronous>, transform_indices = @transform_2, window_bounds = array<i64: 1, 32>}, {transform_indices = @transform_3, window_bounds = array<i64: 64, 32>}]} {
    %c0 = arith.constant 0 : index
    %c0_0 = arith.constant 0 : index
    %0 = vector.load %arg1[%c0, %c0_0] : memref<64x288xbf16, #tpu.memory_space<vmem>>, vector<64x288xbf16>
    %c0_1 = arith.constant 0 : index
    %c0_2 = arith.constant 0 : index
    %1 = vector.load %arg2[%c0_1, %c0_2] : memref<288x32xbf16, #tpu.memory_space<vmem>>, vector<288x32xbf16>
    %cst = arith.constant dense<0.000000e+00> : vector<64x32xf32>
    %2 = tpu.matmul %0, %1, %cst {dimension_numbers = #tpu.dot_dimension_numbers<[1], [0], [0], [1], [0, 0, 1, 1], [], []>} : vector<64x288xbf16>, vector<288x32xbf16>, vector<64x32xf32> -> vector<64x32xf32>
    %c0_3 = arith.constant 0 : index
    %c0_4 = arith.constant 0 : index
    %3 = vector.load %arg3[%c0_3, %c0_4] : memref<1x32xf32, #tpu.memory_space<vmem>>, vector<1x32xf32>
    %4 = vector.broadcast %3 : vector<1x32xf32> to vector<64x32xf32>
    %5 = arith.addf %2, %4 : vector<64x32xf32>
    %cst_5 = arith.constant 0.000000e+00 : f32
    %6 = vector.broadcast %cst_5 : f32 to vector<64x32xf32>
    %7 = arith.maximumf %5, %6 : vector<64x32xf32>
    %8 = arith.truncf %7 : vector<64x32xf32> to vector<64x32xbf16>
    %c0_6 = arith.constant 0 : index
    %c0_7 = arith.constant 0 : index
    %9 = vector.load %arg4[%c0_6, %c0_7] : memref<64x32xbf16, #tpu.memory_space<vmem>>, vector<64x32xbf16>
    tpu.vector_store %arg4[%c0_6, %c0_7], %8 {strides = array<i32>} : memref<64x32xbf16, #tpu.memory_space<vmem>>, vector<64x32xbf16>,
    return
  }
  func.func @transform_0(%arg0: i32) -> (i32, i32) {
    %c0_i32 = arith.constant 0 : i32
    %c0_i32_0 = arith.constant 0 : i32
    return %arg0, %c0_i32 : i32, i32
  }
  func.func @transform_1(%arg0: i32) -> (i32, i32) {
    %c0_i32 = arith.constant 0 : i32
    %c0_i32_0 = arith.constant 0 : i32
    %c0_i32_1 = arith.constant 0 : i32
    return %c0_i32, %c0_i32_0 : i32, i32
  }
  func.func @transform_2(%arg0: i32) -> (i32, i32) {
    %c0_i32 = arith.constant 0 : i32
    %c0_i32_0 = arith.constant 0 : i32
    %c0_i32_1 = arith.constant 0 : i32
    return %c0_i32, %c0_i32_0 : i32, i32
  }
  func.func @transform_3(%arg0: i32) -> (i32, i32) {
    %c0_i32 = arith.constant 0 : i32
    %c0_i32_0 = arith.constant 0 : i32
    return %arg0, %c0_i32 : i32, i32
  }
}

module attributes {stable_mosaic.version = 11 : i64} {
  func.func @_mm_bias_kernel(%arg0: i32, %arg1: memref<64x32xbf16, #tpu.memory_space<vmem>>, %arg2: memref<32x15xbf16, #tpu.memory_space<vmem>>, %arg3: memref<1x15xf32, #tpu.memory_space<vmem>>, %arg4: memref<64x15xf32, #tpu.memory_space<vmem>>) attributes {dimension_semantics = [#tpu.dimension_semantics<parallel>], iteration_bounds = array<i64: 1>, scalar_prefetch = 0 : i64, scratch_operands = 0 : i64, tpu.core_type = #tpu.core_type<tc>, window_params = [{transform_indices = @transform_0, window_bounds = array<i64: 64, 32>}, {pipeline_mode = #tpu.pipeline_mode<synchronous>, transform_indices = @transform_1, window_bounds = array<i64: 32, 15>}, {pipeline_mode = #tpu.pipeline_mode<synchronous>, transform_indices = @transform_2, window_bounds = array<i64: 1, 15>}, {transform_indices = @transform_3, window_bounds = array<i64: 64, 15>}]} {
    %c0 = arith.constant 0 : index
    %c0_0 = arith.constant 0 : index
    %0 = vector.load %arg1[%c0, %c0_0] : memref<64x32xbf16, #tpu.memory_space<vmem>>, vector<64x32xbf16>
    %c0_1 = arith.constant 0 : index
    %c0_2 = arith.constant 0 : index
    %1 = vector.load %arg2[%c0_1, %c0_2] : memref<32x15xbf16, #tpu.memory_space<vmem>>, vector<32x15xbf16>
    %cst = arith.constant dense<0.000000e+00> : vector<64x15xf32>
    %2 = tpu.matmul %0, %1, %cst {dimension_numbers = #tpu.dot_dimension_numbers<[1], [0], [0], [1], [0, 0, 1, 1], [], []>} : vector<64x32xbf16>, vector<32x15xbf16>, vector<64x15xf32> -> vector<64x15xf32>
    %c0_3 = arith.constant 0 : index
    %c0_4 = arith.constant 0 : index
    %3 = vector.load %arg3[%c0_3, %c0_4] : memref<1x15xf32, #tpu.memory_space<vmem>>, vector<1x15xf32>
    %4 = vector.broadcast %3 : vector<1x15xf32> to vector<64x15xf32>
    %5 = arith.addf %2, %4 : vector<64x15xf32>
    %c0_5 = arith.constant 0 : index
    %c0_6 = arith.constant 0 : index
    %6 = vector.load %arg4[%c0_5, %c0_6] : memref<64x15xf32, #tpu.memory_space<vmem>>, vector<64x15xf32>
    tpu.vector_store %arg4[%c0_5, %c0_6], %5 {strides = array<i32>} : memref<64x15xf32, #tpu.memory_space<vmem>>, vector<64x15xf32>,
    return
  }
  func.func @transform_0(%arg0: i32) -> (i32, i32) {
    %c0_i32 = arith.constant 0 : i32
    %c0_i32_0 = arith.constant 0 : i32
    return %arg0, %c0_i32 : i32, i32
  }
  func.func @transform_1(%arg0: i32) -> (i32, i32) {
    %c0_i32 = arith.constant 0 : i32
    %c0_i32_0 = arith.constant 0 : i32
    %c0_i32_1 = arith.constant 0 : i32
    return %c0_i32, %c0_i32_0 : i32, i32
  }
  func.func @transform_2(%arg0: i32) -> (i32, i32) {
    %c0_i32 = arith.constant 0 : i32
    %c0_i32_0 = arith.constant 0 : i32
    %c0_i32_1 = arith.constant 0 : i32
    return %c0_i32, %c0_i32_0 : i32, i32
  }
  func.func @transform_3(%arg0: i32) -> (i32, i32) {
    %c0_i32 = arith.constant 0 : i32
    %c0_i32_0 = arith.constant 0 : i32
    return %arg0, %c0_i32 : i32, i32
  }
}

module attributes {stable_mosaic.version = 11 : i64} {
  func.func @_decode_kernel(%arg0: i32, %arg1: memref<4x16xf32, #tpu.memory_space<vmem>>, %arg2: memref<4x16xf32, #tpu.memory_space<vmem>>, %arg3: memref<4x16xf32, #tpu.memory_space<vmem>>) attributes {dimension_semantics = [#tpu.dimension_semantics<arbitrary>], iteration_bounds = array<i64: 1>, scalar_prefetch = 0 : i64, scratch_operands = 0 : i64, tpu.core_type = #tpu.core_type<tc>, window_params = [{pipeline_mode = #tpu.pipeline_mode<synchronous>, transform_indices = @transform_0, window_bounds = array<i64: 4, 16>}, {pipeline_mode = #tpu.pipeline_mode<synchronous>, transform_indices = @transform_1, window_bounds = array<i64: 4, 16>}, {pipeline_mode = #tpu.pipeline_mode<synchronous>, transform_indices = @transform_2, window_bounds = array<i64: 4, 16>}]} {
    %c0 = arith.constant 0 : index
    %c0_0 = arith.constant 0 : index
    %0 = vector.load %arg1[%c0, %c0_0] : memref<4x16xf32, #tpu.memory_space<vmem>>, vector<4x16xf32>
    %c0_1 = arith.constant 0 : index
    %c0_2 = arith.constant 0 : index
    %1 = vector.load %arg2[%c0_1, %c0_2] : memref<4x16xf32, #tpu.memory_space<vmem>>, vector<4x16xf32>
    %2 = vector.extract_strided_slice %0 {offsets = [0, 0], sizes = [1, 16], strides = [1, 1]} : vector<4x16xf32> to vector<1x16xf32>
    %3 = vector.extract_strided_slice %0 {offsets = [1, 0], sizes = [1, 16], strides = [1, 1]} : vector<4x16xf32> to vector<1x16xf32>
    %4 = vector.extract_strided_slice %0 {offsets = [2, 0], sizes = [1, 16], strides = [1, 1]} : vector<4x16xf32> to vector<1x16xf32>
    %5 = vector.extract_strided_slice %0 {offsets = [3, 0], sizes = [1, 16], strides = [1, 1]} : vector<4x16xf32> to vector<1x16xf32>
    %6 = vector.extract_strided_slice %1 {offsets = [0, 0], sizes = [1, 16], strides = [1, 1]} : vector<4x16xf32> to vector<1x16xf32>
    %7 = vector.extract_strided_slice %1 {offsets = [1, 0], sizes = [1, 16], strides = [1, 1]} : vector<4x16xf32> to vector<1x16xf32>
    %8 = vector.extract_strided_slice %1 {offsets = [2, 0], sizes = [1, 16], strides = [1, 1]} : vector<4x16xf32> to vector<1x16xf32>
    %9 = vector.extract_strided_slice %1 {offsets = [3, 0], sizes = [1, 16], strides = [1, 1]} : vector<4x16xf32> to vector<1x16xf32>
    %10 = arith.subf %4, %2 : vector<1x16xf32>
    %11 = arith.subf %5, %3 : vector<1x16xf32>
    %cst = arith.constant 5.000000e-01 : f32
    %12 = vector.broadcast %cst : f32 to vector<1x16xf32>
    %13 = arith.mulf %12, %10 : vector<1x16xf32>
    %14 = arith.addf %2, %13 : vector<1x16xf32>
    %cst_3 = arith.constant 5.000000e-01 : f32
    %15 = vector.broadcast %cst_3 : f32 to vector<1x16xf32>
    %16 = arith.mulf %15, %11 : vector<1x16xf32>
    %17 = arith.addf %3, %16 : vector<1x16xf32>
    %cst_4 = arith.constant 4.13516665 : f32
    %18 = vector.broadcast %cst_4 : f32 to vector<1x16xf32>
    %19 = arith.minimumf %8, %18 : vector<1x16xf32>
    %cst_5 = arith.constant 4.13516665 : f32
    %20 = vector.broadcast %cst_5 : f32 to vector<1x16xf32>
    %21 = arith.minimumf %9, %20 : vector<1x16xf32>
    %22 = arith.mulf %6, %10 : vector<1x16xf32>
    %23 = arith.addf %22, %14 : vector<1x16xf32>
    %24 = arith.mulf %7, %11 : vector<1x16xf32>
    %25 = arith.addf %24, %17 : vector<1x16xf32>
    %26 = math.exp %19 : vector<1x16xf32>
    %27 = arith.mulf %26, %10 : vector<1x16xf32>
    %28 = math.exp %21 : vector<1x16xf32>
    %29 = arith.mulf %28, %11 : vector<1x16xf32>
    %cst_6 = arith.constant 5.000000e-01 : f32
    %30 = vector.broadcast %cst_6 : f32 to vector<1x16xf32>
    %31 = arith.mulf %30, %27 : vector<1x16xf32>
    %32 = arith.subf %23, %31 : vector<1x16xf32>
    %cst_7 = arith.constant 0.000000e+00 : f32
    %cst_8 = arith.constant 6.400000e+01 : f32
    %33 = vector.broadcast %cst_7 : f32 to vector<1x16xf32>
    %34 = arith.maximumf %33, %32 : vector<1x16xf32>
    %35 = vector.broadcast %cst_8 : f32 to vector<1x16xf32>
    %36 = arith.minimumf %35, %34 : vector<1x16xf32>
    %cst_9 = arith.constant 5.000000e-01 : f32
    %37 = vector.broadcast %cst_9 : f32 to vector<1x16xf32>
    %38 = arith.mulf %37, %29 : vector<1x16xf32>
    %39 = arith.subf %25, %38 : vector<1x16xf32>
    %cst_10 = arith.constant 0.000000e+00 : f32
    %cst_11 = arith.constant 6.400000e+01 : f32
    %40 = vector.broadcast %cst_10 : f32 to vector<1x16xf32>
    %41 = arith.maximumf %40, %39 : vector<1x16xf32>
    %42 = vector.broadcast %cst_11 : f32 to vector<1x16xf32>
    %43 = arith.minimumf %42, %41 : vector<1x16xf32>
    %cst_12 = arith.constant 5.000000e-01 : f32
    %44 = vector.broadcast %cst_12 : f32 to vector<1x16xf32>
    %45 = arith.mulf %44, %27 : vector<1x16xf32>
    %46 = arith.addf %23, %45 : vector<1x16xf32>
    %cst_13 = arith.constant 0.000000e+00 : f32
    %cst_14 = arith.constant 6.400000e+01 : f32
    %47 = vector.broadcast %cst_13 : f32 to vector<1x16xf32>
    %48 = arith.maximumf %47, %46 : vector<1x16xf32>
    %49 = vector.broadcast %cst_14 : f32 to vector<1x16xf32>
    %50 = arith.minimumf %49, %48 : vector<1x16xf32>
    %cst_15 = arith.constant 5.000000e-01 : f32
    %51 = vector.broadcast %cst_15 : f32 to vector<1x16xf32>
    %52 = arith.mulf %51, %29 : vector<1x16xf32>
    %53 = arith.addf %25, %52 : vector<1x16xf32>
    %cst_16 = arith.constant 0.000000e+00 : f32
    %cst_17 = arith.constant 6.400000e+01 : f32
    %54 = vector.broadcast %cst_16 : f32 to vector<1x16xf32>
    %55 = arith.maximumf %54, %53 : vector<1x16xf32>
    %56 = vector.broadcast %cst_17 : f32 to vector<1x16xf32>
    %57 = arith.minimumf %56, %55 : vector<1x16xf32>
    %58 = tpu.concatenate %36, %43, %50, %57 in 0 : vector<1x16xf32>, vector<1x16xf32>, vector<1x16xf32>, vector<1x16xf32> -> vector<4x16xf32>
    %c0_18 = arith.constant 0 : index
    %c0_19 = arith.constant 0 : index
    %59 = vector.load %arg3[%c0_18, %c0_19] : memref<4x16xf32, #tpu.memory_space<vmem>>, vector<4x16xf32>
    tpu.vector_store %arg3[%c0_18, %c0_19], %58 {strides = array<i32>} : memref<4x16xf32, #tpu.memory_space<vmem>>, vector<4x16xf32>,
    return
  }
  func.func @transform_0(%arg0: i32) -> (i32, i32) {
    %c0_i32 = arith.constant 0 : i32
    %c0_i32_0 = arith.constant 0 : i32
    %c0_i32_1 = arith.constant 0 : i32
    return %c0_i32, %c0_i32_0 : i32, i32
  }
  func.func @transform_1(%arg0: i32) -> (i32, i32) {
    %c0_i32 = arith.constant 0 : i32
    %c0_i32_0 = arith.constant 0 : i32
    %c0_i32_1 = arith.constant 0 : i32
    return %c0_i32, %c0_i32_0 : i32, i32
  }
  func.func @transform_2(%arg0: i32) -> (i32, i32) {
    %c0_i32 = arith.constant 0 : i32
    %c0_i32_0 = arith.constant 0 : i32
    %c0_i32_1 = arith.constant 0 : i32
    return %c0_i32, %c0_i32_0 : i32, i32
  }
}

module attributes {stable_mosaic.version = 11 : i64} {
  func.func @_mm_bias_kernel(%arg0: i32, %arg1: memref<16x512xbf16, #tpu.memory_space<vmem>>, %arg2: memref<512x64xbf16, #tpu.memory_space<vmem>>, %arg3: memref<1x64xf32, #tpu.memory_space<vmem>>, %arg4: memref<16x64xbf16, #tpu.memory_space<vmem>>) attributes {dimension_semantics = [#tpu.dimension_semantics<parallel>], iteration_bounds = array<i64: 1>, scalar_prefetch = 0 : i64, scratch_operands = 0 : i64, tpu.core_type = #tpu.core_type<tc>, window_params = [{transform_indices = @transform_0, window_bounds = array<i64: 16, 512>}, {pipeline_mode = #tpu.pipeline_mode<synchronous>, transform_indices = @transform_1, window_bounds = array<i64: 512, 64>}, {pipeline_mode = #tpu.pipeline_mode<synchronous>, transform_indices = @transform_2, window_bounds = array<i64: 1, 64>}, {transform_indices = @transform_3, window_bounds = array<i64: 16, 64>}]} {
    %c0 = arith.constant 0 : index
    %c0_0 = arith.constant 0 : index
    %0 = vector.load %arg1[%c0, %c0_0] : memref<16x512xbf16, #tpu.memory_space<vmem>>, vector<16x512xbf16>
    %c0_1 = arith.constant 0 : index
    %c0_2 = arith.constant 0 : index
    %1 = vector.load %arg2[%c0_1, %c0_2] : memref<512x64xbf16, #tpu.memory_space<vmem>>, vector<512x64xbf16>
    %cst = arith.constant dense<0.000000e+00> : vector<16x64xf32>
    %2 = tpu.matmul %0, %1, %cst {dimension_numbers = #tpu.dot_dimension_numbers<[1], [0], [0], [1], [0, 0, 1, 1], [], []>} : vector<16x512xbf16>, vector<512x64xbf16>, vector<16x64xf32> -> vector<16x64xf32>
    %c0_3 = arith.constant 0 : index
    %c0_4 = arith.constant 0 : index
    %3 = vector.load %arg3[%c0_3, %c0_4] : memref<1x64xf32, #tpu.memory_space<vmem>>, vector<1x64xf32>
    %4 = vector.broadcast %3 : vector<1x64xf32> to vector<16x64xf32>
    %5 = arith.addf %2, %4 : vector<16x64xf32>
    %cst_5 = arith.constant 0.000000e+00 : f32
    %6 = vector.broadcast %cst_5 : f32 to vector<16x64xf32>
    %7 = arith.maximumf %5, %6 : vector<16x64xf32>
    %8 = arith.truncf %7 : vector<16x64xf32> to vector<16x64xbf16>
    %c0_6 = arith.constant 0 : index
    %c0_7 = arith.constant 0 : index
    %9 = vector.load %arg4[%c0_6, %c0_7] : memref<16x64xbf16, #tpu.memory_space<vmem>>, vector<16x64xbf16>
    tpu.vector_store %arg4[%c0_6, %c0_7], %8 {strides = array<i32>} : memref<16x64xbf16, #tpu.memory_space<vmem>>, vector<16x64xbf16>,
    return
  }
  func.func @transform_0(%arg0: i32) -> (i32, i32) {
    %c0_i32 = arith.constant 0 : i32
    %c0_i32_0 = arith.constant 0 : i32
    return %arg0, %c0_i32 : i32, i32
  }
  func.func @transform_1(%arg0: i32) -> (i32, i32) {
    %c0_i32 = arith.constant 0 : i32
    %c0_i32_0 = arith.constant 0 : i32
    %c0_i32_1 = arith.constant 0 : i32
    return %c0_i32, %c0_i32_0 : i32, i32
  }
  func.func @transform_2(%arg0: i32) -> (i32, i32) {
    %c0_i32 = arith.constant 0 : i32
    %c0_i32_0 = arith.constant 0 : i32
    %c0_i32_1 = arith.constant 0 : i32
    return %c0_i32, %c0_i32_0 : i32, i32
  }
  func.func @transform_3(%arg0: i32) -> (i32, i32) {
    %c0_i32 = arith.constant 0 : i32
    %c0_i32_0 = arith.constant 0 : i32
    return %arg0, %c0_i32 : i32, i32
  }
}

module attributes {stable_mosaic.version = 11 : i64} {
  func.func @_mm_bias_kernel(%arg0: i32, %arg1: memref<16x64xbf16, #tpu.memory_space<vmem>>, %arg2: memref<64x25xbf16, #tpu.memory_space<vmem>>, %arg3: memref<1x25xf32, #tpu.memory_space<vmem>>, %arg4: memref<16x25xf32, #tpu.memory_space<vmem>>) attributes {dimension_semantics = [#tpu.dimension_semantics<parallel>], iteration_bounds = array<i64: 1>, scalar_prefetch = 0 : i64, scratch_operands = 0 : i64, tpu.core_type = #tpu.core_type<tc>, window_params = [{transform_indices = @transform_0, window_bounds = array<i64: 16, 64>}, {pipeline_mode = #tpu.pipeline_mode<synchronous>, transform_indices = @transform_1, window_bounds = array<i64: 64, 25>}, {pipeline_mode = #tpu.pipeline_mode<synchronous>, transform_indices = @transform_2, window_bounds = array<i64: 1, 25>}, {transform_indices = @transform_3, window_bounds = array<i64: 16, 25>}]} {
    %c0 = arith.constant 0 : index
    %c0_0 = arith.constant 0 : index
    %0 = vector.load %arg1[%c0, %c0_0] : memref<16x64xbf16, #tpu.memory_space<vmem>>, vector<16x64xbf16>
    %c0_1 = arith.constant 0 : index
    %c0_2 = arith.constant 0 : index
    %1 = vector.load %arg2[%c0_1, %c0_2] : memref<64x25xbf16, #tpu.memory_space<vmem>>, vector<64x25xbf16>
    %cst = arith.constant dense<0.000000e+00> : vector<16x25xf32>
    %2 = tpu.matmul %0, %1, %cst {dimension_numbers = #tpu.dot_dimension_numbers<[1], [0], [0], [1], [0, 0, 1, 1], [], []>} : vector<16x64xbf16>, vector<64x25xbf16>, vector<16x25xf32> -> vector<16x25xf32>
    %c0_3 = arith.constant 0 : index
    %c0_4 = arith.constant 0 : index
    %3 = vector.load %arg3[%c0_3, %c0_4] : memref<1x25xf32, #tpu.memory_space<vmem>>, vector<1x25xf32>
    %4 = vector.broadcast %3 : vector<1x25xf32> to vector<16x25xf32>
    %5 = arith.addf %2, %4 : vector<16x25xf32>
    %c0_5 = arith.constant 0 : index
    %c0_6 = arith.constant 0 : index
    %6 = vector.load %arg4[%c0_5, %c0_6] : memref<16x25xf32, #tpu.memory_space<vmem>>, vector<16x25xf32>
    tpu.vector_store %arg4[%c0_5, %c0_6], %5 {strides = array<i32>} : memref<16x25xf32, #tpu.memory_space<vmem>>, vector<16x25xf32>,
    return
  }
  func.func @transform_0(%arg0: i32) -> (i32, i32) {
    %c0_i32 = arith.constant 0 : i32
    %c0_i32_0 = arith.constant 0 : i32
    return %arg0, %c0_i32 : i32, i32
  }
  func.func @transform_1(%arg0: i32) -> (i32, i32) {
    %c0_i32 = arith.constant 0 : i32
    %c0_i32_0 = arith.constant 0 : i32
    %c0_i32_1 = arith.constant 0 : i32
    return %c0_i32, %c0_i32_0 : i32, i32
  }
  func.func @transform_2(%arg0: i32) -> (i32, i32) {
    %c0_i32 = arith.constant 0 : i32
    %c0_i32_0 = arith.constant 0 : i32
    %c0_i32_1 = arith.constant 0 : i32
    return %c0_i32, %c0_i32_0 : i32, i32
  }
  func.func @transform_3(%arg0: i32) -> (i32, i32) {
    %c0_i32 = arith.constant 0 : i32
    %c0_i32_0 = arith.constant 0 : i32
    return %arg0, %c0_i32 : i32, i32
  }
}

module attributes {stable_mosaic.version = 11 : i64} {
  func.func @_postprocess_kernel(%arg0: i32, %arg1: memref<16x4xf32, #tpu.memory_space<vmem>>, %arg2: memref<4x16xf32, #tpu.memory_space<vmem>>, %arg3: memref<16x4xf32, #tpu.memory_space<vmem>>, %arg4: memref<4x16xf32, #tpu.memory_space<vmem>>, %arg5: memref<1x16xf32, #tpu.memory_space<vmem>>, %arg6: memref<4x16xf32, #tpu.memory_space<vmem>>, %arg7: memref<1x16xf32, #tpu.memory_space<vmem>>) attributes {dimension_semantics = [#tpu.dimension_semantics<arbitrary>], iteration_bounds = array<i64: 1>, scalar_prefetch = 0 : i64, scratch_operands = 0 : i64, tpu.core_type = #tpu.core_type<tc>, window_params = [{pipeline_mode = #tpu.pipeline_mode<synchronous>, transform_indices = @transform_0, window_bounds = array<i64: 16, 4>}, {pipeline_mode = #tpu.pipeline_mode<synchronous>, transform_indices = @transform_1, window_bounds = array<i64: 4, 16>}, {pipeline_mode = #tpu.pipeline_mode<synchronous>, transform_indices = @transform_2, window_bounds = array<i64: 16, 4>}, {pipeline_mode = #tpu.pipeline_mode<synchronous>, transform_indices = @transform_3, window_bounds = array<i64: 4, 16>}, {pipeline_mode = #tpu.pipeline_mode<synchronous>, transform_indices = @transform_4, window_bounds = array<i64: 1, 16>}, {pipeline_mode = #tpu.pipeline_mode<synchronous>, transform_indices = @transform_5, window_bounds = array<i64: 4, 16>}, {pipeline_mode = #tpu.pipeline_mode<synchronous>, transform_indices = @transform_6, window_bounds = array<i64: 1, 16>}]} {
    %c0 = arith.constant 0 : index
    %c0_0 = arith.constant 0 : index
    %0 = vector.load %arg2[%c0, %c0_0] : memref<4x16xf32, #tpu.memory_space<vmem>>, vector<4x16xf32>
    %c0_1 = arith.constant 0 : index
    %c0_2 = arith.constant 0 : index
    %1 = vector.load %arg4[%c0_1, %c0_2] : memref<4x16xf32, #tpu.memory_space<vmem>>, vector<4x16xf32>
    %2 = vector.extract_strided_slice %0 {offsets = [0, 0], sizes = [1, 16], strides = [1, 1]} : vector<4x16xf32> to vector<1x16xf32>
    %3 = vector.extract_strided_slice %0 {offsets = [1, 0], sizes = [1, 16], strides = [1, 1]} : vector<4x16xf32> to vector<1x16xf32>
    %4 = vector.extract_strided_slice %0 {offsets = [2, 0], sizes = [1, 16], strides = [1, 1]} : vector<4x16xf32> to vector<1x16xf32>
    %5 = vector.extract_strided_slice %0 {offsets = [3, 0], sizes = [1, 16], strides = [1, 1]} : vector<4x16xf32> to vector<1x16xf32>
    %6 = vector.extract_strided_slice %1 {offsets = [0, 0], sizes = [1, 16], strides = [1, 1]} : vector<4x16xf32> to vector<1x16xf32>
    %7 = vector.extract_strided_slice %1 {offsets = [1, 0], sizes = [1, 16], strides = [1, 1]} : vector<4x16xf32> to vector<1x16xf32>
    %8 = vector.extract_strided_slice %1 {offsets = [2, 0], sizes = [1, 16], strides = [1, 1]} : vector<4x16xf32> to vector<1x16xf32>
    %9 = vector.extract_strided_slice %1 {offsets = [3, 0], sizes = [1, 16], strides = [1, 1]} : vector<4x16xf32> to vector<1x16xf32>
    %10 = arith.subf %4, %2 : vector<1x16xf32>
    %11 = arith.subf %5, %3 : vector<1x16xf32>
    %cst = arith.constant 5.000000e-01 : f32
    %12 = vector.broadcast %cst : f32 to vector<1x16xf32>
    %13 = arith.mulf %12, %10 : vector<1x16xf32>
    %14 = arith.addf %2, %13 : vector<1x16xf32>
    %cst_3 = arith.constant 5.000000e-01 : f32
    %15 = vector.broadcast %cst_3 : f32 to vector<1x16xf32>
    %16 = arith.mulf %15, %11 : vector<1x16xf32>
    %17 = arith.addf %3, %16 : vector<1x16xf32>
    %cst_4 = arith.constant 4.13516665 : f32
    %18 = vector.broadcast %cst_4 : f32 to vector<1x16xf32>
    %19 = arith.minimumf %8, %18 : vector<1x16xf32>
    %cst_5 = arith.constant 4.13516665 : f32
    %20 = vector.broadcast %cst_5 : f32 to vector<1x16xf32>
    %21 = arith.minimumf %9, %20 : vector<1x16xf32>
    %22 = arith.mulf %6, %10 : vector<1x16xf32>
    %23 = arith.addf %22, %14 : vector<1x16xf32>
    %24 = arith.mulf %7, %11 : vector<1x16xf32>
    %25 = arith.addf %24, %17 : vector<1x16xf32>
    %26 = math.exp %19 : vector<1x16xf32>
    %27 = arith.mulf %26, %10 : vector<1x16xf32>
    %28 = math.exp %21 : vector<1x16xf32>
    %29 = arith.mulf %28, %11 : vector<1x16xf32>
    %cst_6 = arith.constant 5.000000e-01 : f32
    %30 = vector.broadcast %cst_6 : f32 to vector<1x16xf32>
    %31 = arith.mulf %30, %27 : vector<1x16xf32>
    %32 = arith.subf %23, %31 : vector<1x16xf32>
    %cst_7 = arith.constant 0.000000e+00 : f32
    %cst_8 = arith.constant 6.400000e+01 : f32
    %33 = vector.broadcast %cst_7 : f32 to vector<1x16xf32>
    %34 = arith.maximumf %33, %32 : vector<1x16xf32>
    %35 = vector.broadcast %cst_8 : f32 to vector<1x16xf32>
    %36 = arith.minimumf %35, %34 : vector<1x16xf32>
    %cst_9 = arith.constant 5.000000e-01 : f32
    %37 = vector.broadcast %cst_9 : f32 to vector<1x16xf32>
    %38 = arith.mulf %37, %29 : vector<1x16xf32>
    %39 = arith.subf %25, %38 : vector<1x16xf32>
    %cst_10 = arith.constant 0.000000e+00 : f32
    %cst_11 = arith.constant 6.400000e+01 : f32
    %40 = vector.broadcast %cst_10 : f32 to vector<1x16xf32>
    %41 = arith.maximumf %40, %39 : vector<1x16xf32>
    %42 = vector.broadcast %cst_11 : f32 to vector<1x16xf32>
    %43 = arith.minimumf %42, %41 : vector<1x16xf32>
    %cst_12 = arith.constant 5.000000e-01 : f32
    %44 = vector.broadcast %cst_12 : f32 to vector<1x16xf32>
    %45 = arith.mulf %44, %27 : vector<1x16xf32>
    %46 = arith.addf %23, %45 : vector<1x16xf32>
    %cst_13 = arith.constant 0.000000e+00 : f32
    %cst_14 = arith.constant 6.400000e+01 : f32
    %47 = vector.broadcast %cst_13 : f32 to vector<1x16xf32>
    %48 = arith.maximumf %47, %46 : vector<1x16xf32>
    %49 = vector.broadcast %cst_14 : f32 to vector<1x16xf32>
    %50 = arith.minimumf %49, %48 : vector<1x16xf32>
    %cst_15 = arith.constant 5.000000e-01 : f32
    %51 = vector.broadcast %cst_15 : f32 to vector<1x16xf32>
    %52 = arith.mulf %51, %29 : vector<1x16xf32>
    %53 = arith.addf %25, %52 : vector<1x16xf32>
    %cst_16 = arith.constant 0.000000e+00 : f32
    %cst_17 = arith.constant 6.400000e+01 : f32
    %54 = vector.broadcast %cst_16 : f32 to vector<1x16xf32>
    %55 = arith.maximumf %54, %53 : vector<1x16xf32>
    %56 = vector.broadcast %cst_17 : f32 to vector<1x16xf32>
    %57 = arith.minimumf %56, %55 : vector<1x16xf32>
    %58 = tpu.concatenate %36, %43, %50, %57 in 0 : vector<1x16xf32>, vector<1x16xf32>, vector<1x16xf32>, vector<1x16xf32> -> vector<4x16xf32>
    %c0_18 = arith.constant 0 : index
    %c0_19 = arith.constant 0 : index
    %59 = vector.load %arg6[%c0_18, %c0_19] : memref<4x16xf32, #tpu.memory_space<vmem>>, vector<4x16xf32>
    tpu.vector_store %arg6[%c0_18, %c0_19], %58 {strides = array<i32>} : memref<4x16xf32, #tpu.memory_space<vmem>>, vector<4x16xf32>,
    %c0_20 = arith.constant 0 : index
    %c0_21 = arith.constant 0 : index
    %60 = vector.load %arg1[%c0_20, %c0_21] : memref<16x4xf32, #tpu.memory_space<vmem>>, vector<16x4xf32>
    %c0_22 = arith.constant 0 : index
    %c0_23 = arith.constant 0 : index
    %61 = vector.load %arg3[%c0_22, %c0_23] : memref<16x4xf32, #tpu.memory_space<vmem>>, vector<16x4xf32>
    %62 = vector.extract_strided_slice %60 {offsets = [0, 0], sizes = [16, 1], strides = [1, 1]} : vector<16x4xf32> to vector<16x1xf32>
    %63 = vector.extract_strided_slice %60 {offsets = [0, 1], sizes = [16, 1], strides = [1, 1]} : vector<16x4xf32> to vector<16x1xf32>
    %64 = vector.extract_strided_slice %60 {offsets = [0, 2], sizes = [16, 1], strides = [1, 1]} : vector<16x4xf32> to vector<16x1xf32>
    %65 = vector.extract_strided_slice %60 {offsets = [0, 3], sizes = [16, 1], strides = [1, 1]} : vector<16x4xf32> to vector<16x1xf32>
    %66 = vector.extract_strided_slice %61 {offsets = [0, 0], sizes = [16, 1], strides = [1, 1]} : vector<16x4xf32> to vector<16x1xf32>
    %67 = vector.extract_strided_slice %61 {offsets = [0, 1], sizes = [16, 1], strides = [1, 1]} : vector<16x4xf32> to vector<16x1xf32>
    %68 = vector.extract_strided_slice %61 {offsets = [0, 2], sizes = [16, 1], strides = [1, 1]} : vector<16x4xf32> to vector<16x1xf32>
    %69 = vector.extract_strided_slice %61 {offsets = [0, 3], sizes = [16, 1], strides = [1, 1]} : vector<16x4xf32> to vector<16x1xf32>
    %70 = arith.subf %64, %62 : vector<16x1xf32>
    %71 = arith.subf %65, %63 : vector<16x1xf32>
    %cst_24 = arith.constant 5.000000e-01 : f32
    %72 = vector.broadcast %cst_24 : f32 to vector<16x1xf32>
    %73 = arith.mulf %72, %70 : vector<16x1xf32>
    %74 = arith.addf %62, %73 : vector<16x1xf32>
    %cst_25 = arith.constant 5.000000e-01 : f32
    %75 = vector.broadcast %cst_25 : f32 to vector<16x1xf32>
    %76 = arith.mulf %75, %71 : vector<16x1xf32>
    %77 = arith.addf %63, %76 : vector<16x1xf32>
    %cst_26 = arith.constant 4.13516665 : f32
    %78 = vector.broadcast %cst_26 : f32 to vector<16x1xf32>
    %79 = arith.minimumf %68, %78 : vector<16x1xf32>
    %cst_27 = arith.constant 4.13516665 : f32
    %80 = vector.broadcast %cst_27 : f32 to vector<16x1xf32>
    %81 = arith.minimumf %69, %80 : vector<16x1xf32>
    %82 = arith.mulf %66, %70 : vector<16x1xf32>
    %83 = arith.addf %82, %74 : vector<16x1xf32>
    %84 = arith.mulf %67, %71 : vector<16x1xf32>
    %85 = arith.addf %84, %77 : vector<16x1xf32>
    %86 = math.exp %79 : vector<16x1xf32>
    %87 = arith.mulf %86, %70 : vector<16x1xf32>
    %88 = math.exp %81 : vector<16x1xf32>
    %89 = arith.mulf %88, %71 : vector<16x1xf32>
    %cst_28 = arith.constant 5.000000e-01 : f32
    %90 = vector.broadcast %cst_28 : f32 to vector<16x1xf32>
    %91 = arith.mulf %90, %87 : vector<16x1xf32>
    %92 = arith.subf %83, %91 : vector<16x1xf32>
    %cst_29 = arith.constant 0.000000e+00 : f32
    %cst_30 = arith.constant 6.400000e+01 : f32
    %93 = vector.broadcast %cst_29 : f32 to vector<16x1xf32>
    %94 = arith.maximumf %93, %92 : vector<16x1xf32>
    %95 = vector.broadcast %cst_30 : f32 to vector<16x1xf32>
    %96 = arith.minimumf %95, %94 : vector<16x1xf32>
    %cst_31 = arith.constant 5.000000e-01 : f32
    %97 = vector.broadcast %cst_31 : f32 to vector<16x1xf32>
    %98 = arith.mulf %97, %89 : vector<16x1xf32>
    %99 = arith.subf %85, %98 : vector<16x1xf32>
    %cst_32 = arith.constant 0.000000e+00 : f32
    %cst_33 = arith.constant 6.400000e+01 : f32
    %100 = vector.broadcast %cst_32 : f32 to vector<16x1xf32>
    %101 = arith.maximumf %100, %99 : vector<16x1xf32>
    %102 = vector.broadcast %cst_33 : f32 to vector<16x1xf32>
    %103 = arith.minimumf %102, %101 : vector<16x1xf32>
    %cst_34 = arith.constant 5.000000e-01 : f32
    %104 = vector.broadcast %cst_34 : f32 to vector<16x1xf32>
    %105 = arith.mulf %104, %87 : vector<16x1xf32>
    %106 = arith.addf %83, %105 : vector<16x1xf32>
    %cst_35 = arith.constant 0.000000e+00 : f32
    %cst_36 = arith.constant 6.400000e+01 : f32
    %107 = vector.broadcast %cst_35 : f32 to vector<16x1xf32>
    %108 = arith.maximumf %107, %106 : vector<16x1xf32>
    %109 = vector.broadcast %cst_36 : f32 to vector<16x1xf32>
    %110 = arith.minimumf %109, %108 : vector<16x1xf32>
    %cst_37 = arith.constant 5.000000e-01 : f32
    %111 = vector.broadcast %cst_37 : f32 to vector<16x1xf32>
    %112 = arith.mulf %111, %89 : vector<16x1xf32>
    %113 = arith.addf %85, %112 : vector<16x1xf32>
    %cst_38 = arith.constant 0.000000e+00 : f32
    %cst_39 = arith.constant 6.400000e+01 : f32
    %114 = vector.broadcast %cst_38 : f32 to vector<16x1xf32>
    %115 = arith.maximumf %114, %113 : vector<16x1xf32>
    %116 = vector.broadcast %cst_39 : f32 to vector<16x1xf32>
    %117 = arith.minimumf %116, %115 : vector<16x1xf32>
    %118 = arith.subf %110, %96 : vector<16x1xf32>
    %119 = arith.subf %117, %103 : vector<16x1xf32>
    %120 = arith.mulf %118, %119 : vector<16x1xf32>
    %121 = arith.subf %50, %36 : vector<1x16xf32>
    %122 = arith.subf %57, %43 : vector<1x16xf32>
    %123 = arith.mulf %121, %122 : vector<1x16xf32>
    %124 = vector.broadcast %96 : vector<16x1xf32> to vector<16x16xf32>
    %125 = vector.broadcast %36 : vector<1x16xf32> to vector<16x16xf32>
    %126 = arith.maximumf %124, %125 : vector<16x16xf32>
    %127 = vector.broadcast %103 : vector<16x1xf32> to vector<16x16xf32>
    %128 = vector.broadcast %43 : vector<1x16xf32> to vector<16x16xf32>
    %129 = arith.maximumf %127, %128 : vector<16x16xf32>
    %130 = vector.broadcast %110 : vector<16x1xf32> to vector<16x16xf32>
    %131 = vector.broadcast %50 : vector<1x16xf32> to vector<16x16xf32>
    %132 = arith.minimumf %130, %131 : vector<16x16xf32>
    %133 = vector.broadcast %117 : vector<16x1xf32> to vector<16x16xf32>
    %134 = vector.broadcast %57 : vector<1x16xf32> to vector<16x16xf32>
    %135 = arith.minimumf %133, %134 : vector<16x16xf32>
    %136 = arith.subf %132, %126 : vector<16x16xf32>
    %cst_40 = arith.constant 0.000000e+00 : f32
    %137 = vector.broadcast %cst_40 : f32 to vector<16x16xf32>
    %138 = arith.maximumf %136, %137 : vector<16x16xf32>
    %139 = arith.subf %135, %129 : vector<16x16xf32>
    %cst_41 = arith.constant 0.000000e+00 : f32
    %140 = vector.broadcast %cst_41 : f32 to vector<16x16xf32>
    %141 = arith.maximumf %139, %140 : vector<16x16xf32>
    %142 = arith.mulf %138, %141 : vector<16x16xf32>
    %143 = vector.broadcast %120 : vector<16x1xf32> to vector<16x16xf32>
    %144 = vector.broadcast %123 : vector<1x16xf32> to vector<16x16xf32>
    %145 = arith.addf %143, %144 : vector<16x16xf32>
    %146 = arith.subf %145, %142 : vector<16x16xf32>
    %cst_42 = arith.constant 9.99999997E-7 : f32
    %147 = vector.broadcast %cst_42 : f32 to vector<16x16xf32>
    %148 = arith.maximumf %146, %147 : vector<16x16xf32>
    %149 = arith.divf %142, %148 : vector<16x16xf32>
    %150 = tpu.iota {dimensions = array<i32: 1>} : vector<1x16xi32>
    %c0_43 = arith.constant 0 : index
    %c0_44 = arith.constant 0 : index
    %151 = vector.load %arg5[%c0_43, %c0_44] : memref<1x16xf32, #tpu.memory_space<vmem>>, vector<1x16xf32>
    %cst_45 = arith.constant 5.000000e-02 : f32
    %152 = vector.broadcast %cst_45 : f32 to vector<1x16xf32>
    %153 = arith.cmpf ogt, %151, %152 : vector<1x16xf32>
    %154 = arith.extui %153 : vector<1x16xi1> to vector<1x16xi32>
    %155 = arith.sitofp %154 : vector<1x16xi32> to vector<1x16xf32>
    %c0_i32 = arith.constant 0 : i32
    %156 = vector.broadcast %c0_i32 : i32 to vector<1x16xi32>
    %157 = arith.cmpi eq, %150, %156 : vector<1x16xi32>
    %cst_46 = arith.constant 0.000000e+00 : f32
    %158 = vector.broadcast %cst_46 : f32 to vector<1x16xf32>
    %159 = arith.select %157, %155, %158 : vector<1x16xi1>, vector<1x16xf32>
    %160 = vector.shape_cast %159 : vector<1x16xf32> to vector<1x1x16xf32>
    %cst_47 = arith.constant dense<0.000000e+00> : vector<1xf32>
    %161 = vector.multi_reduction <add>, %160, %cst_47 [1, 2] : vector<1x1x16xf32> to vector<1xf32>
    %162 = vector.shape_cast %161 : vector<1xf32> to vector<1x1x1xf32>
    %163 = vector.extract %162[0, 0, 0] : f32 from vector<1x1x1xf32>
    %164 = vector.extract_strided_slice %149 {offsets = [0, 0], sizes = [1, 16], strides = [1, 1]} : vector<16x16xf32> to vector<1x16xf32>
    %cst_48 = arith.constant 5.000000e-01 : f32
    %165 = vector.broadcast %cst_48 : f32 to vector<1x16xf32>
    %166 = arith.cmpf ogt, %164, %165 : vector<1x16xf32>
    %c0_i32_49 = arith.constant 0 : i32
    %167 = vector.broadcast %c0_i32_49 : i32 to vector<1x16xi32>
    %168 = arith.cmpi sgt, %150, %167 : vector<1x16xi32>
    %169 = arith.andi %166, %168 : vector<1x16xi1>
    %cst_50 = arith.constant 0.000000e+00 : f32
    %170 = arith.cmpf ogt, %163, %cst_50 : f32
    %171 = vector.broadcast %170 : i1 to vector<1x16xi1>
    %172 = arith.andi %169, %171 : vector<1x16xi1>
    %cst_51 = arith.constant 0.000000e+00 : f32
    %173 = vector.broadcast %cst_51 : f32 to vector<1x16xf32>
    %174 = arith.select %172, %173, %155 : vector<1x16xi1>, vector<1x16xf32>
    %c1_i32 = arith.constant 1 : i32
    %175 = vector.broadcast %c1_i32 : i32 to vector<1x16xi32>
    %176 = arith.cmpi eq, %150, %175 : vector<1x16xi32>
    %cst_52 = arith.constant 0.000000e+00 : f32
    %177 = vector.broadcast %cst_52 : f32 to vector<1x16xf32>
    %178 = arith.select %176, %174, %177 : vector<1x16xi1>, vector<1x16xf32>
    %179 = vector.shape_cast %178 : vector<1x16xf32> to vector<1x1x16xf32>
    %cst_53 = arith.constant dense<0.000000e+00> : vector<1xf32>
    %180 = vector.multi_reduction <add>, %179, %cst_53 [1, 2] : vector<1x1x16xf32> to vector<1xf32>
    %181 = vector.shape_cast %180 : vector<1xf32> to vector<1x1x1xf32>
    %182 = vector.extract %181[0, 0, 0] : f32 from vector<1x1x1xf32>
    %183 = vector.extract_strided_slice %149 {offsets = [1, 0], sizes = [1, 16], strides = [1, 1]} : vector<16x16xf32> to vector<1x16xf32>
    %cst_54 = arith.constant 5.000000e-01 : f32
    %184 = vector.broadcast %cst_54 : f32 to vector<1x16xf32>
    %185 = arith.cmpf ogt, %183, %184 : vector<1x16xf32>
    %c1_i32_55 = arith.constant 1 : i32
    %186 = vector.broadcast %c1_i32_55 : i32 to vector<1x16xi32>
    %187 = arith.cmpi sgt, %150, %186 : vector<1x16xi32>
    %188 = arith.andi %185, %187 : vector<1x16xi1>
    %cst_56 = arith.constant 0.000000e+00 : f32
    %189 = arith.cmpf ogt, %182, %cst_56 : f32
    %190 = vector.broadcast %189 : i1 to vector<1x16xi1>
    %191 = arith.andi %188, %190 : vector<1x16xi1>
    %cst_57 = arith.constant 0.000000e+00 : f32
    %192 = vector.broadcast %cst_57 : f32 to vector<1x16xf32>
    %193 = arith.select %191, %192, %174 : vector<1x16xi1>, vector<1x16xf32>
    %c2_i32 = arith.constant 2 : i32
    %194 = vector.broadcast %c2_i32 : i32 to vector<1x16xi32>
    %195 = arith.cmpi eq, %150, %194 : vector<1x16xi32>
    %cst_58 = arith.constant 0.000000e+00 : f32
    %196 = vector.broadcast %cst_58 : f32 to vector<1x16xf32>
    %197 = arith.select %195, %193, %196 : vector<1x16xi1>, vector<1x16xf32>
    %198 = vector.shape_cast %197 : vector<1x16xf32> to vector<1x1x16xf32>
    %cst_59 = arith.constant dense<0.000000e+00> : vector<1xf32>
    %199 = vector.multi_reduction <add>, %198, %cst_59 [1, 2] : vector<1x1x16xf32> to vector<1xf32>
    %200 = vector.shape_cast %199 : vector<1xf32> to vector<1x1x1xf32>
    %201 = vector.extract %200[0, 0, 0] : f32 from vector<1x1x1xf32>
    %202 = vector.extract_strided_slice %149 {offsets = [2, 0], sizes = [1, 16], strides = [1, 1]} : vector<16x16xf32> to vector<1x16xf32>
    %cst_60 = arith.constant 5.000000e-01 : f32
    %203 = vector.broadcast %cst_60 : f32 to vector<1x16xf32>
    %204 = arith.cmpf ogt, %202, %203 : vector<1x16xf32>
    %c2_i32_61 = arith.constant 2 : i32
    %205 = vector.broadcast %c2_i32_61 : i32 to vector<1x16xi32>
    %206 = arith.cmpi sgt, %150, %205 : vector<1x16xi32>
    %207 = arith.andi %204, %206 : vector<1x16xi1>
    %cst_62 = arith.constant 0.000000e+00 : f32
    %208 = arith.cmpf ogt, %201, %cst_62 : f32
    %209 = vector.broadcast %208 : i1 to vector<1x16xi1>
    %210 = arith.andi %207, %209 : vector<1x16xi1>
    %cst_63 = arith.constant 0.000000e+00 : f32
    %211 = vector.broadcast %cst_63 : f32 to vector<1x16xf32>
    %212 = arith.select %210, %211, %193 : vector<1x16xi1>, vector<1x16xf32>
    %c3_i32 = arith.constant 3 : i32
    %213 = vector.broadcast %c3_i32 : i32 to vector<1x16xi32>
    %214 = arith.cmpi eq, %150, %213 : vector<1x16xi32>
    %cst_64 = arith.constant 0.000000e+00 : f32
    %215 = vector.broadcast %cst_64 : f32 to vector<1x16xf32>
    %216 = arith.select %214, %212, %215 : vector<1x16xi1>, vector<1x16xf32>
    %217 = vector.shape_cast %216 : vector<1x16xf32> to vector<1x1x16xf32>
    %cst_65 = arith.constant dense<0.000000e+00> : vector<1xf32>
    %218 = vector.multi_reduction <add>, %217, %cst_65 [1, 2] : vector<1x1x16xf32> to vector<1xf32>
    %219 = vector.shape_cast %218 : vector<1xf32> to vector<1x1x1xf32>
    %220 = vector.extract %219[0, 0, 0] : f32 from vector<1x1x1xf32>
    %221 = vector.extract_strided_slice %149 {offsets = [3, 0], sizes = [1, 16], strides = [1, 1]} : vector<16x16xf32> to vector<1x16xf32>
    %cst_66 = arith.constant 5.000000e-01 : f32
    %222 = vector.broadcast %cst_66 : f32 to vector<1x16xf32>
    %223 = arith.cmpf ogt, %221, %222 : vector<1x16xf32>
    %c3_i32_67 = arith.constant 3 : i32
    %224 = vector.broadcast %c3_i32_67 : i32 to vector<1x16xi32>
    %225 = arith.cmpi sgt, %150, %224 : vector<1x16xi32>
    %226 = arith.andi %223, %225 : vector<1x16xi1>
    %cst_68 = arith.constant 0.000000e+00 : f32
    %227 = arith.cmpf ogt, %220, %cst_68 : f32
    %228 = vector.broadcast %227 : i1 to vector<1x16xi1>
    %229 = arith.andi %226, %228 : vector<1x16xi1>
    %cst_69 = arith.constant 0.000000e+00 : f32
    %230 = vector.broadcast %cst_69 : f32 to vector<1x16xf32>
    %231 = arith.select %229, %230, %212 : vector<1x16xi1>, vector<1x16xf32>
    %c4_i32 = arith.constant 4 : i32
    %232 = vector.broadcast %c4_i32 : i32 to vector<1x16xi32>
    %233 = arith.cmpi eq, %150, %232 : vector<1x16xi32>
    %cst_70 = arith.constant 0.000000e+00 : f32
    %234 = vector.broadcast %cst_70 : f32 to vector<1x16xf32>
    %235 = arith.select %233, %231, %234 : vector<1x16xi1>, vector<1x16xf32>
    %236 = vector.shape_cast %235 : vector<1x16xf32> to vector<1x1x16xf32>
    %cst_71 = arith.constant dense<0.000000e+00> : vector<1xf32>
    %237 = vector.multi_reduction <add>, %236, %cst_71 [1, 2] : vector<1x1x16xf32> to vector<1xf32>
    %238 = vector.shape_cast %237 : vector<1xf32> to vector<1x1x1xf32>
    %239 = vector.extract %238[0, 0, 0] : f32 from vector<1x1x1xf32>
    %240 = vector.extract_strided_slice %149 {offsets = [4, 0], sizes = [1, 16], strides = [1, 1]} : vector<16x16xf32> to vector<1x16xf32>
    %cst_72 = arith.constant 5.000000e-01 : f32
    %241 = vector.broadcast %cst_72 : f32 to vector<1x16xf32>
    %242 = arith.cmpf ogt, %240, %241 : vector<1x16xf32>
    %c4_i32_73 = arith.constant 4 : i32
    %243 = vector.broadcast %c4_i32_73 : i32 to vector<1x16xi32>
    %244 = arith.cmpi sgt, %150, %243 : vector<1x16xi32>
    %245 = arith.andi %242, %244 : vector<1x16xi1>
    %cst_74 = arith.constant 0.000000e+00 : f32
    %246 = arith.cmpf ogt, %239, %cst_74 : f32
    %247 = vector.broadcast %246 : i1 to vector<1x16xi1>
    %248 = arith.andi %245, %247 : vector<1x16xi1>
    %cst_75 = arith.constant 0.000000e+00 : f32
    %249 = vector.broadcast %cst_75 : f32 to vector<1x16xf32>
    %250 = arith.select %248, %249, %231 : vector<1x16xi1>, vector<1x16xf32>
    %c5_i32 = arith.constant 5 : i32
    %251 = vector.broadcast %c5_i32 : i32 to vector<1x16xi32>
    %252 = arith.cmpi eq, %150, %251 : vector<1x16xi32>
    %cst_76 = arith.constant 0.000000e+00 : f32
    %253 = vector.broadcast %cst_76 : f32 to vector<1x16xf32>
    %254 = arith.select %252, %250, %253 : vector<1x16xi1>, vector<1x16xf32>
    %255 = vector.shape_cast %254 : vector<1x16xf32> to vector<1x1x16xf32>
    %cst_77 = arith.constant dense<0.000000e+00> : vector<1xf32>
    %256 = vector.multi_reduction <add>, %255, %cst_77 [1, 2] : vector<1x1x16xf32> to vector<1xf32>
    %257 = vector.shape_cast %256 : vector<1xf32> to vector<1x1x1xf32>
    %258 = vector.extract %257[0, 0, 0] : f32 from vector<1x1x1xf32>
    %259 = vector.extract_strided_slice %149 {offsets = [5, 0], sizes = [1, 16], strides = [1, 1]} : vector<16x16xf32> to vector<1x16xf32>
    %cst_78 = arith.constant 5.000000e-01 : f32
    %260 = vector.broadcast %cst_78 : f32 to vector<1x16xf32>
    %261 = arith.cmpf ogt, %259, %260 : vector<1x16xf32>
    %c5_i32_79 = arith.constant 5 : i32
    %262 = vector.broadcast %c5_i32_79 : i32 to vector<1x16xi32>
    %263 = arith.cmpi sgt, %150, %262 : vector<1x16xi32>
    %264 = arith.andi %261, %263 : vector<1x16xi1>
    %cst_80 = arith.constant 0.000000e+00 : f32
    %265 = arith.cmpf ogt, %258, %cst_80 : f32
    %266 = vector.broadcast %265 : i1 to vector<1x16xi1>
    %267 = arith.andi %264, %266 : vector<1x16xi1>
    %cst_81 = arith.constant 0.000000e+00 : f32
    %268 = vector.broadcast %cst_81 : f32 to vector<1x16xf32>
    %269 = arith.select %267, %268, %250 : vector<1x16xi1>, vector<1x16xf32>
    %c6_i32 = arith.constant 6 : i32
    %270 = vector.broadcast %c6_i32 : i32 to vector<1x16xi32>
    %271 = arith.cmpi eq, %150, %270 : vector<1x16xi32>
    %cst_82 = arith.constant 0.000000e+00 : f32
    %272 = vector.broadcast %cst_82 : f32 to vector<1x16xf32>
    %273 = arith.select %271, %269, %272 : vector<1x16xi1>, vector<1x16xf32>
    %274 = vector.shape_cast %273 : vector<1x16xf32> to vector<1x1x16xf32>
    %cst_83 = arith.constant dense<0.000000e+00> : vector<1xf32>
    %275 = vector.multi_reduction <add>, %274, %cst_83 [1, 2] : vector<1x1x16xf32> to vector<1xf32>
    %276 = vector.shape_cast %275 : vector<1xf32> to vector<1x1x1xf32>
    %277 = vector.extract %276[0, 0, 0] : f32 from vector<1x1x1xf32>
    %278 = vector.extract_strided_slice %149 {offsets = [6, 0], sizes = [1, 16], strides = [1, 1]} : vector<16x16xf32> to vector<1x16xf32>
    %cst_84 = arith.constant 5.000000e-01 : f32
    %279 = vector.broadcast %cst_84 : f32 to vector<1x16xf32>
    %280 = arith.cmpf ogt, %278, %279 : vector<1x16xf32>
    %c6_i32_85 = arith.constant 6 : i32
    %281 = vector.broadcast %c6_i32_85 : i32 to vector<1x16xi32>
    %282 = arith.cmpi sgt, %150, %281 : vector<1x16xi32>
    %283 = arith.andi %280, %282 : vector<1x16xi1>
    %cst_86 = arith.constant 0.000000e+00 : f32
    %284 = arith.cmpf ogt, %277, %cst_86 : f32
    %285 = vector.broadcast %284 : i1 to vector<1x16xi1>
    %286 = arith.andi %283, %285 : vector<1x16xi1>
    %cst_87 = arith.constant 0.000000e+00 : f32
    %287 = vector.broadcast %cst_87 : f32 to vector<1x16xf32>
    %288 = arith.select %286, %287, %269 : vector<1x16xi1>, vector<1x16xf32>
    %c7_i32 = arith.constant 7 : i32
    %289 = vector.broadcast %c7_i32 : i32 to vector<1x16xi32>
    %290 = arith.cmpi eq, %150, %289 : vector<1x16xi32>
    %cst_88 = arith.constant 0.000000e+00 : f32
    %291 = vector.broadcast %cst_88 : f32 to vector<1x16xf32>
    %292 = arith.select %290, %288, %291 : vector<1x16xi1>, vector<1x16xf32>
    %293 = vector.shape_cast %292 : vector<1x16xf32> to vector<1x1x16xf32>
    %cst_89 = arith.constant dense<0.000000e+00> : vector<1xf32>
    %294 = vector.multi_reduction <add>, %293, %cst_89 [1, 2] : vector<1x1x16xf32> to vector<1xf32>
    %295 = vector.shape_cast %294 : vector<1xf32> to vector<1x1x1xf32>
    %296 = vector.extract %295[0, 0, 0] : f32 from vector<1x1x1xf32>
    %297 = vector.extract_strided_slice %149 {offsets = [7, 0], sizes = [1, 16], strides = [1, 1]} : vector<16x16xf32> to vector<1x16xf32>
    %cst_90 = arith.constant 5.000000e-01 : f32
    %298 = vector.broadcast %cst_90 : f32 to vector<1x16xf32>
    %299 = arith.cmpf ogt, %297, %298 : vector<1x16xf32>
    %c7_i32_91 = arith.constant 7 : i32
    %300 = vector.broadcast %c7_i32_91 : i32 to vector<1x16xi32>
    %301 = arith.cmpi sgt, %150, %300 : vector<1x16xi32>
    %302 = arith.andi %299, %301 : vector<1x16xi1>
    %cst_92 = arith.constant 0.000000e+00 : f32
    %303 = arith.cmpf ogt, %296, %cst_92 : f32
    %304 = vector.broadcast %303 : i1 to vector<1x16xi1>
    %305 = arith.andi %302, %304 : vector<1x16xi1>
    %cst_93 = arith.constant 0.000000e+00 : f32
    %306 = vector.broadcast %cst_93 : f32 to vector<1x16xf32>
    %307 = arith.select %305, %306, %288 : vector<1x16xi1>, vector<1x16xf32>
    %c8_i32 = arith.constant 8 : i32
    %308 = vector.broadcast %c8_i32 : i32 to vector<1x16xi32>
    %309 = arith.cmpi eq, %150, %308 : vector<1x16xi32>
    %cst_94 = arith.constant 0.000000e+00 : f32
    %310 = vector.broadcast %cst_94 : f32 to vector<1x16xf32>
    %311 = arith.select %309, %307, %310 : vector<1x16xi1>, vector<1x16xf32>
    %312 = vector.shape_cast %311 : vector<1x16xf32> to vector<1x1x16xf32>
    %cst_95 = arith.constant dense<0.000000e+00> : vector<1xf32>
    %313 = vector.multi_reduction <add>, %312, %cst_95 [1, 2] : vector<1x1x16xf32> to vector<1xf32>
    %314 = vector.shape_cast %313 : vector<1xf32> to vector<1x1x1xf32>
    %315 = vector.extract %314[0, 0, 0] : f32 from vector<1x1x1xf32>
    %316 = vector.extract_strided_slice %149 {offsets = [8, 0], sizes = [1, 16], strides = [1, 1]} : vector<16x16xf32> to vector<1x16xf32>
    %cst_96 = arith.constant 5.000000e-01 : f32
    %317 = vector.broadcast %cst_96 : f32 to vector<1x16xf32>
    %318 = arith.cmpf ogt, %316, %317 : vector<1x16xf32>
    %c8_i32_97 = arith.constant 8 : i32
    %319 = vector.broadcast %c8_i32_97 : i32 to vector<1x16xi32>
    %320 = arith.cmpi sgt, %150, %319 : vector<1x16xi32>
    %321 = arith.andi %318, %320 : vector<1x16xi1>
    %cst_98 = arith.constant 0.000000e+00 : f32
    %322 = arith.cmpf ogt, %315, %cst_98 : f32
    %323 = vector.broadcast %322 : i1 to vector<1x16xi1>
    %324 = arith.andi %321, %323 : vector<1x16xi1>
    %cst_99 = arith.constant 0.000000e+00 : f32
    %325 = vector.broadcast %cst_99 : f32 to vector<1x16xf32>
    %326 = arith.select %324, %325, %307 : vector<1x16xi1>, vector<1x16xf32>
    %c9_i32 = arith.constant 9 : i32
    %327 = vector.broadcast %c9_i32 : i32 to vector<1x16xi32>
    %328 = arith.cmpi eq, %150, %327 : vector<1x16xi32>
    %cst_100 = arith.constant 0.000000e+00 : f32
    %329 = vector.broadcast %cst_100 : f32 to vector<1x16xf32>
    %330 = arith.select %328, %326, %329 : vector<1x16xi1>, vector<1x16xf32>
    %331 = vector.shape_cast %330 : vector<1x16xf32> to vector<1x1x16xf32>
    %cst_101 = arith.constant dense<0.000000e+00> : vector<1xf32>
    %332 = vector.multi_reduction <add>, %331, %cst_101 [1, 2] : vector<1x1x16xf32> to vector<1xf32>
    %333 = vector.shape_cast %332 : vector<1xf32> to vector<1x1x1xf32>
    %334 = vector.extract %333[0, 0, 0] : f32 from vector<1x1x1xf32>
    %335 = vector.extract_strided_slice %149 {offsets = [9, 0], sizes = [1, 16], strides = [1, 1]} : vector<16x16xf32> to vector<1x16xf32>
    %cst_102 = arith.constant 5.000000e-01 : f32
    %336 = vector.broadcast %cst_102 : f32 to vector<1x16xf32>
    %337 = arith.cmpf ogt, %335, %336 : vector<1x16xf32>
    %c9_i32_103 = arith.constant 9 : i32
    %338 = vector.broadcast %c9_i32_103 : i32 to vector<1x16xi32>
    %339 = arith.cmpi sgt, %150, %338 : vector<1x16xi32>
    %340 = arith.andi %337, %339 : vector<1x16xi1>
    %cst_104 = arith.constant 0.000000e+00 : f32
    %341 = arith.cmpf ogt, %334, %cst_104 : f32
    %342 = vector.broadcast %341 : i1 to vector<1x16xi1>
    %343 = arith.andi %340, %342 : vector<1x16xi1>
    %cst_105 = arith.constant 0.000000e+00 : f32
    %344 = vector.broadcast %cst_105 : f32 to vector<1x16xf32>
    %345 = arith.select %343, %344, %326 : vector<1x16xi1>, vector<1x16xf32>
    %c10_i32 = arith.constant 10 : i32
    %346 = vector.broadcast %c10_i32 : i32 to vector<1x16xi32>
    %347 = arith.cmpi eq, %150, %346 : vector<1x16xi32>
    %cst_106 = arith.constant 0.000000e+00 : f32
    %348 = vector.broadcast %cst_106 : f32 to vector<1x16xf32>
    %349 = arith.select %347, %345, %348 : vector<1x16xi1>, vector<1x16xf32>
    %350 = vector.shape_cast %349 : vector<1x16xf32> to vector<1x1x16xf32>
    %cst_107 = arith.constant dense<0.000000e+00> : vector<1xf32>
    %351 = vector.multi_reduction <add>, %350, %cst_107 [1, 2] : vector<1x1x16xf32> to vector<1xf32>
    %352 = vector.shape_cast %351 : vector<1xf32> to vector<1x1x1xf32>
    %353 = vector.extract %352[0, 0, 0] : f32 from vector<1x1x1xf32>
    %354 = vector.extract_strided_slice %149 {offsets = [10, 0], sizes = [1, 16], strides = [1, 1]} : vector<16x16xf32> to vector<1x16xf32>
    %cst_108 = arith.constant 5.000000e-01 : f32
    %355 = vector.broadcast %cst_108 : f32 to vector<1x16xf32>
    %356 = arith.cmpf ogt, %354, %355 : vector<1x16xf32>
    %c10_i32_109 = arith.constant 10 : i32
    %357 = vector.broadcast %c10_i32_109 : i32 to vector<1x16xi32>
    %358 = arith.cmpi sgt, %150, %357 : vector<1x16xi32>
    %359 = arith.andi %356, %358 : vector<1x16xi1>
    %cst_110 = arith.constant 0.000000e+00 : f32
    %360 = arith.cmpf ogt, %353, %cst_110 : f32
    %361 = vector.broadcast %360 : i1 to vector<1x16xi1>
    %362 = arith.andi %359, %361 : vector<1x16xi1>
    %cst_111 = arith.constant 0.000000e+00 : f32
    %363 = vector.broadcast %cst_111 : f32 to vector<1x16xf32>
    %364 = arith.select %362, %363, %345 : vector<1x16xi1>, vector<1x16xf32>
    %c11_i32 = arith.constant 11 : i32
    %365 = vector.broadcast %c11_i32 : i32 to vector<1x16xi32>
    %366 = arith.cmpi eq, %150, %365 : vector<1x16xi32>
    %cst_112 = arith.constant 0.000000e+00 : f32
    %367 = vector.broadcast %cst_112 : f32 to vector<1x16xf32>
    %368 = arith.select %366, %364, %367 : vector<1x16xi1>, vector<1x16xf32>
    %369 = vector.shape_cast %368 : vector<1x16xf32> to vector<1x1x16xf32>
    %cst_113 = arith.constant dense<0.000000e+00> : vector<1xf32>
    %370 = vector.multi_reduction <add>, %369, %cst_113 [1, 2] : vector<1x1x16xf32> to vector<1xf32>
    %371 = vector.shape_cast %370 : vector<1xf32> to vector<1x1x1xf32>
    %372 = vector.extract %371[0, 0, 0] : f32 from vector<1x1x1xf32>
    %373 = vector.extract_strided_slice %149 {offsets = [11, 0], sizes = [1, 16], strides = [1, 1]} : vector<16x16xf32> to vector<1x16xf32>
    %cst_114 = arith.constant 5.000000e-01 : f32
    %374 = vector.broadcast %cst_114 : f32 to vector<1x16xf32>
    %375 = arith.cmpf ogt, %373, %374 : vector<1x16xf32>
    %c11_i32_115 = arith.constant 11 : i32
    %376 = vector.broadcast %c11_i32_115 : i32 to vector<1x16xi32>
    %377 = arith.cmpi sgt, %150, %376 : vector<1x16xi32>
    %378 = arith.andi %375, %377 : vector<1x16xi1>
    %cst_116 = arith.constant 0.000000e+00 : f32
    %379 = arith.cmpf ogt, %372, %cst_116 : f32
    %380 = vector.broadcast %379 : i1 to vector<1x16xi1>
    %381 = arith.andi %378, %380 : vector<1x16xi1>
    %cst_117 = arith.constant 0.000000e+00 : f32
    %382 = vector.broadcast %cst_117 : f32 to vector<1x16xf32>
    %383 = arith.select %381, %382, %364 : vector<1x16xi1>, vector<1x16xf32>
    %c12_i32 = arith.constant 12 : i32
    %384 = vector.broadcast %c12_i32 : i32 to vector<1x16xi32>
    %385 = arith.cmpi eq, %150, %384 : vector<1x16xi32>
    %cst_118 = arith.constant 0.000000e+00 : f32
    %386 = vector.broadcast %cst_118 : f32 to vector<1x16xf32>
    %387 = arith.select %385, %383, %386 : vector<1x16xi1>, vector<1x16xf32>
    %388 = vector.shape_cast %387 : vector<1x16xf32> to vector<1x1x16xf32>
    %cst_119 = arith.constant dense<0.000000e+00> : vector<1xf32>
    %389 = vector.multi_reduction <add>, %388, %cst_119 [1, 2] : vector<1x1x16xf32> to vector<1xf32>
    %390 = vector.shape_cast %389 : vector<1xf32> to vector<1x1x1xf32>
    %391 = vector.extract %390[0, 0, 0] : f32 from vector<1x1x1xf32>
    %392 = vector.extract_strided_slice %149 {offsets = [12, 0], sizes = [1, 16], strides = [1, 1]} : vector<16x16xf32> to vector<1x16xf32>
    %cst_120 = arith.constant 5.000000e-01 : f32
    %393 = vector.broadcast %cst_120 : f32 to vector<1x16xf32>
    %394 = arith.cmpf ogt, %392, %393 : vector<1x16xf32>
    %c12_i32_121 = arith.constant 12 : i32
    %395 = vector.broadcast %c12_i32_121 : i32 to vector<1x16xi32>
    %396 = arith.cmpi sgt, %150, %395 : vector<1x16xi32>
    %397 = arith.andi %394, %396 : vector<1x16xi1>
    %cst_122 = arith.constant 0.000000e+00 : f32
    %398 = arith.cmpf ogt, %391, %cst_122 : f32
    %399 = vector.broadcast %398 : i1 to vector<1x16xi1>
    %400 = arith.andi %397, %399 : vector<1x16xi1>
    %cst_123 = arith.constant 0.000000e+00 : f32
    %401 = vector.broadcast %cst_123 : f32 to vector<1x16xf32>
    %402 = arith.select %400, %401, %383 : vector<1x16xi1>, vector<1x16xf32>
    %c13_i32 = arith.constant 13 : i32
    %403 = vector.broadcast %c13_i32 : i32 to vector<1x16xi32>
    %404 = arith.cmpi eq, %150, %403 : vector<1x16xi32>
    %cst_124 = arith.constant 0.000000e+00 : f32
    %405 = vector.broadcast %cst_124 : f32 to vector<1x16xf32>
    %406 = arith.select %404, %402, %405 : vector<1x16xi1>, vector<1x16xf32>
    %407 = vector.shape_cast %406 : vector<1x16xf32> to vector<1x1x16xf32>
    %cst_125 = arith.constant dense<0.000000e+00> : vector<1xf32>
    %408 = vector.multi_reduction <add>, %407, %cst_125 [1, 2] : vector<1x1x16xf32> to vector<1xf32>
    %409 = vector.shape_cast %408 : vector<1xf32> to vector<1x1x1xf32>
    %410 = vector.extract %409[0, 0, 0] : f32 from vector<1x1x1xf32>
    %411 = vector.extract_strided_slice %149 {offsets = [13, 0], sizes = [1, 16], strides = [1, 1]} : vector<16x16xf32> to vector<1x16xf32>
    %cst_126 = arith.constant 5.000000e-01 : f32
    %412 = vector.broadcast %cst_126 : f32 to vector<1x16xf32>
    %413 = arith.cmpf ogt, %411, %412 : vector<1x16xf32>
    %c13_i32_127 = arith.constant 13 : i32
    %414 = vector.broadcast %c13_i32_127 : i32 to vector<1x16xi32>
    %415 = arith.cmpi sgt, %150, %414 : vector<1x16xi32>
    %416 = arith.andi %413, %415 : vector<1x16xi1>
    %cst_128 = arith.constant 0.000000e+00 : f32
    %417 = arith.cmpf ogt, %410, %cst_128 : f32
    %418 = vector.broadcast %417 : i1 to vector<1x16xi1>
    %419 = arith.andi %416, %418 : vector<1x16xi1>
    %cst_129 = arith.constant 0.000000e+00 : f32
    %420 = vector.broadcast %cst_129 : f32 to vector<1x16xf32>
    %421 = arith.select %419, %420, %402 : vector<1x16xi1>, vector<1x16xf32>
    %c14_i32 = arith.constant 14 : i32
    %422 = vector.broadcast %c14_i32 : i32 to vector<1x16xi32>
    %423 = arith.cmpi eq, %150, %422 : vector<1x16xi32>
    %cst_130 = arith.constant 0.000000e+00 : f32
    %424 = vector.broadcast %cst_130 : f32 to vector<1x16xf32>
    %425 = arith.select %423, %421, %424 : vector<1x16xi1>, vector<1x16xf32>
    %426 = vector.shape_cast %425 : vector<1x16xf32> to vector<1x1x16xf32>
    %cst_131 = arith.constant dense<0.000000e+00> : vector<1xf32>
    %427 = vector.multi_reduction <add>, %426, %cst_131 [1, 2] : vector<1x1x16xf32> to vector<1xf32>
    %428 = vector.shape_cast %427 : vector<1xf32> to vector<1x1x1xf32>
    %429 = vector.extract %428[0, 0, 0] : f32 from vector<1x1x1xf32>
    %430 = vector.extract_strided_slice %149 {offsets = [14, 0], sizes = [1, 16], strides = [1, 1]} : vector<16x16xf32> to vector<1x16xf32>
    %cst_132 = arith.constant 5.000000e-01 : f32
    %431 = vector.broadcast %cst_132 : f32 to vector<1x16xf32>
    %432 = arith.cmpf ogt, %430, %431 : vector<1x16xf32>
    %c14_i32_133 = arith.constant 14 : i32
    %433 = vector.broadcast %c14_i32_133 : i32 to vector<1x16xi32>
    %434 = arith.cmpi sgt, %150, %433 : vector<1x16xi32>
    %435 = arith.andi %432, %434 : vector<1x16xi1>
    %cst_134 = arith.constant 0.000000e+00 : f32
    %436 = arith.cmpf ogt, %429, %cst_134 : f32
    %437 = vector.broadcast %436 : i1 to vector<1x16xi1>
    %438 = arith.andi %435, %437 : vector<1x16xi1>
    %cst_135 = arith.constant 0.000000e+00 : f32
    %439 = vector.broadcast %cst_135 : f32 to vector<1x16xf32>
    %440 = arith.select %438, %439, %421 : vector<1x16xi1>, vector<1x16xf32>
    %c15_i32 = arith.constant 15 : i32
    %441 = vector.broadcast %c15_i32 : i32 to vector<1x16xi32>
    %442 = arith.cmpi eq, %150, %441 : vector<1x16xi32>
    %cst_136 = arith.constant 0.000000e+00 : f32
    %443 = vector.broadcast %cst_136 : f32 to vector<1x16xf32>
    %444 = arith.select %442, %440, %443 : vector<1x16xi1>, vector<1x16xf32>
    %445 = vector.shape_cast %444 : vector<1x16xf32> to vector<1x1x16xf32>
    %cst_137 = arith.constant dense<0.000000e+00> : vector<1xf32>
    %446 = vector.multi_reduction <add>, %445, %cst_137 [1, 2] : vector<1x1x16xf32> to vector<1xf32>
    %447 = vector.shape_cast %446 : vector<1xf32> to vector<1x1x1xf32>
    %448 = vector.extract %447[0, 0, 0] : f32 from vector<1x1x1xf32>
    %449 = vector.extract_strided_slice %149 {offsets = [15, 0], sizes = [1, 16], strides = [1, 1]} : vector<16x16xf32> to vector<1x16xf32>
    %cst_138 = arith.constant 5.000000e-01 : f32
    %450 = vector.broadcast %cst_138 : f32 to vector<1x16xf32>
    %451 = arith.cmpf ogt, %449, %450 : vector<1x16xf32>
    %c15_i32_139 = arith.constant 15 : i32
    %452 = vector.broadcast %c15_i32_139 : i32 to vector<1x16xi32>
    %453 = arith.cmpi sgt, %150, %452 : vector<1x16xi32>
    %454 = arith.andi %451, %453 : vector<1x16xi1>
    %cst_140 = arith.constant 0.000000e+00 : f32
    %455 = arith.cmpf ogt, %448, %cst_140 : f32
    %456 = vector.broadcast %455 : i1 to vector<1x16xi1>
    %457 = arith.andi %454, %456 : vector<1x16xi1>
    %cst_141 = arith.constant 0.000000e+00 : f32
    %458 = vector.broadcast %cst_141 : f32 to vector<1x16xf32>
    %459 = arith.select %457, %458, %440 : vector<1x16xi1>, vector<1x16xf32>
    %c0_142 = arith.constant 0 : index
    %c0_143 = arith.constant 0 : index
    %460 = vector.load %arg7[%c0_142, %c0_143] : memref<1x16xf32, #tpu.memory_space<vmem>>, vector<1x16xf32>
    tpu.vector_store %arg7[%c0_142, %c0_143], %459 {strides = array<i32>} : memref<1x16xf32, #tpu.memory_space<vmem>>, vector<1x16xf32>,
    return
  }
  func.func @transform_0(%arg0: i32) -> (i32, i32) {
    %c0_i32 = arith.constant 0 : i32
    %c0_i32_0 = arith.constant 0 : i32
    %c0_i32_1 = arith.constant 0 : i32
    return %c0_i32, %c0_i32_0 : i32, i32
  }
  func.func @transform_1(%arg0: i32) -> (i32, i32) {
    %c0_i32 = arith.constant 0 : i32
    %c0_i32_0 = arith.constant 0 : i32
    %c0_i32_1 = arith.constant 0 : i32
    return %c0_i32, %c0_i32_0 : i32, i32
  }
  func.func @transform_2(%arg0: i32) -> (i32, i32) {
    %c0_i32 = arith.constant 0 : i32
    %c0_i32_0 = arith.constant 0 : i32
    %c0_i32_1 = arith.constant 0 : i32
    return %c0_i32, %c0_i32_0 : i32, i32
  }
  func.func @transform_3(%arg0: i32) -> (i32, i32) {
    %c0_i32 = arith.constant 0 : i32
    %c0_i32_0 = arith.constant 0 : i32
    %c0_i32_1 = arith.constant 0 : i32
    return %c0_i32, %c0_i32_0 : i32, i32
  }
  func.func @transform_4(%arg0: i32) -> (i32, i32) {
    %c0_i32 = arith.constant 0 : i32
    %c0_i32_0 = arith.constant 0 : i32
    %c0_i32_1 = arith.constant 0 : i32
    return %c0_i32, %c0_i32_0 : i32, i32
  }
  func.func @transform_5(%arg0: i32) -> (i32, i32) {
    %c0_i32 = arith.constant 0 : i32
    %c0_i32_0 = arith.constant 0 : i32
    %c0_i32_1 = arith.constant 0 : i32
    return %c0_i32, %c0_i32_0 : i32, i32
  }
  func.func @transform_6(%arg0: i32) -> (i32, i32) {
    %c0_i32 = arith.constant 0 : i32
    %c0_i32_0 = arith.constant 0 : i32
    %c0_i32_1 = arith.constant 0 : i32
    return %c0_i32, %c0_i32_0 : i32, i32
  }
}

</mosaic_0001>

<bundles_post_ra>
// kernel: faster_rcnn_forward.9
= control target key start
LH: loop header
LB: loop body
LE: loop exit
PB: predicated region body
PF: predicated region fallthrough
CT: control target
= control target key end

     0   :  { %s999_s12 = smov 0   ;;  %s1166_s0 = inlined_call_operand.vmem [shape: bf16[1024,27], index: 0, kind: input, shape index: {}]   ;;  %s1167_s1 = inlined_call_operand.vmem [shape: bf16[27,16], index: 1, kind: input, shape index: {}]   ;;  %s1168_s2 = inlined_call_operand.vmem [shape: f32[1,16], index: 2, kind: input, shape index: {}]   ;;  %s1169_s3 = inlined_call_operand.vmem [shape: bf16[1024,16], index: 3, kind: output, shape index: {}]  }
   0x1 LB: > { %s775_s13 = sadd.s32 4294967295, %s976_s12   ;;  %p779_p0 = scmp.ge.s32.totalorder %s976_s12, 1  ;;  %s976_s12 = sphi %s999_s12, %s13_s12  }
   0x2   : > { %p138_p1 = scmp.lt.s32.totalorder %s976_s12, 5 }
   0x4   : > { %p139_p2 = pnand %p779_p0, %p138_p1 }
   0x5   : > { %v952_v0 = vld [vmem:[%s1167_s1] sm:$0xff] (!%p139_p2)   ;;  %vm358_vm0 = vcmask (!%p139_p2), 1044480   ;;  %v953_v1 = vld [vmem:[%s1167_s1 + $0x8] sm:$0x3f] (!%p139_p2)   ;;  %vm359_vm1 = vcmask (!%p139_p2), 1045504   ;;  %s780_s18 = sshll.u32 (!%p139_p2), %s775_s13, 5 }
   0x6   : > { %142 = sbr.rel (%p139_p2) target bundleno = 265 (0x109), region = 32  ;;  %903 = vmatprep.subr.bf16.mxu0 (!%p139_p2), %v952_v0  ;;  %939 = vmatprep.subr.bf16.mxu1 (!%p139_p2), %v952_v0  ;;  %v978_v2 = vmov (!%p139_p2), 65535   ;;  %p163_p3 = scmp.lt.s32.totalorder (!%p139_p2), %s780_s18, 127  ;;  %vm309_vm2 = vcmask (!%p139_p2), 220160   ;;  %v1058_v22 = vld [vmem:[%s1168_s2] ss:$0 sm:$0xff] (!%p139_p2) }
   0x7   : > { %904 = vmatpush3.bf16.msra.mxu0 (!%p139_p2), %v952_v0  ;;  %941 = vmatpush3.bf16.msra.mxu1 (!%p139_p2), %v952_v0  ;;  %v360_v3 = vsel (!%p139_p2), %vm358_vm0, 4294967295, %v978_v2  ;;  %vm686_vm3 = vcmask (!%p139_p2), 125952  }
   0x8   : > { %v361_v4 = vsel (!%p139_p2), %vm359_vm1, %v360_v3, 0 }
   0x9   : > { %v363_v5 = vand.u32 (!%p139_p2), %v953_v1, %v361_v4 }
   0xb   : > { %905 = vmatprep.subr.bf16.mxu0 (!%p139_p2), %v363_v5  ;;  %940 = vmatprep.subr.bf16.mxu1 (!%p139_p2), %v363_v5 }
   0xc   : > { %906 = vmatpush3.bf16.msra.mxu0 (!%p139_p2), %v363_v5  ;;  %942 = vmatpush3.bf16.msra.mxu1 (!%p139_p2), %v363_v5 }
   0xd   : > { %s1171_s18 = smov (!%p163_p3, %s780_s18), 127 }
   0xe   : > { %s781_s19 = sshll.u32 %s1171_s18, 2 }
   0xf   : > { %s1021_s22 = scalar_lea.vmem %s1166_s0, %s781_s19  ;;  %s1070_s27 = scalar_lea.vmem %s1169_s3, %s781_s19 }
  0x10   : > { %v954_v6 = vld [vmem:[%s1021_s22] sm:$0xff]   ;;  %v956_v8 = vld [vmem:[%s1021_s22 + $0x8] sm:$0xff]   ;;  %v958_v10 = vld [vmem:[%s1021_s22 + $0x10] sm:$0xff]  }
  0x11   : > { %v955_v7 = vld [vmem:[%s1021_s22 + $0x40] sm:$0xff]   ;;  %907 = vmatprep.mubr.msk.bf16.mxu0 %vm309_vm2, %v954_v6  ;;  %v957_v9 = vld [vmem:[%s1021_s22 + $0x48] sm:$0xff]   ;;  %v959_v11 = vld [vmem:[%s1021_s22 + $0x50] sm:$0xff]  }
  0x12   : > { %923 = vmatprep.mubr.msk.bf16.mxu1 %vm309_vm2, %v955_v7  ;;  %908 = vmatmul.mubr.msk.bf16.vlgmr.msra.gmra.mrb[0].mxu0 %vm309_vm2, %v956_v8  ;;  %v960_v12 = vld [vmem:[%s1021_s22 + $0x18] sm:$0xff]   ;;  %v962_v14 = vld [vmem:[%s1021_s22 + $0x20] sm:$0xff]   ;;  %v964_v16 = vld [vmem:[%s1021_s22 + $0x28] sm:$0xff]  }
  0x13   : > { %924 = vmatmul.mubr.msk.bf16.vlgmr.msra.gmra.mrb[0].mxu1 %vm309_vm2, %v957_v9  ;;  %911 = vmatprep.mubr.msk.bf16.mxu0 %vm309_vm2, %v958_v10  ;;  %v961_v13 = vld [vmem:[%s1021_s22 + $0x58] sm:$0xff]   ;;  %v963_v15 = vld [vmem:[%s1021_s22 + $0x60] sm:$0xff]   ;;  %v965_v17 = vld [vmem:[%s1021_s22 + $0x68] sm:$0xff]  }
  0x14   : > { %927 = vmatprep.mubr.msk.bf16.mxu1 %vm309_vm2, %v959_v11  ;;  %v966_v18 = vld [vmem:[%s1021_s22 + $0x30] sm:$0xff]   ;;  %v968_v20 = vld [vmem:[%s1021_s22 + $0x38] sm:$0xff]  }
  0x15   : > { %v967_v19 = vld [vmem:[%s1021_s22 + $0x70] sm:$0xff]   ;;  %v969_v21 = vld [vmem:[%s1021_s22 + $0x78] sm:$0xff]  }
  0x1a   : > { %912 = vmatmul.mubr.msk.bf16.gmra.mrb[4].mxu0 %vm309_vm2, %v960_v12 }
  0x1b   : > { %928 = vmatmul.mubr.msk.bf16.gmra.mrb[4].mxu1 %vm309_vm2, %v961_v13  ;;  %915 = vmatprep.mubr.msk.bf16.mxu0 %vm309_vm2, %v962_v14 }
  0x1c   : > { %931 = vmatprep.mubr.msk.bf16.mxu1 %vm309_vm2, %v963_v15 }
  0x22   : > { %916 = vmatmul.mubr.msk.bf16.gmra.mrb[8].mxu0 %vm309_vm2, %v964_v16 }
  0x23   : > { %932 = vmatmul.mubr.msk.bf16.gmra.mrb[8].mxu1 %vm309_vm2, %v965_v17  ;;  %919 = vmatprep.mubr.msk.bf16.mxu0 %vm309_vm2, %v966_v18 }
  0x24   : > { %935 = vmatprep.mubr.msk.bf16.mxu1 %vm309_vm2, %v967_v19 }
  0x2a   : > { %920 = vmatmul.mubr.msk.bf16.gmra.mrb[12].mxu0 %vm309_vm2, %v968_v20 }
  0x2b   : > { %936 = vmatmul.mubr.msk.bf16.gmra.mrb[12].mxu1 %vm309_vm2, %v969_v21 }
  0xe5   : > { %v909_v23 = vpop.f32.mrb[0].mxu0 }
  0xe6   : > { %v408_v24 = vadd.f32 %v909_v23, %v1058_v22  ;;  %v925_v25 = vpop.f32.mrb[0].mxu1  ;;  %v399_v26 = vpop.f32.mrb[1].mxu0 }
  0xe7   : > { %v472_v27 = vadd.f32 %v925_v25, %v1058_v22  ;;  %v400_v28 = vadd.f32 %v1058_v22, %v399_v26  ;;  %v463_v29 = vpop.f32.mrb[1].mxu1  ;;  %v910_v30 = vpop.f32.mrb[2].mxu0 }
  0xe8   : > { %v528_v31 = vmax.f32 %v408_v24, 0.0  ;;  %v464_v32 = vadd.f32 %v1058_v22, %v463_v29  ;;  %v411_v33 = vadd.f32 %v910_v30, %v1058_v22  ;;  %v926_v34 = vpop.f32.mrb[2].mxu1  ;;  %v402_v35 = vpop.f32.mrb[3].mxu0 }
  0xe9   : > { %v544_v36 = vmax.f32 %v472_v27, 0.0  ;;  %v526_v37 = vmax.f32 %v400_v28, 0.0  ;;  %v475_v38 = vadd.f32 %v926_v34, %v1058_v22  ;;  %v403_v39 = vadd.f32 %v1058_v22, %v402_v35  ;;  %v466_v40 = vpop.f32.mrb[3].mxu1 }
  0xea   : > { %v855_v41 = vpack.c.bf16 %v528_v31, %v528_v31  ;;  %v542_v42 = vmax.f32 %v464_v32, 0.0  ;;  %v529_v43 = vmax.f32 %v411_v33, 0.0  ;;  %v467_v44 = vadd.f32 %v1058_v22, %v466_v40 }
  0xeb   : > { %v871_v45 = vpack.c.bf16 %v544_v36, %v544_v36  ;;  %v853_v46 = vpack.c.bf16 %v526_v37, %v526_v37  ;;  %v545_v47 = vmax.f32 %v475_v38, 0.0  ;;  %v527_v48 = vmax.f32 %v403_v39, 0.0 }
  0xec   : > { %689 = vst.msk [vmem:[%s1070_s27 + $0x8] sm:$0xf] %vm686_vm3, %v855_v41  ;;  %v869_v49 = vpack.c.bf16 %v542_v42, %v542_v42  ;;  %v856_v50 = vpack.c.bf16 %v529_v43, %v529_v43  ;;  %v543_v51 = vmax.f32 %v467_v44, 0.0 }
  0xed   : > { %705 = vst.msk [vmem:[%s1070_s27 + $0x48] sm:$0xf] %vm686_vm3, %v871_v45  ;;  %687 = vst.msk [vmem:[%s1070_s27] sm:$0xf] %vm686_vm3, %v853_v46  ;;  %v872_v52 = vpack.c.bf16 %v545_v47, %v545_v47  ;;  %v854_v53 = vpack.c.bf16 %v527_v48, %v527_v48  ;;  %v913_v54 = vpop.f32.mrb[4].mxu0 }
  0xee   : > { %703 = vst.msk [vmem:[%s1070_s27 + $0x40] sm:$0xf] %vm686_vm3, %v869_v49  ;;  %690 = vst.msk [vmem:[%s1070_s27 + $0xc] sm:$0xf] %vm686_vm3, %v856_v50  ;;  %v870_v55 = vpack.c.bf16 %v543_v51, %v543_v51  ;;  %v424_v56 = vadd.f32 %v913_v54, %v1058_v22  ;;  %v929_v57 = vpop.f32.mrb[4].mxu1  ;;  %v415_v58 = vpop.f32.mrb[5].mxu0 }
  0xef   : > { %706 = vst.msk [vmem:[%s1070_s27 + $0x4c] sm:$0xf] %vm686_vm3, %v872_v52  ;;  %688 = vst.msk [vmem:[%s1070_s27 + $0x4] sm:$0xf] %vm686_vm3, %v854_v53  ;;  %v488_v59 = vadd.f32 %v929_v57, %v1058_v22  ;;  %v416_v60 = vadd.f32 %v1058_v22, %v415_v58  ;;  %v479_v61 = vpop.f32.mrb[5].mxu1  ;;  %v914_v62 = vpop.f32.mrb[6].mxu0 }
  0xf0   : > { %704 = vst.msk [vmem:[%s1070_s27 + $0x44] sm:$0xf] %vm686_vm3, %v870_v55  ;;  %v532_v63 = vmax.f32 %v424_v56, 0.0  ;;  %v480_v0 = vadd.f32 %v1058_v22, %v479_v61  ;;  %v427_v1 = vadd.f32 %v914_v62, %v1058_v22  ;;  %v930_v2 = vpop.f32.mrb[6].mxu1  ;;  %v418_v3 = vpop.f32.mrb[7].mxu0 }
  0xf1   : > { %v548_v4 = vmax.f32 %v488_v59, 0.0  ;;  %v530_v5 = vmax.f32 %v416_v60, 0.0  ;;  %v491_v6 = vadd.f32 %v930_v2, %v1058_v22  ;;  %v419_v7 = vadd.f32 %v1058_v22, %v418_v3  ;;  %v482_v8 = vpop.f32.mrb[7].mxu1 }
  0xf2   : > { %v859_v9 = vpack.c.bf16 %v532_v63, %v532_v63  ;;  %v546_v10 = vmax.f32 %v480_v0, 0.0  ;;  %v533_v11 = vmax.f32 %v427_v1, 0.0  ;;  %v483_v12 = vadd.f32 %v1058_v22, %v482_v8 }
  0xf3   : > { %v875_v13 = vpack.c.bf16 %v548_v4, %v548_v4  ;;  %v857_v14 = vpack.c.bf16 %v530_v5, %v530_v5  ;;  %v549_v15 = vmax.f32 %v491_v6, 0.0  ;;  %v531_v16 = vmax.f32 %v419_v7, 0.0 }
  0xf4   : > { %693 = vst.msk [vmem:[%s1070_s27 + $0x18] sm:$0xf] %vm686_vm3, %v859_v9  ;;  %v873_v17 = vpack.c.bf16 %v546_v10, %v546_v10  ;;  %v860_v18 = vpack.c.bf16 %v533_v11, %v533_v11  ;;  %v547_v19 = vmax.f32 %v483_v12, 0.0 }
  0xf5   : > { %709 = vst.msk [vmem:[%s1070_s27 + $0x58] sm:$0xf] %vm686_vm3, %v875_v13  ;;  %691 = vst.msk [vmem:[%s1070_s27 + $0x10] sm:$0xf] %vm686_vm3, %v857_v14  ;;  %v876_v20 = vpack.c.bf16 %v549_v15, %v549_v15  ;;  %v858_v21 = vpack.c.bf16 %v531_v16, %v531_v16  ;;  %v917_v23 = vpop.f32.mrb[8].mxu0 }
  0xf6   : > { %707 = vst.msk [vmem:[%s1070_s27 + $0x50] sm:$0xf] %vm686_vm3, %v873_v17  ;;  %694 = vst.msk [vmem:[%s1070_s27 + $0x1c] sm:$0xf] %vm686_vm3, %v860_v18  ;;  %v874_v24 = vpack.c.bf16 %v547_v19, %v547_v19  ;;  %v440_v25 = vadd.f32 %v917_v23, %v1058_v22  ;;  %v933_v26 = vpop.f32.mrb[8].mxu1  ;;  %v431_v27 = vpop.f32.mrb[9].mxu0 }
  0xf7   : > { %710 = vst.msk [vmem:[%s1070_s27 + $0x5c] sm:$0xf] %vm686_vm3, %v876_v20  ;;  %692 = vst.msk [vmem:[%s1070_s27 + $0x14] sm:$0xf] %vm686_vm3, %v858_v21  ;;  %v504_v28 = vadd.f32 %v933_v26, %v1058_v22  ;;  %v432_v29 = vadd.f32 %v1058_v22, %v431_v27  ;;  %v495_v30 = vpop.f32.mrb[9].mxu1  ;;  %v918_v31 = vpop.f32.mrb[10].mxu0 }
  0xf8   : > { %708 = vst.msk [vmem:[%s1070_s27 + $0x54] sm:$0xf] %vm686_vm3, %v874_v24  ;;  %v536_v32 = vmax.f32 %v440_v25, 0.0  ;;  %v496_v33 = vadd.f32 %v1058_v22, %v495_v30  ;;  %v443_v34 = vadd.f32 %v918_v31, %v1058_v22  ;;  %v934_v35 = vpop.f32.mrb[10].mxu1  ;;  %v434_v36 = vpop.f32.mrb[11].mxu0 }
  0xf9   : > { %v552_v37 = vmax.f32 %v504_v28, 0.0  ;;  %v534_v38 = vmax.f32 %v432_v29, 0.0  ;;  %v507_v39 = vadd.f32 %v934_v35, %v1058_v22  ;;  %v435_v40 = vadd.f32 %v1058_v22, %v434_v36  ;;  %v498_v41 = vpop.f32.mrb[11].mxu1 }
  0xfa   : > { %v863_v42 = vpack.c.bf16 %v536_v32, %v536_v32  ;;  %v550_v43 = vmax.f32 %v496_v33, 0.0  ;;  %v537_v44 = vmax.f32 %v443_v34, 0.0  ;;  %v499_v45 = vadd.f32 %v1058_v22, %v498_v41 }
  0xfb   : > { %v879_v46 = vpack.c.bf16 %v552_v37, %v552_v37  ;;  %v861_v47 = vpack.c.bf16 %v534_v38, %v534_v38  ;;  %v553_v48 = vmax.f32 %v507_v39, 0.0  ;;  %v535_v49 = vmax.f32 %v435_v40, 0.0 }
  0xfc   : > { %697 = vst.msk [vmem:[%s1070_s27 + $0x28] sm:$0xf] %vm686_vm3, %v863_v42  ;;  %v877_v50 = vpack.c.bf16 %v550_v43, %v550_v43  ;;  %v864_v51 = vpack.c.bf16 %v537_v44, %v537_v44  ;;  %v551_v52 = vmax.f32 %v499_v45, 0.0 }
  0xfd   : > { %713 = vst.msk [vmem:[%s1070_s27 + $0x68] sm:$0xf] %vm686_vm3, %v879_v46  ;;  %695 = vst.msk [vmem:[%s1070_s27 + $0x20] sm:$0xf] %vm686_vm3, %v861_v47  ;;  %v880_v53 = vpack.c.bf16 %v553_v48, %v553_v48  ;;  %v862_v54 = vpack.c.bf16 %v535_v49, %v535_v49  ;;  %v921_v55 = vpop.f32.mrb[12].mxu0 }
  0xfe   : > { %711 = vst.msk [vmem:[%s1070_s27 + $0x60] sm:$0xf] %vm686_vm3, %v877_v50  ;;  %698 = vst.msk [vmem:[%s1070_s27 + $0x2c] sm:$0xf] %vm686_vm3, %v864_v51  ;;  %v878_v56 = vpack.c.bf16 %v551_v52, %v551_v52  ;;  %v456_v57 = vadd.f32 %v921_v55, %v1058_v22  ;;  %v937_v58 = vpop.f32.mrb[12].mxu1  ;;  %v447_v59 = vpop.f32.mrb[13].mxu0 }
  0xff   : > { %714 = vst.msk [vmem:[%s1070_s27 + $0x6c] sm:$0xf] %vm686_vm3, %v880_v53  ;;  %696 = vst.msk [vmem:[%s1070_s27 + $0x24] sm:$0xf] %vm686_vm3, %v862_v54  ;;  %v520_v60 = vadd.f32 %v937_v58, %v1058_v22  ;;  %v448_v61 = vadd.f32 %v1058_v22, %v447_v59  ;;  %v511_v62 = vpop.f32.mrb[13].mxu1  ;;  %v922_v63 = vpop.f32.mrb[14].mxu0 }
 0x100   : > { %712 = vst.msk [vmem:[%s1070_s27 + $0x64] sm:$0xf] %vm686_vm3, %v878_v56  ;;  %v540_v0 = vmax.f32 %v456_v57, 0.0  ;;  %v512_v1 = vadd.f32 %v1058_v22, %v511_v62  ;;  %v459_v2 = vadd.f32 %v922_v63, %v1058_v22  ;;  %v938_v3 = vpop.f32.mrb[14].mxu1  ;;  %v450_v4 = vpop.f32.mrb[15].mxu0 }
 0x101   : > { %v556_v5 = vmax.f32 %v520_v60, 0.0  ;;  %v538_v6 = vmax.f32 %v448_v61, 0.0  ;;  %v523_v7 = vadd.f32 %v938_v3, %v1058_v22  ;;  %v451_v8 = vadd.f32 %v1058_v22, %v450_v4  ;;  %v514_v9 = vpop.f32.mrb[15].mxu1 }
 0x102   : > { %v867_v10 = vpack.c.bf16 %v540_v0, %v540_v0  ;;  %v554_v11 = vmax.f32 %v512_v1, 0.0  ;;  %v541_v12 = vmax.f32 %v459_v2, 0.0  ;;  %v515_v13 = vadd.f32 %v1058_v22, %v514_v9 }
 0x103   : > { %v883_v14 = vpack.c.bf16 %v556_v5, %v556_v5  ;;  %v865_v15 = vpack.c.bf16 %v538_v6, %v538_v6  ;;  %v557_v16 = vmax.f32 %v523_v7, 0.0  ;;  %v539_v17 = vmax.f32 %v451_v8, 0.0 }
 0x104   : > { %701 = vst.msk [vmem:[%s1070_s27 + $0x38] sm:$0xf] %vm686_vm3, %v867_v10  ;;  %v881_v18 = vpack.c.bf16 %v554_v11, %v554_v11  ;;  %v868_v19 = vpack.c.bf16 %v541_v12, %v541_v12  ;;  %v555_v20 = vmax.f32 %v515_v13, 0.0 }
 0x105   : > { %717 = vst.msk [vmem:[%s1070_s27 + $0x78] sm:$0xf] %vm686_vm3, %v883_v14  ;;  %699 = vst.msk [vmem:[%s1070_s27 + $0x30] sm:$0xf] %vm686_vm3, %v865_v15  ;;  %v884_v21 = vpack.c.bf16 %v557_v16, %v557_v16  ;;  %v866_v23 = vpack.c.bf16 %v539_v17, %v539_v17 }
 0x106   : > { %715 = vst.msk [vmem:[%s1070_s27 + $0x70] sm:$0xf] %vm686_vm3, %v881_v18  ;;  %702 = vst.msk [vmem:[%s1070_s27 + $0x3c] sm:$0xf] %vm686_vm3, %v868_v19  ;;  %v882_v22 = vpack.c.bf16 %v555_v20, %v555_v20 }
 0x107   : > { %718 = vst.msk [vmem:[%s1070_s27 + $0x7c] sm:$0xf] %vm686_vm3, %v884_v21  ;;  %700 = vst.msk [vmem:[%s1070_s27 + $0x34] sm:$0xf] %vm686_vm3, %v866_v23 }
 0x108   : > { %716 = vst.msk [vmem:[%s1070_s27 + $0x74] sm:$0xf] %vm686_vm3, %v882_v22 }
 0x109 PF: > { %s13_s12 = sadd.s32 1, %s976_s12  }
 0x10a   : > { %p10_p4 = scmp.ge.s32.totalorder %s13_s12, 6  }
 0x10c   :  { %12 = sbr.rel (!%p10_p4) target bundleno = 1 (0x1), region = 62 }

// kernel: faster_rcnn_forward.10
= control target key start
LH: loop header
LB: loop body
LE: loop exit
PB: predicated region body
PF: predicated region fallthrough
CT: control target
= control target key end

     0   :  { %s788_s12 = smov 0   ;;  %s917_s0 = inlined_call_operand.vmem [shape: bf16[256,144], index: 0, kind: input, shape index: {}]   ;;  %s918_s1 = inlined_call_operand.vmem [shape: bf16[144,32], index: 1, kind: input, shape index: {}]   ;;  %s919_s2 = inlined_call_operand.vmem [shape: f32[1,32], index: 2, kind: input, shape index: {}]   ;;  %s920_s3 = inlined_call_operand.vmem [shape: bf16[256,32], index: 3, kind: output, shape index: {}]  }
   0x1 LB: > { %s620_s13 = sadd.s32 4294967295, %s765_s12   ;;  %p624_p0 = scmp.ge.s32.totalorder %s765_s12, 1  ;;  %s765_s12 = sphi %s788_s12, %s13_s12  }
   0x2   : > { %p139_p1 = scmp.lt.s32.totalorder %s765_s12, 3 }
   0x4   : > { %p140_p2 = pnand %p624_p0, %p139_p1 }
   0x5   : > { %v726_v0 = vld [vmem:[%s918_s1] sm:$0xff] (!%p140_p2)   ;;  %v767_v1 = vmov (!%p140_p2), 0   ;;  %s625_s16 = sshll.u32 (!%p140_p2), %s620_s13, 4  ;;  %v727_v2 = vld [vmem:[%s918_s1 + $0x8] sm:$0xff] (!%p140_p2)   ;;  %v728_v3 = vld [vmem:[%s918_s1 + $0x10] sm:$0xff] (!%p140_p2)   ;;  %vm345_vm0 = vcmask (!%p140_p2), 130048  }
   0x6   : > { %143 = sbr.rel (%p140_p2) target bundleno = 287 (0x11f), region = 32  ;;  %370 = vmatprep.subr.bf16.mxu0 (!%p140_p2), %v767_v1  ;;  %699 = vmatprep.subr.bf16.mxu1 (!%p140_p2), %v767_v1  ;;  %p165_p3 = scmp.lt.s32.totalorder (!%p140_p2), %s625_s16, 31  ;;  %v729_v4 = vld [vmem:[%s918_s1 + $0x18] sm:$0xff] (!%p140_p2)   ;;  %v730_v7 = vld [vmem:[%s918_s1 + $0x20] sm:$0xff] (!%p140_p2)   ;;  %v731_v8 = vld [vmem:[%s918_s1 + $0x28] sm:$0xff] (!%p140_p2)   ;;  %vm547_vm1 = vcmask (!%p140_p2), 257024  }
   0x7   : > { %371 = vmatpush1.bf16.msra.mxu0 (!%p140_p2), %v726_v0  ;;  %708 = vmatpush1.bf16.msra.mxu1 (!%p140_p2), %v726_v0  ;;  %v732_v9 = vld [vmem:[%s918_s1 + $0x30] sm:$0xff] (!%p140_p2)   ;;  %v733_v10 = vld [vmem:[%s918_s1 + $0x38] sm:$0xff] (!%p140_p2)   ;;  %v734_v11 = vld [vmem:[%s918_s1 + $0x40] sm:$0xff] (!%p140_p2)  }
   0x8   : > { %372 = vmatprep.subr.bf16.mxu0 (!%p140_p2), %v767_v1  ;;  %700 = vmatprep.subr.bf16.mxu1 (!%p140_p2), %v767_v1  ;;  %v858_v26 = vld [vmem:[%s919_s2] ss:$0 sm:$0xff] (!%p140_p2) }
   0xb   : > { %373 = vmatpush1.bf16.msra.mxu0 (!%p140_p2), %v727_v2  ;;  %709 = vmatpush1.bf16.msra.mxu1 (!%p140_p2), %v727_v2 }
   0xc   : > { %374 = vmatprep.subr.bf16.mxu0 (!%p140_p2), %v767_v1  ;;  %701 = vmatprep.subr.bf16.mxu1 (!%p140_p2), %v767_v1 }
   0xd   : > { %s922_s16 = smov (!%p165_p3, %s625_s16), 31 }
   0xe   : > { %s682_s21 = sshll.u32 %s922_s16, 3  ;;  %s629_s13 = sshll.u32 %s922_s16, 2 }
   0xf   : > { %s811_s24 = scalar_lea.vmem %s917_s0, %s682_s21  ;;  %375 = vmatpush1.bf16.msra.mxu0 %v728_v3  ;;  %710 = vmatpush1.bf16.msra.mxu1 %v728_v3  ;;  %s868_s16 = scalar_lea.vmem %s920_s3, %s629_s13 }
  0x10   : > { %v737_v5 = vld [vmem:[%s811_s24 + $0x4] ss:$8 sps:$4 sm:$0xff]   ;;  %376 = vmatprep.subr.bf16.mxu0 %v767_v1  ;;  %702 = vmatprep.subr.bf16.mxu1 %v767_v1  ;;  %v735_v12 = vld [vmem:[%s811_s24] ss:$8 sps:$4 sm:$0xff]   ;;  %v741_v14 = vld [vmem:[%s811_s24 + $0x14] ss:$8 sps:$4 sm:$0xff]  }
  0x11   : > { %v740_v6 = vld [vmem:[%s811_s24 + $0x44] ss:$8 sps:$4 sm:$0xff]   ;;  %656 = vmatprep.mubr.msk.bf16.mxu0 %vm345_vm0, %v737_v5  ;;  %v738_v13 = vld [vmem:[%s811_s24 + $0x40] ss:$8 sps:$4 sm:$0xff]   ;;  %v743_v15 = vld [vmem:[%s811_s24 + $0x54] ss:$8 sps:$4 sm:$0xff]  }
  0x12   : > { %660 = vmatprep.mubr.msk.bf16.mxu1 %vm345_vm0, %v740_v6  ;;  %v745_v16 = vld [vmem:[%s811_s24 + $0x10] ss:$8 sps:$4 sm:$0xff]   ;;  %v747_v18 = vld [vmem:[%s811_s24 + $0x24] ss:$8 sps:$4 sm:$0xff]   ;;  %v751_v20 = vld [vmem:[%s811_s24 + $0x20] ss:$8 sps:$4 sm:$0xff]  }
  0x13   : > { %377 = vmatpush1.bf16.msra.mxu0 %v729_v4  ;;  %711 = vmatpush1.bf16.msra.mxu1 %v729_v4  ;;  %v746_v17 = vld [vmem:[%s811_s24 + $0x50] ss:$8 sps:$4 sm:$0xff]   ;;  %v749_v19 = vld [vmem:[%s811_s24 + $0x64] ss:$8 sps:$4 sm:$0xff]   ;;  %v752_v21 = vld [vmem:[%s811_s24 + $0x60] ss:$8 sps:$4 sm:$0xff]  }
  0x14   : > { %378 = vmatprep.subr.bf16.mxu0 %v767_v1  ;;  %703 = vmatprep.subr.bf16.mxu1 %v767_v1  ;;  %v753_v22 = vld [vmem:[%s811_s24 + $0x34] ss:$8 sps:$4 sm:$0xff]   ;;  %v757_v24 = vld [vmem:[%s811_s24 + $0x30] ss:$8 sps:$4 sm:$0xff]  }
  0x15   : > { %v755_v23 = vld [vmem:[%s811_s24 + $0x74] ss:$8 sps:$4 sm:$0xff]   ;;  %v758_v25 = vld [vmem:[%s811_s24 + $0x70] ss:$8 sps:$4 sm:$0xff]  }
  0x17   : > { %379 = vmatpush1.bf16.msra.mxu0 %v730_v7  ;;  %712 = vmatpush1.bf16.msra.mxu1 %v730_v7 }
  0x18   : > { %380 = vmatprep.subr.bf16.mxu0 %v767_v1  ;;  %704 = vmatprep.subr.bf16.mxu1 %v767_v1 }
  0x1b   : > { %381 = vmatpush1.bf16.msra.mxu0 %v731_v8  ;;  %713 = vmatpush1.bf16.msra.mxu1 %v731_v8 }
  0x1c   : > { %382 = vmatprep.subr.bf16.mxu0 %v767_v1  ;;  %705 = vmatprep.subr.bf16.mxu1 %v767_v1 }
  0x1f   : > { %383 = vmatpush1.bf16.msra.mxu0 %v732_v9  ;;  %714 = vmatpush1.bf16.msra.mxu1 %v732_v9 }
  0x20   : > { %384 = vmatprep.subr.bf16.mxu0 %v767_v1  ;;  %706 = vmatprep.subr.bf16.mxu1 %v767_v1 }
  0x23   : > { %385 = vmatpush1.bf16.msra.mxu0 %v733_v10  ;;  %715 = vmatpush1.bf16.msra.mxu1 %v733_v10 }
  0x24   : > { %386 = vmatprep.subr.bf16.mxu0 %v767_v1  ;;  %707 = vmatprep.subr.bf16.mxu1 %v767_v1 }
  0x27   : > { %387 = vmatpush1.bf16.msra.mxu0 %v734_v11  ;;  %716 = vmatpush1.bf16.msra.mxu1 %v734_v11 }
  0x2a   : > { %403 = vmatmul.mubr.bf16.vlgmr.msra.gmra.mrb[0].mxu0 %v735_v12  ;;  %435 = vmatmul.mubr.bf16.vlgmr.msra.gmra.mrb[0].mxu1 %v738_v13 }
  0x2b   : > { %657 = vmatprep.mubr.msk.bf16.mxu0 %vm345_vm0, %v741_v14  ;;  %661 = vmatprep.mubr.msk.bf16.mxu1 %vm345_vm0, %v743_v15 }
  0x32   : > { %411 = vmatmul.mubr.bf16.gmra.mrb[4].mxu0 %v745_v16  ;;  %443 = vmatmul.mubr.bf16.gmra.mrb[4].mxu1 %v746_v17 }
  0x33   : > { %658 = vmatprep.mubr.msk.bf16.mxu0 %vm345_vm0, %v747_v18  ;;  %662 = vmatprep.mubr.msk.bf16.mxu1 %vm345_vm0, %v749_v19 }
  0x3a   : > { %419 = vmatmul.mubr.bf16.gmra.mrb[8].mxu0 %v751_v20  ;;  %451 = vmatmul.mubr.bf16.gmra.mrb[8].mxu1 %v752_v21 }
  0x3b   : > { %659 = vmatprep.mubr.msk.bf16.mxu0 %vm345_vm0, %v753_v22  ;;  %663 = vmatprep.mubr.msk.bf16.mxu1 %vm345_vm0, %v755_v23 }
  0x42   : > { %427 = vmatmul.mubr.bf16.gmra.mrb[12].mxu0 %v757_v24  ;;  %459 = vmatmul.mubr.bf16.gmra.mrb[12].mxu1 %v758_v25 }
  0xfd   : > { %v404_v27 = vpop.f32.mrb[0].mxu0  ;;  %v436_v28 = vpop.f32.mrb[0].mxu1 }
  0xfe   : > { %v405_v29 = vadd.f32 %v858_v26, %v404_v27  ;;  %v437_v30 = vadd.f32 %v858_v26, %v436_v28  ;;  %v406_v31 = vpop.f32.mrb[1].mxu0  ;;  %v438_v32 = vpop.f32.mrb[1].mxu1 }
  0xff   : > { %v407_v33 = vpop.f32.mrb[2].mxu0  ;;  %v439_v34 = vpop.f32.mrb[2].mxu1 }
 0x100   : > { %v467_v35 = vmax.f32 %v405_v29, 0.0  ;;  %v475_v36 = vmax.f32 %v437_v30, 0.0  ;;  %v408_v37 = vadd.f32 %v858_v26, %v407_v33  ;;  %v440_v38 = vadd.f32 %v858_v26, %v439_v34  ;;  %v409_v39 = vpop.f32.mrb[3].mxu0  ;;  %v441_v40 = vpop.f32.mrb[3].mxu1 }
 0x102   : > { %v683_v41 = vpack.c.bf16 %v467_v35, %v467_v35  ;;  %v691_v42 = vpack.c.bf16 %v475_v36, %v475_v36  ;;  %v468_v43 = vmax.f32 %v408_v37, 0.0  ;;  %v476_v44 = vmax.f32 %v440_v38, 0.0 }
 0x104   : > { %548 = vst.msk [vmem:[%s868_s16] sm:$0xf] %vm547_vm1, %v683_v41  ;;  %556 = vst.msk [vmem:[%s868_s16 + $0x20] sm:$0xf] %vm547_vm1, %v691_v42  ;;  %v684_v45 = vpack.c.bf16 %v468_v43, %v468_v43  ;;  %v692_v46 = vpack.c.bf16 %v476_v44, %v476_v44 }
 0x105   : > { %v412_v47 = vpop.f32.mrb[4].mxu0  ;;  %v444_v48 = vpop.f32.mrb[4].mxu1 }
 0x106   : > { %549 = vst.msk [vmem:[%s868_s16 + $0x4] sm:$0xf] %vm547_vm1, %v684_v45  ;;  %557 = vst.msk [vmem:[%s868_s16 + $0x24] sm:$0xf] %vm547_vm1, %v692_v46  ;;  %v413_v49 = vadd.f32 %v858_v26, %v412_v47  ;;  %v445_v50 = vadd.f32 %v858_v26, %v444_v48  ;;  %v414_v51 = vpop.f32.mrb[5].mxu0  ;;  %v446_v52 = vpop.f32.mrb[5].mxu1 }
 0x107   : > { %v415_v53 = vpop.f32.mrb[6].mxu0  ;;  %v447_v54 = vpop.f32.mrb[6].mxu1 }
 0x108   : > { %v469_v55 = vmax.f32 %v413_v49, 0.0  ;;  %v477_v56 = vmax.f32 %v445_v50, 0.0  ;;  %v416_v57 = vadd.f32 %v858_v26, %v415_v53  ;;  %v448_v58 = vadd.f32 %v858_v26, %v447_v54  ;;  %v417_v59 = vpop.f32.mrb[7].mxu0  ;;  %v449_v60 = vpop.f32.mrb[7].mxu1 }
 0x10a   : > { %v685_v61 = vpack.c.bf16 %v469_v55, %v469_v55  ;;  %v693_v62 = vpack.c.bf16 %v477_v56, %v477_v56  ;;  %v470_v63 = vmax.f32 %v416_v57, 0.0  ;;  %v478_v0 = vmax.f32 %v448_v58, 0.0 }
 0x10c   : > { %550 = vst.msk [vmem:[%s868_s16 + $0x8] sm:$0xf] %vm547_vm1, %v685_v61  ;;  %558 = vst.msk [vmem:[%s868_s16 + $0x28] sm:$0xf] %vm547_vm1, %v693_v62  ;;  %v686_v1 = vpack.c.bf16 %v470_v63, %v470_v63  ;;  %v694_v2 = vpack.c.bf16 %v478_v0, %v478_v0 }
 0x10d   : > { %v420_v3 = vpop.f32.mrb[8].mxu0  ;;  %v452_v4 = vpop.f32.mrb[8].mxu1 }
 0x10e   : > { %551 = vst.msk [vmem:[%s868_s16 + $0xc] sm:$0xf] %vm547_vm1, %v686_v1  ;;  %559 = vst.msk [vmem:[%s868_s16 + $0x2c] sm:$0xf] %vm547_vm1, %v694_v2  ;;  %v421_v5 = vadd.f32 %v858_v26, %v420_v3  ;;  %v453_v6 = vadd.f32 %v858_v26, %v452_v4  ;;  %v422_v7 = vpop.f32.mrb[9].mxu0  ;;  %v454_v8 = vpop.f32.mrb[9].mxu1 }
 0x10f   : > { %v423_v9 = vpop.f32.mrb[10].mxu0  ;;  %v455_v10 = vpop.f32.mrb[10].mxu1 }
 0x110   : > { %v471_v11 = vmax.f32 %v421_v5, 0.0  ;;  %v479_v12 = vmax.f32 %v453_v6, 0.0  ;;  %v424_v13 = vadd.f32 %v858_v26, %v423_v9  ;;  %v456_v14 = vadd.f32 %v858_v26, %v455_v10  ;;  %v425_v15 = vpop.f32.mrb[11].mxu0  ;;  %v457_v16 = vpop.f32.mrb[11].mxu1 }
 0x112   : > { %v687_v17 = vpack.c.bf16 %v471_v11, %v471_v11  ;;  %v695_v18 = vpack.c.bf16 %v479_v12, %v479_v12  ;;  %v472_v19 = vmax.f32 %v424_v13, 0.0  ;;  %v480_v20 = vmax.f32 %v456_v14, 0.0 }
 0x114   : > { %552 = vst.msk [vmem:[%s868_s16 + $0x10] sm:$0xf] %vm547_vm1, %v687_v17  ;;  %560 = vst.msk [vmem:[%s868_s16 + $0x30] sm:$0xf] %vm547_vm1, %v695_v18  ;;  %v688_v21 = vpack.c.bf16 %v472_v19, %v472_v19  ;;  %v696_v22 = vpack.c.bf16 %v480_v20, %v480_v20 }
 0x115   : > { %v428_v23 = vpop.f32.mrb[12].mxu0  ;;  %v460_v24 = vpop.f32.mrb[12].mxu1 }
 0x116   : > { %553 = vst.msk [vmem:[%s868_s16 + $0x14] sm:$0xf] %vm547_vm1, %v688_v21  ;;  %561 = vst.msk [vmem:[%s868_s16 + $0x34] sm:$0xf] %vm547_vm1, %v696_v22  ;;  %v429_v25 = vadd.f32 %v858_v26, %v428_v23  ;;  %v461_v27 = vadd.f32 %v858_v26, %v460_v24  ;;  %v430_v28 = vpop.f32.mrb[13].mxu0  ;;  %v462_v29 = vpop.f32.mrb[13].mxu1 }
 0x117   : > { %v431_v30 = vpop.f32.mrb[14].mxu0  ;;  %v463_v31 = vpop.f32.mrb[14].mxu1 }
 0x118   : > { %v473_v32 = vmax.f32 %v429_v25, 0.0  ;;  %v481_v33 = vmax.f32 %v461_v27, 0.0  ;;  %v432_v34 = vadd.f32 %v858_v26, %v431_v30  ;;  %v464_v35 = vadd.f32 %v858_v26, %v463_v31  ;;  %v433_v36 = vpop.f32.mrb[15].mxu0  ;;  %v465_v37 = vpop.f32.mrb[15].mxu1 }
 0x11a   : > { %v689_v38 = vpack.c.bf16 %v473_v32, %v473_v32  ;;  %v697_v39 = vpack.c.bf16 %v481_v33, %v481_v33  ;;  %v474_v40 = vmax.f32 %v432_v34, 0.0  ;;  %v482_v41 = vmax.f32 %v464_v35, 0.0 }
 0x11c   : > { %554 = vst.msk [vmem:[%s868_s16 + $0x18] sm:$0xf] %vm547_vm1, %v689_v38  ;;  %562 = vst.msk [vmem:[%s868_s16 + $0x38] sm:$0xf] %vm547_vm1, %v697_v39  ;;  %v690_v42 = vpack.c.bf16 %v474_v40, %v474_v40  ;;  %v698_v43 = vpack.c.bf16 %v482_v41, %v482_v41 }
 0x11e   : > { %555 = vst.msk [vmem:[%s868_s16 + $0x1c] sm:$0xf] %vm547_vm1, %v690_v42  ;;  %563 = vst.msk [vmem:[%s868_s16 + $0x3c] sm:$0xf] %vm547_vm1, %v698_v43 }
 0x11f PF: > { %s13_s12 = sadd.s32 1, %s765_s12  }
 0x120   : > { %p10_p4 = scmp.ge.s32.totalorder %s13_s12, 4  }
 0x122   :  { %12 = sbr.rel (!%p10_p4) target bundleno = 1 (0x1), region = 62 }

// kernel: faster_rcnn_forward.11
= control target key start
LH: loop header
LB: loop body
LE: loop exit
PB: predicated region body
PF: predicated region fallthrough
CT: control target
= control target key end

     0   :  { %vm242_vm0 = vcmask 261120   ;;  %vm425_vm1 = vcmask 257024   ;;  %s746_s1 = inlined_call_operand.vmem [shape: bf16[288,32], index: 1, kind: input, shape index: {}]   ;;  %s747_s0 = inlined_call_operand.vmem [shape: bf16[64,288], index: 0, kind: input, shape index: {}]   ;;  %s748_s2 = inlined_call_operand.vmem [shape: f32[1,32], index: 2, kind: input, shape index: {}]   ;;  %s749_s3 = inlined_call_operand.vmem [shape: bf16[64,32], index: 3, kind: output, shape index: {}]  }
   0x1   :  { %v563_v0 = vld [vmem:[%s746_s1 + $0x40] sm:$0xff]   ;;  %v565_v2 = vld [vmem:[%s746_s1 + $0x48] sm:$0xff]   ;;  %v567_v4 = vld [vmem:[%s746_s1 + $0x50] sm:$0xff]  }
   0x2   :  { %v564_v1 = vld [vmem:[%s746_s1] sm:$0xff]   ;;  %489 = vmatprep.subr.bf16.mxu0 %v563_v0  ;;  %547 = vmatprep.subr.bf16.mxu1 %v563_v0  ;;  %v566_v3 = vld [vmem:[%s746_s1 + $0x8] sm:$0xff]   ;;  %v568_v5 = vld [vmem:[%s746_s1 + $0x10] sm:$0xff]  }
   0x3   :  { %490 = vmatpush3.bf16.msra.mxu0 %v564_v1  ;;  %555 = vmatpush3.bf16.msra.mxu1 %v564_v1  ;;  %v569_v6 = vld [vmem:[%s746_s1 + $0x58] sm:$0xff]   ;;  %v571_v8 = vld [vmem:[%s746_s1 + $0x60] sm:$0xff]   ;;  %v573_v10 = vld [vmem:[%s746_s1 + $0x68] sm:$0xff]  }
   0x4   :  { %491 = vmatprep.subr.bf16.mxu0 %v565_v2  ;;  %548 = vmatprep.subr.bf16.mxu1 %v565_v2  ;;  %v570_v7 = vld [vmem:[%s746_s1 + $0x18] sm:$0xff]   ;;  %v572_v9 = vld [vmem:[%s746_s1 + $0x20] sm:$0xff]   ;;  %v574_v13 = vld [vmem:[%s746_s1 + $0x28] sm:$0xff]  }
   0x5   :  { %v581_v11 = vld [vmem:[%s747_s0 + $0x4] ss:$12 sps:$4 sm:$0xff]   ;;  %v584_v12 = vld [vmem:[%s747_s0 + $0x4c] ss:$12 sps:$4 sm:$0xff]   ;;  %v582_v20 = vld [vmem:[%s747_s0 + $0x48] ss:$12 sps:$4 sm:$0xff]  }
   0x6   :  { %v575_v14 = vld [vmem:[%s746_s1 + $0x70] sm:$0xff]   ;;  %287 = vmatprep.mubr.bf16.mxu0 %v581_v11  ;;  %311 = vmatprep.mubr.bf16.mxu1 %v584_v12  ;;  %v577_v16 = vld [vmem:[%s746_s1 + $0x78] sm:$0xff]   ;;  %v585_v18 = vld [vmem:[%s746_s1 + $0x80] sm:$0xff]  }
   0x7   :  { %492 = vmatpush3.bf16.msra.mxu0 %v566_v3  ;;  %556 = vmatpush3.bf16.msra.mxu1 %v566_v3  ;;  %v576_v15 = vld [vmem:[%s746_s1 + $0x30] sm:$0xff]   ;;  %v578_v17 = vld [vmem:[%s746_s1 + $0x38] sm:$0xff]   ;;  %v579_v19 = vld [vmem:[%s747_s0] ss:$12 sps:$4 sm:$0xff]  }
   0x8   :  { %493 = vmatprep.subr.bf16.mxu0 %v567_v4  ;;  %549 = vmatprep.subr.bf16.mxu1 %v567_v4  ;;  %v587_v21 = vld [vmem:[%s747_s0 + $0x1c] ss:$12 sps:$4 sm:$0xff]   ;;  %v590_v24 = vld [vmem:[%s747_s0 + $0x18] ss:$12 sps:$4 sm:$0xff]   ;;  %v591_v25 = vld [vmem:[%s747_s0 + $0x20] ss:$12 sps:$4 sm:$0xff]  }
   0x9   :  { %v586_v22 = vld [vmem:[%s746_s1 + $0x88] sm:$0xff]   ;;  %v592_v26 = vld [vmem:[%s747_s0 + $0x34] ss:$12 sps:$4 sm:$0xff]   ;;  %v594_v27 = vld [vmem:[%s747_s0 + $0x38] ss:$12 sps:$4 sm:$0xff]  }
   0xa   :  { %v589_v23 = vld [vmem:[%s747_s0 + $0x8] ss:$12 sps:$4 sm:$0xff]   ;;  %v595_v28 = vld [vmem:[%s747_s0 + $0x30] ss:$12 sps:$4 sm:$0xff]   ;;  %v438_v42 = vld [vmem:[%s748_s2] ss:$0 sm:$0xff] }
   0xb   :  { %494 = vmatpush3.bf16.msra.mxu0 %v568_v5  ;;  %557 = vmatpush3.bf16.msra.mxu1 %v568_v5  ;;  %v596_v29 = vld [vmem:[%s747_s0 + $0x50] ss:$12 sps:$4 sm:$0xff]  }
   0xc   :  { %495 = vmatprep.subr.bf16.mxu0 %v569_v6  ;;  %550 = vmatprep.subr.bf16.mxu1 %v569_v6 }
   0xf   :  { %496 = vmatpush3.bf16.msra.mxu0 %v570_v7  ;;  %558 = vmatpush3.bf16.msra.mxu1 %v570_v7 }
  0x10   :  { %497 = vmatprep.subr.bf16.mxu0 %v571_v8  ;;  %551 = vmatprep.subr.bf16.mxu1 %v571_v8 }
  0x13   :  { %498 = vmatpush3.bf16.msra.mxu0 %v572_v9  ;;  %559 = vmatpush3.bf16.msra.mxu1 %v572_v9 }
  0x14   :  { %499 = vmatprep.subr.bf16.mxu0 %v573_v10  ;;  %552 = vmatprep.subr.bf16.mxu1 %v573_v10 }
  0x17   :  { %500 = vmatpush3.bf16.msra.mxu0 %v574_v13  ;;  %560 = vmatpush3.bf16.msra.mxu1 %v574_v13 }
  0x18   :  { %501 = vmatprep.subr.bf16.mxu0 %v575_v14  ;;  %553 = vmatprep.subr.bf16.mxu1 %v575_v14 }
  0x1b   :  { %502 = vmatpush3.bf16.msra.mxu0 %v576_v15  ;;  %561 = vmatpush3.bf16.msra.mxu1 %v576_v15 }
  0x1c   :  { %503 = vmatprep.subr.bf16.mxu0 %v577_v16  ;;  %554 = vmatprep.subr.bf16.mxu1 %v577_v16 }
  0x1f   :  { %504 = vmatpush3.bf16.msra.mxu0 %v578_v17  ;;  %562 = vmatpush3.bf16.msra.mxu1 %v578_v17 }
  0x20   :  { %535 = vmatprep.subr.bf16.mxu1 %v585_v18 }
  0x22   :  { %288 = vmatmul.mubr.bf16.vlgmr.msra.gmra.mrb[0].mxu0 %v579_v19  ;;  %312 = vmatmul.mubr.bf16.vlgmr.msra.gmra.mrb[0].mxu1 %v582_v20 }
  0x23   :  { %536 = vmatpush3.bf16.msra.mxu1 %v585_v18  ;;  %295 = vmatprep.mubr.bf16.mxu0 %v587_v21 }
  0x24   :  { %537 = vmatprep.subr.bf16.mxu1 %v586_v22  ;;  %539 = vmatprep.mubr.msk.bf16.mxu1 %vm242_vm0, %v589_v23 }
  0x27   :  { %538 = vmatpush3.bf16.msra.mxu1 %v586_v22 }
  0x2a   :  { %296 = vmatmul.mubr.bf16.gmra.mrb[4].mxu0 %v590_v24  ;;  %540 = vmatmul.mubr.msk.bf16.vlgmr.msra.gmra.mrb[4].mxu1 %vm242_vm0, %v591_v25 }
  0x2b   :  { %303 = vmatprep.mubr.bf16.mxu0 %v592_v26  ;;  %543 = vmatprep.mubr.msk.bf16.mxu1 %vm242_vm0, %v594_v27 }
  0x32   :  { %304 = vmatmul.mubr.bf16.gmra.mrb[8].mxu0 %v595_v28  ;;  %544 = vmatmul.mubr.msk.bf16.gmra.mrb[8].mxu1 %vm242_vm0, %v596_v29 }
  0xf5   :  { %v505_v30 = vpop.f32.mrb[0].mxu0  ;;  %v523_v31 = vpop.f32.mrb[0].mxu1 }
  0xf6   :  { %v506_v32 = vpop.f32.mrb[1].mxu0  ;;  %v524_v33 = vpop.f32.mrb[1].mxu1 }
  0xf7   :  { %v507_v34 = vadd.f32 %v506_v32, %v505_v30  ;;  %v508_v35 = vpop.f32.mrb[2].mxu0  ;;  %v525_v36 = vadd.f32 %v524_v33, %v523_v31  ;;  %v526_v37 = vpop.f32.mrb[2].mxu1 }
  0xf8   :  { %v509_v38 = vpop.f32.mrb[3].mxu0  ;;  %v527_v39 = vpop.f32.mrb[3].mxu1 }
  0xf9   :  { %v510_v40 = vadd.f32 %v509_v38, %v508_v35  ;;  %v528_v41 = vadd.f32 %v527_v39, %v526_v37  ;;  %v290_v45 = vadd.f32 %v507_v34, %v438_v42  ;;  %v314_v63 = vadd.f32 %v525_v36, %v438_v42 }
  0xfb   :  { %v293_v52 = vadd.f32 %v510_v40, %v438_v42  ;;  %v317_v8 = vadd.f32 %v528_v41, %v438_v42 }
  0xfd   :  { %v511_v43 = vpop.f32.mrb[4].mxu0  ;;  %v541_v44 = vpop.f32.mrb[4].mxu1 }
  0xfe   :  { %v512_v46 = vpop.f32.mrb[5].mxu0  ;;  %v354_v47 = vpop.f32.mrb[5].mxu1 }
  0xff   :  { %v513_v48 = vadd.f32 %v512_v46, %v511_v43  ;;  %v355_v49 = vadd.f32 %v354_v47, %v290_v45  ;;  %v514_v50 = vpop.f32.mrb[6].mxu0  ;;  %v542_v51 = vpop.f32.mrb[6].mxu1 }
 0x100   :  { %v515_v53 = vpop.f32.mrb[7].mxu0  ;;  %v357_v54 = vpop.f32.mrb[7].mxu1 }
 0x101   :  { %v298_v55 = vadd.f32 %v513_v48, %v438_v42  ;;  %v385_v56 = vmax.f32 %v355_v49, 0.0  ;;  %v516_v57 = vadd.f32 %v515_v53, %v514_v50  ;;  %v358_v58 = vadd.f32 %v357_v54, %v293_v52 }
 0x103   :  { %v363_v59 = vadd.f32 %v541_v44, %v298_v55  ;;  %v481_v60 = vpack.c.bf16 %v385_v56, %v385_v56  ;;  %v301_v61 = vadd.f32 %v516_v57, %v438_v42  ;;  %v386_v62 = vmax.f32 %v358_v58, 0.0 }
 0x105   :  { %v387_v0 = vmax.f32 %v363_v59, 0.0  ;;  %426 = vst.msk [vmem:[%s749_s3] sm:$0xf] %vm425_vm1, %v481_v60  ;;  %v366_v1 = vadd.f32 %v542_v51, %v301_v61  ;;  %v482_v2 = vpack.c.bf16 %v386_v62, %v386_v62  ;;  %v517_v3 = vpop.f32.mrb[8].mxu0  ;;  %v545_v4 = vpop.f32.mrb[8].mxu1 }
 0x106   :  { %v379_v5 = vadd.f32 %v545_v4, %v314_v63  ;;  %v518_v6 = vpop.f32.mrb[9].mxu0  ;;  %v370_v7 = vpop.f32.mrb[9].mxu1 }
 0x107   :  { %v483_v9 = vpack.c.bf16 %v387_v0, %v387_v0  ;;  %v388_v10 = vmax.f32 %v366_v1, 0.0  ;;  %427 = vst.msk [vmem:[%s749_s3 + $0x4] sm:$0xf] %vm425_vm1, %v482_v2  ;;  %v519_v11 = vadd.f32 %v518_v6, %v517_v3  ;;  %v520_v12 = vpop.f32.mrb[10].mxu0  ;;  %v546_v13 = vpop.f32.mrb[10].mxu1 }
 0x108   :  { %v391_v14 = vmax.f32 %v379_v5, 0.0  ;;  %v382_v15 = vadd.f32 %v546_v13, %v317_v8  ;;  %v521_v16 = vpop.f32.mrb[11].mxu0  ;;  %v373_v17 = vpop.f32.mrb[11].mxu1 }
 0x109   :  { %428 = vst.msk [vmem:[%s749_s3 + $0x8] sm:$0xf] %vm425_vm1, %v483_v9  ;;  %v484_v18 = vpack.c.bf16 %v388_v10, %v388_v10  ;;  %v306_v19 = vadd.f32 %v519_v11, %v438_v42  ;;  %v522_v20 = vadd.f32 %v521_v16, %v520_v12 }
 0x10a   :  { %v487_v21 = vpack.c.bf16 %v391_v14, %v391_v14  ;;  %v392_v22 = vmax.f32 %v382_v15, 0.0 }
 0x10b   :  { %429 = vst.msk [vmem:[%s749_s3 + $0xc] sm:$0xf] %vm425_vm1, %v484_v18  ;;  %v371_v23 = vadd.f32 %v370_v7, %v306_v19  ;;  %v309_v24 = vadd.f32 %v522_v20, %v438_v42 }
 0x10c   :  { %432 = vst.msk [vmem:[%s749_s3 + $0x18] sm:$0xf] %vm425_vm1, %v487_v21  ;;  %v488_v25 = vpack.c.bf16 %v392_v22, %v392_v22 }
 0x10d   :  { %v389_v26 = vmax.f32 %v371_v23, 0.0  ;;  %v374_v27 = vadd.f32 %v373_v17, %v309_v24 }
 0x10e   :  { %433 = vst.msk [vmem:[%s749_s3 + $0x1c] sm:$0xf] %vm425_vm1, %v488_v25 }
 0x10f   :  { %v485_v28 = vpack.c.bf16 %v389_v26, %v389_v26  ;;  %v390_v29 = vmax.f32 %v374_v27, 0.0 }
 0x111   :  { %430 = vst.msk [vmem:[%s749_s3 + $0x10] sm:$0xf] %vm425_vm1, %v485_v28  ;;  %v486_v30 = vpack.c.bf16 %v390_v29, %v390_v29 }
 0x113   :  { %431 = vst.msk [vmem:[%s749_s3 + $0x14] sm:$0xf] %vm425_vm1, %v486_v30 }

// kernel: faster_rcnn_forward.13
= control target key start
LH: loop header
LB: loop body
LE: loop exit
PB: predicated region body
PF: predicated region fallthrough
CT: control target
= control target key end

     0   :  { %vm66_vm0 = vcmask 261120   ;;  %vm144_vm1 = vcmask 121856   ;;  %s269_s1 = inlined_call_operand.vmem [shape: bf16[32,15], index: 1, kind: input, shape index: {}]   ;;  %s270_s0 = inlined_call_operand.vmem [shape: bf16[64,32], index: 0, kind: input, shape index: {}]   ;;  %s271_s2 = inlined_call_operand.vmem [shape: f32[1,15], index: 2, kind: input, shape index: {}]   ;;  %s272_s3 = inlined_call_operand.vmem [shape: f32[64,15], index: 3, kind: output, shape index: {}]  }
   0x1   :  { %v190_v0 = vld [vmem:[%s269_s1] sm:$0xff]   ;;  %v191_v1 = vld [vmem:[%s269_s1 + $0x8] sm:$0xff]   ;;  %v193_v3 = vld [vmem:[%s270_s0 + $0x10] sm:$0xff]  }
   0x2   :  { %174 = vmatprep.subr.bf16.mxu0 %v190_v0  ;;  %186 = vmatprep.subr.bf16.mxu1 %v190_v0  ;;  %v192_v2 = vld [vmem:[%s270_s0] sm:$0xff]   ;;  %v194_v4 = vld [vmem:[%s270_s0 + $0x8] sm:$0xff]   ;;  %v195_v5 = vld [vmem:[%s270_s0 + $0x18] sm:$0xff]  }
   0x3   :  { %175 = vmatpush3.bf16.msra.mxu0 %v190_v0  ;;  %188 = vmatpush3.bf16.msra.mxu1 %v190_v0  ;;  %v157_v6 = vld [vmem:[%s271_s2] ss:$0 sm:$0xff] }
   0x4   :  { %176 = vmatprep.subr.bf16.mxu0 %v191_v1  ;;  %187 = vmatprep.subr.bf16.mxu1 %v191_v1 }
   0x5   :  { %178 = vmatprep.mubr.msk.bf16.mxu0 %vm66_vm0, %v192_v2  ;;  %182 = vmatprep.mubr.msk.bf16.mxu1 %vm66_vm0, %v193_v3 }
   0x7   :  { %177 = vmatpush3.bf16.msra.mxu0 %v191_v1  ;;  %189 = vmatpush3.bf16.msra.mxu1 %v191_v1 }
   0xa   :  { %179 = vmatmul.mubr.msk.bf16.vlgmr.msra.gmra.mrb[0].mxu0 %vm66_vm0, %v194_v4  ;;  %183 = vmatmul.mubr.msk.bf16.vlgmr.msra.gmra.mrb[0].mxu1 %vm66_vm0, %v195_v5 }
  0xdd   :  { %v180_v7 = vpop.f32.mrb[0].mxu0  ;;  %v184_v8 = vpop.f32.mrb[0].mxu1 }
  0xde   :  { %v122_v9 = vadd.f32 %v180_v7, %v157_v6  ;;  %v138_v10 = vadd.f32 %v184_v8, %v157_v6  ;;  %v113_v11 = vpop.f32.mrb[1].mxu0  ;;  %v129_v12 = vpop.f32.mrb[1].mxu1 }
  0xdf   :  { %v114_v13 = vadd.f32 %v157_v6, %v113_v11  ;;  %v130_v14 = vadd.f32 %v157_v6, %v129_v12  ;;  %v181_v15 = vpop.f32.mrb[2].mxu0  ;;  %v185_v16 = vpop.f32.mrb[2].mxu1 }
  0xe0   :  { %147 = vst.msk [vmem:[%s272_s3 + $0x10] sm:$0xff] %vm144_vm1, %v122_v9  ;;  %151 = vst.msk [vmem:[%s272_s3 + $0x30] sm:$0xff] %vm144_vm1, %v138_v10  ;;  %v125_v17 = vadd.f32 %v181_v15, %v157_v6  ;;  %v141_v18 = vadd.f32 %v185_v16, %v157_v6  ;;  %v116_v19 = vpop.f32.mrb[3].mxu0  ;;  %v132_v20 = vpop.f32.mrb[3].mxu1 }
  0xe1   :  { %145 = vst.msk [vmem:[%s272_s3] sm:$0xff] %vm144_vm1, %v114_v13  ;;  %149 = vst.msk [vmem:[%s272_s3 + $0x20] sm:$0xff] %vm144_vm1, %v130_v14  ;;  %v117_v21 = vadd.f32 %v157_v6, %v116_v19  ;;  %v133_v22 = vadd.f32 %v157_v6, %v132_v20 }
  0xe2   :  { %148 = vst.msk [vmem:[%s272_s3 + $0x18] sm:$0xff] %vm144_vm1, %v125_v17  ;;  %152 = vst.msk [vmem:[%s272_s3 + $0x38] sm:$0xff] %vm144_vm1, %v141_v18 }
  0xe3   :  { %146 = vst.msk [vmem:[%s272_s3 + $0x8] sm:$0xff] %vm144_vm1, %v117_v21  ;;  %150 = vst.msk [vmem:[%s272_s3 + $0x28] sm:$0xff] %vm144_vm1, %v133_v22 }

// kernel: faster_rcnn_forward.14
= control target key start
LH: loop header
LB: loop body
LE: loop exit
PB: predicated region body
PF: predicated region fallthrough
CT: control target
= control target key end

     0   :  { %vm44_vm0 = vcmask 1041408   ;;  %vm46_vm1 = vcmask 1042432   ;;  %vm48_vm2 = vcmask 125952   ;;  %s80_s0 = inlined_call_operand.vmem [shape: f32[4,16], index: 0, kind: input, shape index: {}]   ;;  %s81_s1 = inlined_call_operand.vmem [shape: f32[4,16], index: 1, kind: input, shape index: {}]   ;;  %s82_s2 = inlined_call_operand.vmem [shape: f32[4,16], index: 2, kind: output, shape index: {}]  }
   0x1   :  { %v11_v0 = vld [vmem:[%s80_s0] sm:$0xf] }
   0x2   :  { %v12_v1 = vld [vmem:[%s81_s1] sm:$0xf]  ;;  %v14_v2 = vrot.slane %v11_v0, 6 }
   0x3   :  { %v22_v3 = vmin.f32 %v12_v1, 4.1351666 }
   0x4   :  { %v16_v4 = vsub.f32 %v11_v0, %v14_v2 }
   0x5   :  { %v28_v5 = vmul.f32 1.442695, %v22_v3 }
   0x6   :  { %v17_v6 = vmul.f32 0.5, %v16_v4  ;;  %v24_v8 = vrot.slane %v16_v4, 2 }
   0x7   :  { %54 = vpow2.f32 %v28_v5 }
   0x8   :  { %v19_v7 = vrot.slane %v17_v6, 2  ;;  %v26_v10 = vmul.f32 %v24_v8, %v12_v1 }
   0xa   :  { %v21_v9 = vadd.f32 %v19_v7, %v11_v0 }
   0xc   :  { %v27_v13 = vadd.f32 %v26_v10, %v21_v9 }
  0x11   :  { %v55_v11 = vpop.eup %54 }
  0x12   :  { %v30_v12 = vmul.f32 %v55_v11, %v16_v4 }
  0x14   :  { %v31_v14 = vmul.f32 0.5, %v30_v12 }
  0x16   :  { %v33_v15 = vrot.slane %v31_v14, 2 }
  0x18   :  { %v35_v16 = vsub.f32 %v27_v13, %v33_v15  ;;  %v38_v17 = vadd.f32 %v33_v15, %v27_v13 }
  0x1a   :  { %v36_v18 = vmax.f32 %v35_v16, 0.0  ;;  %v39_v19 = vmax.f32 %v38_v17, 0.0 }
  0x1c   :  { %v37_v20 = vmin.f32 %v36_v18, 64.0  ;;  %v40_v21 = vmin.f32 %v39_v19, 64.0 }
  0x1e   :  { %v42_v22 = vrot.slane %v40_v21, 6 }
  0x20   :  { %v45_v23 = vsel %vm44_vm0, %v37_v20, %v42_v22 }
  0x21   :  { %v47_v24 = vsel %vm46_vm1, %v45_v23, %v42_v22 }
  0x22   :  { %49 = vst.msk [vmem:[%s82_s2] sm:$0xf] %vm48_vm2, %v47_v24 }

// kernel: neg.1
= control target key start
LH: loop header
LB: loop body
LE: loop exit
PB: predicated region body
PF: predicated region fallthrough
CT: control target
= control target key end

     0   :  { %s24_s0 = inlined_call_operand.vmem [shape: f32[16], index: 0, kind: input, shape index: {}]   ;;  %s25_s1 = inlined_call_operand.vmem [shape: f32[16], index: 1, kind: output, shape index: {}]  }
   0x1   :  { %v2_v0 = vld [vmem:[%s24_s0] sm:$0x1] }
   0x2   :  { %v5_v1 = vxor.u32 2147483648, %v2_v0 }
   0x4   :  { %7 = vst [vmem:[%s25_s1] sm:$0x1] %v5_v1 }

// kernel: faster_rcnn_forward.16
= control target key start
LH: loop header
LB: loop body
LE: loop exit
PB: predicated region body
PF: predicated region fallthrough
CT: control target
= control target key end

     0   :  { %v144_v0 = vmov 0.0   ;;  %vm145_vm0 = vmmov 0   ;;  %vm61_vm1 = vcmask 523264   ;;  %vm106_vm2 = vcmask 203776   ;;  %s190_s1 = inlined_call_operand.vmem [shape: bf16[64,25], index: 1, kind: input, shape index: {}]   ;;  %s191_s0 = inlined_call_operand.vmem [shape: bf16[16,64], index: 0, kind: input, shape index: {}]   ;;  %s192_s2 = inlined_call_operand.vmem [shape: f32[1,25], index: 2, kind: input, shape index: {}]   ;;  %s193_s3 = inlined_call_operand.vmem [shape: f32[16,25], index: 3, kind: output, shape index: {}]  }
   0x1   :  { %125 = vmatprep.subr.bf16.mxu0 %v144_v0  ;;  %v139_v1 = vld [vmem:[%s190_s1] sm:$0xff]   ;;  %133 = vmatprep.mubr.msk.bf16.mxu0 %vm145_vm0, %v144_v0  ;;  %v140_v2 = vld [vmem:[%s190_s1 + $0x8] sm:$0xff]   ;;  %v141_v3 = vld [vmem:[%s190_s1 + $0x10] sm:$0xff]  }
   0x2   :  { %126 = vmatpush3.bf16.msra.mxu0 %v139_v1  ;;  %v142_v4 = vld [vmem:[%s190_s1 + $0x18] sm:$0xff]   ;;  %v143_v5 = vld [vmem:[%s191_s0] sm:$0xff]  }
   0x3   :  { %127 = vmatprep.subr.bf16.mxu0 %v144_v0  ;;  %v113_v6 = vld [vmem:[%s192_s2] ss:$0 sm:$0xff] }
   0x6   :  { %128 = vmatpush3.bf16.msra.mxu0 %v140_v2 }
   0x7   :  { %129 = vmatprep.subr.bf16.mxu0 %v144_v0 }
   0xa   :  { %130 = vmatpush3.bf16.msra.mxu0 %v141_v3 }
   0xb   :  { %131 = vmatprep.subr.bf16.mxu0 %v144_v0 }
   0xe   :  { %132 = vmatpush3.bf16.msra.mxu0 %v142_v4 }
  0x11   :  { %134 = vmatmul.mubr.msk.bf16.vlgmr.msra.gmra.mrb[0].mxu0 %vm61_vm1, %v143_v5 }
  0xe4   :  { %v99_v7 = vpop.f32.mrb[0].mxu0 }
  0xe5   :  { %v100_v8 = vadd.f32 %v113_v6, %v99_v7  ;;  %v135_v9 = vpop.f32.mrb[1].mxu0 }
  0xe6   :  { %v102_v10 = vpop.f32.mrb[2].mxu0 }
  0xe7   :  { %107 = vst.msk [vmem:[%s193_s3] sm:$0xff] %vm106_vm2, %v100_v8  ;;  %v103_v11 = vadd.f32 %v113_v6, %v102_v10  ;;  %v136_v12 = vpop.f32.mrb[3].mxu0 }
  0xe9   :  { %108 = vst.msk [vmem:[%s193_s3 + $0x8] sm:$0xff] %vm106_vm2, %v103_v11 }

// kernel: faster_rcnn_forward.15
= control target key start
LH: loop header
LB: loop body
LE: loop exit
PB: predicated region body
PF: predicated region fallthrough
CT: control target
= control target key end

     0   :  { %vm394_vm0 = vcmask 519168   ;;  %s661_s1 = inlined_call_operand.vmem [shape: bf16[512,64], index: 1, kind: input, shape index: {}]   ;;  %s662_s0 = inlined_call_operand.vmem [shape: bf16[16,512], index: 0, kind: input, shape index: {}]   ;;  %s663_s2 = inlined_call_operand.vmem [shape: f32[1,64], index: 2, kind: input, shape index: {}]   ;;  %s664_s3 = inlined_call_operand.vmem [shape: bf16[16,64], index: 3, kind: output, shape index: {}]  }
   0x1   :  { %v486_v0 = vld [vmem:[%s661_s1 + $0x40] sm:$0xff]   ;;  %v490_v4 = vld [vmem:[%s661_s1 + $0x48] sm:$0xff]   ;;  %v494_v8 = vld [vmem:[%s661_s1 + $0x50] sm:$0xff]  }
   0x2   :  { %v487_v1 = vld [vmem:[%s661_s1 + $0xc0] sm:$0xff]   ;;  %442 = vmatprep.subr.bf16.mxu0 %v486_v0  ;;  %v491_v5 = vld [vmem:[%s661_s1 + $0xc8] sm:$0xff]   ;;  %v495_v9 = vld [vmem:[%s661_s1 + $0xd0] sm:$0xff]  }
   0x3   :  { %v488_v2 = vld [vmem:[%s661_s1] sm:$0xff]   ;;  %464 = vmatprep.subr.bf16.mxu1 %v487_v1  ;;  %v492_v6 = vld [vmem:[%s661_s1 + $0x8] sm:$0xff]   ;;  %v496_v10 = vld [vmem:[%s661_s1 + $0x10] sm:$0xff]  }
   0x4   :  { %v489_v3 = vld [vmem:[%s661_s1 + $0x80] sm:$0xff]   ;;  %443 = vmatpush3.bf16.msra.mxu0 %v488_v2  ;;  %v493_v7 = vld [vmem:[%s661_s1 + $0x88] sm:$0xff]   ;;  %v497_v11 = vld [vmem:[%s661_s1 + $0x90] sm:$0xff]  }
   0x5   :  { %465 = vmatpush3.bf16.msra.mxu1 %v489_v3  ;;  %444 = vmatprep.subr.bf16.mxu0 %v490_v4  ;;  %v498_v12 = vld [vmem:[%s661_s1 + $0x58] sm:$0xff]   ;;  %v502_v16 = vld [vmem:[%s661_s1 + $0x60] sm:$0xff]   ;;  %v506_v20 = vld [vmem:[%s661_s1 + $0x68] sm:$0xff]  }
   0x6   :  { %466 = vmatprep.subr.bf16.mxu1 %v491_v5  ;;  %v499_v13 = vld [vmem:[%s661_s1 + $0xd8] sm:$0xff]   ;;  %v503_v17 = vld [vmem:[%s661_s1 + $0xe0] sm:$0xff]   ;;  %v507_v21 = vld [vmem:[%s661_s1 + $0xe8] sm:$0xff]  }
   0x7   :  { %v500_v14 = vld [vmem:[%s661_s1 + $0x18] sm:$0xff]   ;;  %v504_v18 = vld [vmem:[%s661_s1 + $0x20] sm:$0xff]   ;;  %v508_v22 = vld [vmem:[%s661_s1 + $0x28] sm:$0xff]  }
   0x8   :  { %445 = vmatpush3.bf16.msra.mxu0 %v492_v6  ;;  %v501_v15 = vld [vmem:[%s661_s1 + $0x98] sm:$0xff]   ;;  %v505_v19 = vld [vmem:[%s661_s1 + $0xa0] sm:$0xff]   ;;  %v509_v23 = vld [vmem:[%s661_s1 + $0xa8] sm:$0xff]  }
   0x9   :  { %467 = vmatpush3.bf16.msra.mxu1 %v493_v7  ;;  %446 = vmatprep.subr.bf16.mxu0 %v494_v8  ;;  %v510_v24 = vld [vmem:[%s661_s1 + $0x70] sm:$0xff]   ;;  %v514_v28 = vld [vmem:[%s661_s1 + $0x78] sm:$0xff]   ;;  %v401_v38 = vld [vmem:[%s663_s2] ss:$0 sm:$0xff] }
   0xa   :  { %468 = vmatprep.subr.bf16.mxu1 %v495_v9  ;;  %v511_v25 = vld [vmem:[%s661_s1 + $0xf0] sm:$0xff]   ;;  %v515_v29 = vld [vmem:[%s661_s1 + $0xf8] sm:$0xff]  }
   0xb   :  { %v512_v26 = vld [vmem:[%s661_s1 + $0x30] sm:$0xff]   ;;  %v516_v30 = vld [vmem:[%s661_s1 + $0x38] sm:$0xff]  }
   0xc   :  { %447 = vmatpush3.bf16.msra.mxu0 %v496_v10  ;;  %v513_v27 = vld [vmem:[%s661_s1 + $0xb0] sm:$0xff]   ;;  %v517_v31 = vld [vmem:[%s661_s1 + $0xb8] sm:$0xff]  }
   0xd   :  { %469 = vmatpush3.bf16.msra.mxu1 %v497_v11  ;;  %448 = vmatprep.subr.bf16.mxu0 %v498_v12  ;;  %v518_v32 = vld [vmem:[%s662_s0] ss:$16 sps:$4 sm:$0xff]   ;;  %v520_v33 = vld [vmem:[%s662_s0 + $0x4] ss:$16 sps:$4 sm:$0xff]   ;;  %v521_v34 = vld [vmem:[%s662_s0 + $0x8] ss:$16 sps:$4 sm:$0xff]  }
   0xe   :  { %470 = vmatprep.subr.bf16.mxu1 %v499_v13  ;;  %v523_v35 = vld [vmem:[%s662_s0 + $0xc] ss:$16 sps:$4 sm:$0xff]   ;;  %334 = vmatprep.mubr.bf16.mxu0 %v520_v33 }
   0xf   :  { %375 = vmatprep.mubr.bf16.mxu1 %v523_v35 }
  0x10   :  { %449 = vmatpush3.bf16.msra.mxu0 %v500_v14 }
  0x11   :  { %471 = vmatpush3.bf16.msra.mxu1 %v501_v15  ;;  %450 = vmatprep.subr.bf16.mxu0 %v502_v16 }
  0x12   :  { %472 = vmatprep.subr.bf16.mxu1 %v503_v17 }
  0x14   :  { %451 = vmatpush3.bf16.msra.mxu0 %v504_v18 }
  0x15   :  { %473 = vmatpush3.bf16.msra.mxu1 %v505_v19  ;;  %452 = vmatprep.subr.bf16.mxu0 %v506_v20 }
  0x16   :  { %474 = vmatprep.subr.bf16.mxu1 %v507_v21 }
  0x18   :  { %453 = vmatpush3.bf16.msra.mxu0 %v508_v22 }
  0x19   :  { %475 = vmatpush3.bf16.msra.mxu1 %v509_v23  ;;  %454 = vmatprep.subr.bf16.mxu0 %v510_v24 }
  0x1a   :  { %476 = vmatprep.subr.bf16.mxu1 %v511_v25 }
  0x1c   :  { %455 = vmatpush3.bf16.msra.mxu0 %v512_v26 }
  0x1d   :  { %477 = vmatpush3.bf16.msra.mxu1 %v513_v27  ;;  %456 = vmatprep.subr.bf16.mxu0 %v514_v28 }
  0x1e   :  { %478 = vmatprep.subr.bf16.mxu1 %v515_v29 }
  0x20   :  { %457 = vmatpush3.bf16.msra.mxu0 %v516_v30 }
  0x21   :  { %479 = vmatpush3.bf16.msra.mxu1 %v517_v31 }
  0x23   :  { %335 = vmatmul.mubr.bf16.vlgmr.msra.gmra.mrb[0].mxu0 %v518_v32 }
  0x24   :  { %376 = vmatmul.mubr.bf16.vlgmr.msra.gmra.mrb[0].mxu1 %v521_v34 }
  0xf6   :  { %v458_v36 = vpop.f32.mrb[0].mxu0 }
  0xf7   :  { %v480_v37 = vpop.f32.mrb[0].mxu1  ;;  %v459_v39 = vpop.f32.mrb[1].mxu0 }
  0xf8   :  { %v460_v40 = vadd.f32 %v459_v39, %v458_v36  ;;  %v481_v41 = vpop.f32.mrb[1].mxu1  ;;  %v461_v42 = vpop.f32.mrb[2].mxu0 }
  0xf9   :  { %v482_v43 = vadd.f32 %v481_v41, %v480_v37  ;;  %v483_v44 = vpop.f32.mrb[2].mxu1  ;;  %v462_v45 = vpop.f32.mrb[3].mxu0 }
  0xfa   :  { %v337_v46 = vadd.f32 %v460_v40, %v401_v38  ;;  %v463_v47 = vadd.f32 %v462_v45, %v461_v42  ;;  %v484_v48 = vpop.f32.mrb[3].mxu1 }
  0xfb   :  { %v485_v49 = vadd.f32 %v484_v48, %v483_v44 }
  0xfc   :  { %v378_v50 = vadd.f32 %v482_v43, %v337_v46  ;;  %v340_v51 = vadd.f32 %v463_v47, %v401_v38 }
  0xfe   :  { %v384_v52 = vmax.f32 %v378_v50, 0.0  ;;  %v381_v53 = vadd.f32 %v485_v49, %v340_v51 }
 0x100   :  { %v440_v54 = vpack.c.bf16 %v384_v52, %v384_v52  ;;  %v385_v55 = vmax.f32 %v381_v53, 0.0 }
 0x102   :  { %395 = vst.msk [vmem:[%s664_s3] sm:$0xf] %vm394_vm0, %v440_v54  ;;  %v441_v56 = vpack.c.bf16 %v385_v55, %v385_v55 }
 0x104   :  { %396 = vst.msk [vmem:[%s664_s3 + $0x4] sm:$0xf] %vm394_vm0, %v441_v56 }

// kernel: faster_rcnn_forward.17
= control target key start
LH: loop header
LB: loop body
LE: loop exit
PB: predicated region body
PF: predicated region fallthrough
CT: control target
= control target key end

     0   :  { %s717_s23 = smov 2   ;;  %s718_s26 = smov 126   ;;  %v719_v10 = vmov 0   ;;  %v156_v11 = vlaneseq  ;;  %v720_v14 = vmov 0.0   ;;  %vm248_vm2 = vcmask 122880   ;;  %s918_s0 = inlined_call_operand.vmem [shape: f32[16,4], index: 0, kind: input, shape index: {}]   ;;  %s919_s2 = inlined_call_operand.vmem [shape: f32[16,4], index: 2, kind: input, shape index: {}]   ;;  %s920_s4 = inlined_call_operand.vmem [shape: f32[1,16], index: 4, kind: input, shape index: {}]   ;;  %s921_s3 = inlined_call_operand.vmem [shape: f32[4,16], index: 3, kind: input, shape index: {}]   ;;  %s922_s1 = inlined_call_operand.vmem [shape: f32[4,16], index: 1, kind: input, shape index: {}]   ;;  %s923_s5 = inlined_call_operand.vmem [shape: f32[4,16], index: 5, kind: output, shape index: {0}]   ;;  %s924_s6 = inlined_call_operand.vmem [shape: f32[1,16], index: 6, kind: output, shape index: {1}]  }
   0x1   :  { %v61_v0 = vld [vmem:[%s918_s0] sm:$0xff]  ;;  %702 = vset.pattern.permute.xlu0 %v719_v10  ;;  %vm55_vm3 = vcmask 1041408   ;;  %vm57_vm4 = vcmask 1042432   ;;  %vm59_vm5 = vcmask 125952   ;;  %v722_v56 = vmov 1  }
   0x2   :  { %67 = vrot.lane.b32.xlu0 %v61_v0, %s717_s23  ;;  %v63_v1 = vld [vmem:[%s919_s2] sm:$0xff]  ;;  %v773_v13 = vand.u32 127, %v156_v11 }
   0x3   :  { %v87_v2 = vmin.f32 %v63_v1, 4.1351666  ;;  %v242_v12 = vld [vmem:[%s920_s4] sm:$0x1] }
   0x4   :  { %vm243_vm0 = vcmp.gt.f32.partialorder %v242_v12, 0.05  ;;  %vm246_vm1 = vcmp.eq.s32.totalorder %v773_v13, 0  ;;  %v23_v18 = vld [vmem:[%s921_s3] sm:$0xf]  ;;  %vm260_vm6 = vcmp.gt.s32.totalorder %v773_v13, 0 }
   0x5   :  { %v101_v3 = vmul.f32 1.442695, %v87_v2  ;;  %v775_v15 = vsel %vm243_vm0, 1.0, %v720_v14  ;;  %v33_v19 = vmin.f32 %v23_v18, 4.1351666  ;;  %vm268_vm10 = vcmp.eq.s32.totalorder %v773_v13, 1 }
   0x6   :  { %v247_v16 = vsel %vm246_vm1, %v775_v15, 0.0  ;;  %v22_v21 = vld [vmem:[%s922_s1] sm:$0xf]  ;;  %s721_s1 = smov 127   ;;  %vm280_vm12 = vcmp.gt.s32.totalorder %v773_v13, 1  ;;  %vm291_vm15 = vcmp.eq.s32.totalorder %v773_v13, 2 }
   0x7   :  { %707 = vpow2.f32 %v101_v3  ;;  %v249_v17 = vsel %vm248_vm2, %v247_v16, 0.0  ;;  %v39_v20 = vmul.f32 1.442695, %v33_v19  ;;  %v25_v22 = vrot.slane %v22_v21, 6 }
   0x8   :  { %vm306_vm1 = vcmp.gt.s32.totalorder %v773_v13, 2 }
   0x9   :  { %709 = vpow2.f32 %v39_v20  ;;  %v27_v24 = vsub.f32 %v22_v21, %v25_v22 }
   0xb   :  { %v28_v28 = vmul.f32 0.5, %v27_v24  ;;  %v35_v30 = vrot.slane %v27_v24, 2 }
   0xd   :  { %v30_v32 = vrot.slane %v28_v28, 2  ;;  %v37_v35 = vmul.f32 %v35_v30, %v23_v18 }
   0xf   :  { %v32_v38 = vadd.f32 %v30_v32, %v22_v21 }
  0x11   :  { %v708_v4 = vpop.eup %707  ;;  %v38_v42 = vadd.f32 %v37_v35, %v32_v38 }
  0x13   :  { %v710_v29 = vpop.eup %709 }
  0x14   :  { %v41_v33 = vmul.f32 %v710_v29, %v27_v24 }
  0x16   :  { %v42_v39 = vmul.f32 0.5, %v41_v33 }
  0x18   :  { %v44_v43 = vrot.slane %v42_v39, 2 }
  0x1a   :  { %v46_v47 = vsub.f32 %v38_v42, %v44_v43  ;;  %v49_v48 = vadd.f32 %v44_v43, %v38_v42 }
  0x1c   :  { %v47_v49 = vmax.f32 %v46_v47, 0.0  ;;  %v50_v50 = vmax.f32 %v49_v48, 0.0 }
  0x1e   :  { %v51_v51 = vmin.f32 %v50_v50, 64.0  ;;  %v48_v52 = vmin.f32 %v47_v49, 64.0 }
  0x20   :  { %v53_v53 = vrot.slane %v51_v51, 6  ;;  %v141_v57 = vsub.f32 %v51_v51, %v48_v52 }
  0x22   :  { %v56_v54 = vsel %vm55_vm3, %v48_v52, %v53_v53  ;;  %v143_v19 = vrot.slane %v141_v57, 1 }
  0x23   :  { %v58_v55 = vsel %vm57_vm4, %v56_v54, %v53_v53 }
  0x24   :  { %60 = vst.msk [vmem:[%s923_s5] sm:$0xf] %vm59_vm5, %v58_v55  ;;  %vm317_vm5 = vcmp.eq.s32.totalorder %v773_v13, 3 }
  0x74   :  { %v68_v5 = vpop.permute.xlu0 %67 }
  0x75   :  { %v73_v6 = vsub.f32 %v61_v0, %v68_v5 }
  0x77   :  { %91 = vrot.lane.b32.xlu1 %v73_v6, %s718_s26  ;;  %v75_v7 = vmul.f32 0.5, %v73_v6  ;;  %v105_v8 = vmul.f32 %v708_v4, %v73_v6  ;;  %v157_v6 = vshrl.u32 %v156_v11, 7 }
  0x79   :  { %79 = vrot.lane.b32.xlu0 %v75_v7, %s718_s26  ;;  %v107_v9 = vmul.f32 0.5, %v105_v8  ;;  %v172_v7 = vsub.s32 1, %v157_v6  ;;  %v158_v8 = vsub.s32 0, %v157_v6 }
  0x7b   :  { %111 = vrot.lane.b32.xlu1 %v107_v9, %s718_s26  ;;  %v793_v9 = vrot.slane %v51_v51, %v172_v7  ;;  %v795_v14 = vrot.slane %v51_v51, %v158_v8  ;;  %v797_v16 = vrot.slane %v48_v52, %v172_v7 }
  0x9f   :  { %250 = vadd.xlane.f32.xlu1 %v249_v17  ;;  %v799_v17 = vrot.slane %v48_v52, %v158_v8 }
  0xe9   :  { %v92_v23 = vpop.permute.xlu1 %91 }
  0xea   :  { %v97_v26 = vmul.f32 %v92_v23, %v63_v1  ;;  %v145_v23 = vmul.f32 %v143_v19, %v141_v57 }
  0xeb   :  { %v80_v25 = vpop.permute.xlu0 %79 }
  0xec   :  { %v85_v27 = vadd.f32 %v80_v25, %v61_v0 }
  0xed   :  { %v112_v34 = vpop.permute.xlu1 %111 }
  0xee   :  { %v99_v31 = vadd.f32 %v97_v26, %v85_v27  ;;  %v805_v26 = vrot.slane %v145_v23, %v158_v8 }
  0xf0   :  { %v117_v36 = vsub.f32 %v99_v31, %v112_v34  ;;  %v123_v37 = vadd.f32 %v112_v34, %v99_v31 }
  0xf2   :  { %v119_v40 = vmax.f32 %v117_v36, 0.0  ;;  %v125_v41 = vmax.f32 %v123_v37, 0.0 }
  0xf4   :  { %v121_v44 = vmin.f32 %v119_v40, 64.0  ;;  %v127_v45 = vmin.f32 %v125_v41, 64.0 }
  0xf6   :  { %v129_v46 = vsub.f32 %v127_v45, %v121_v44 }
  0xf8   :  { %133 = vrot.lane.b32.xlu0 %v129_v46, %s721_s1 }
  0xfc   :  { %148 = vperm.xlu0 %702, %v121_v44  }
 0x100   :  { %178 = vperm.xlu0 %702, %v127_v45  }
 0x104   :  { %703 = vset.pattern.permute.xlu0 %v722_v56 }
 0x105   :  { %163 = vperm.xlu0 %703, %v121_v44  }
 0x109   :  { %193 = vperm.xlu0 %703, %v127_v45  }
 0x10d   :  { %704 = vset.pattern.permute.xlu0 %v719_v10 }
 0x12c   :  { %v251_v58 = vpop.xlane.xlu1 %250 }
 0x12d   :  { %v252_v59 = vrot.slane %v251_v58, 4 }
 0x12f   :  { %v253_v60 = vadd.f32 %v252_v59, %v251_v58 }
 0x131   :  { %v254_v61 = vrot.slane %v253_v60, 2 }
 0x133   :  { %v255_v62 = vadd.f32 %v254_v61, %v253_v60 }
 0x135   :  { %v256_v63 = vrot.slane %v255_v62, 1 }
 0x137   :  { %v257_v0 = vadd.f32 %v256_v63, %v255_v62 }
 0x139   :  { %664 = vpush %v257_v0 }
 0x16a   :  { %v134_v1 = vpop.permute.xlu0 %133  ;;  %s665_s5 = spop %664 }
 0x16b   :  { %v139_v2 = vmul.f32 %v134_v1, %v129_v46  ;;  %p262_p0 = scmp.gt.f32.partialorder %s665_s5, 0.0 }
 0x16d   :  { %218 = vperm.xlu0 %704, %v139_v2   ;;  %s263_s9 = scalar_select %p262_p0, 1, 0 }
 0x16f   :  { %v264_v35 = vstv %s263_s9 }
 0x170   :  { %vm265_vm9 = vcmp.eq.s32.totalorder %v264_v35, 1 }
 0x17b   :  { %v149_v3 = vpop.permute.xlu0 %148 }
 0x17c   :  { %v160_v11 = vmax.f32 %v149_v3, %v799_v17 }
 0x17f   :  { %v179_v4 = vpop.permute.xlu0 %178 }
 0x180   :  { %v190_v20 = vmin.f32 %v179_v4, %v795_v14 }
 0x182   :  { %v206_v24 = vsub.f32 %v190_v20, %v160_v11 }
 0x184   :  { %v164_v5 = vpop.permute.xlu0 %163  ;;  %v208_v27 = vmax.f32 %v206_v24, 0.0 }
 0x185   :  { %v174_v21 = vmax.f32 %v164_v5, %v797_v16 }
 0x188   :  { %v194_v12 = vpop.permute.xlu0 %193 }
 0x189   :  { %v204_v18 = vmin.f32 %v194_v12, %v793_v9 }
 0x18b   :  { %v210_v22 = vsub.f32 %v204_v18, %v174_v21 }
 0x18d   :  { %v212_v25 = vmax.f32 %v210_v22, 0.0 }
 0x18f   :  { %v214_v29 = vmul.f32 %v212_v25, %v208_v27 }
 0x1ec   :  { %v219_v28 = vpop.permute.xlu0 %218 }
 0x1ed   :  { %v230_v30 = vadd.f32 %v805_v26, %v219_v28 }
 0x1ef   :  { %v232_v31 = vsub.f32 %v230_v30, %v214_v29 }
 0x1f1   :  { %v234_v32 = vmax.f32 %v232_v31, 1e-06 }
 0x1f3   :  { %711 = vrcp.f32 %v234_v32 }
 0x1fd   :  { %v712_v33 = vpop.eup %711 }
 0x1fe   :  { %v808_v34 = vmul.f32 %v712_v33, %v214_v29 }
 0x200   :  { %vm259_vm7 = vcmp.gt.f32.partialorder %v808_v34, 0.5 }
 0x201   :  { %vm261_vm8 = vmand %vm259_vm7, %vm260_vm6 }
 0x202   :  { %vm266_vm11 = vmand %vm261_vm8, %vm265_vm9  ;;  %vm332_vm8 = vcmp.gt.s32.totalorder %v773_v13, 3 }
 0x203   :  { %v267_v36 = vsel %vm266_vm11, 0.0, %v775_v15  ;;  %vm281_vm13 = vmand %vm259_vm7, %vm280_vm12  ;;  %vm343_vm11 = vcmp.eq.s32.totalorder %v773_v13, 4 }
 0x204   :  { %v269_v37 = vsel %vm268_vm10, %v267_v36, 0.0  ;;  %v288_v47 = vrot.slane %v267_v36, 7  ;;  %vm307_vm3 = vmand %vm259_vm7, %vm306_vm1 }
 0x205   :  { %v270_v38 = vsel %vm248_vm2, %v269_v37, 0.0  ;;  %vm333_vm9 = vmand %vm259_vm7, %vm332_vm8 }
 0x206   :  { %271 = vadd.xlane.f32.xlu1 %v270_v38 }
 0x293   :  { %v272_v39 = vpop.xlane.xlu1 %271 }
 0x294   :  { %v273_v40 = vrot.slane %v272_v39, 4 }
 0x296   :  { %v274_v41 = vadd.f32 %v273_v40, %v272_v39 }
 0x298   :  { %v275_v42 = vrot.slane %v274_v41, 2 }
 0x29a   :  { %v276_v43 = vadd.f32 %v275_v42, %v274_v41 }
 0x29c   :  { %v277_v44 = vrot.slane %v276_v43, 1 }
 0x29e   :  { %v278_v45 = vadd.f32 %v277_v44, %v276_v43 }
 0x2a0   :  { %666 = vpush %v278_v45 }
 0x2d1   :  { %s667_s10 = spop %666 }
 0x2d2   :  { %p282_p1 = scmp.gt.f32.partialorder %s667_s10, 0.0 }
 0x2d4   :  { %s283_s11 = scalar_select %p282_p1, 1, 0 }
 0x2d6   :  { %v284_v46 = vstv %s283_s11 }
 0x2d7   :  { %vm285_vm14 = vcmp.eq.s32.totalorder %v284_v46, 1 }
 0x2d8   :  { %vm286_vm0 = vmand %vm281_vm13, %vm285_vm14  ;;  %vm358_vm13 = vcmp.gt.s32.totalorder %v773_v13, 4 }
 0x2d9   :  { %v290_v15 = vsel %vm286_vm0, 0.0, %v288_v47  ;;  %vm359_vm14 = vmand %vm259_vm7, %vm358_vm13  ;;  %vm369_vm0 = vcmp.eq.s32.totalorder %v773_v13, 5 }
 0x2da   :  { %v292_v48 = vsel %vm291_vm15, %v290_v15, 0.0  ;;  %v314_v60 = vrot.slane %v290_v15, 7 }
 0x2db   :  { %v294_v49 = vrot.slane %v292_v48, 1 }
 0x2dd   :  { %v296_v50 = vsel %vm248_vm2, %v294_v49, 0.0 }
 0x2de   :  { %297 = vadd.xlane.f32.xlu1 %v296_v50 }
 0x36b   :  { %v298_v51 = vpop.xlane.xlu1 %297 }
 0x36c   :  { %v299_v52 = vrot.slane %v298_v51, 4 }
 0x36e   :  { %v300_v53 = vadd.f32 %v299_v52, %v298_v51 }
 0x370   :  { %v301_v54 = vrot.slane %v300_v53, 2 }
 0x372   :  { %v302_v55 = vadd.f32 %v301_v54, %v300_v53 }
 0x374   :  { %v303_v57 = vrot.slane %v302_v55, 1 }
 0x376   :  { %v304_v58 = vadd.f32 %v303_v57, %v302_v55 }
 0x378   :  { %668 = vpush %v304_v58 }
 0x3a9   :  { %s669_s12 = spop %668 }
 0x3aa   :  { %p308_p2 = scmp.gt.f32.partialorder %s669_s12, 0.0 }
 0x3ac   :  { %s309_s13 = scalar_select %p308_p2, 1, 0 }
 0x3ae   :  { %v310_v59 = vstv %s309_s13 }
 0x3af   :  { %vm311_vm4 = vcmp.eq.s32.totalorder %v310_v59, 1 }
 0x3b0   :  { %vm312_vm6 = vmand %vm307_vm3, %vm311_vm4  ;;  %vm384_vm3 = vcmp.gt.s32.totalorder %v773_v13, 5 }
 0x3b1   :  { %v316_v61 = vsel %vm312_vm6, 0.0, %v314_v60  ;;  %vm385_vm4 = vmand %vm259_vm7, %vm384_vm3  ;;  %vm395_vm6 = vcmp.eq.s32.totalorder %v773_v13, 6  ;;  %vm463_vm3 = vcmp.gt.s32.totalorder %v773_v13, 8 }
 0x3b2   :  { %v318_v62 = vsel %vm317_vm5, %v316_v61, 0.0  ;;  %v340_v12 = vrot.slane %v316_v61, 7 }
 0x3b3   :  { %v320_v63 = vrot.slane %v318_v62, 2  ;;  %v62_v62 = vld [vmem:[%s918_s0 + $0x8] sm:$0xff] }
 0x3b5   :  { %v322_v0 = vsel %vm248_vm2, %v320_v63, 0.0  ;;  %v64_v63 = vld [vmem:[%s919_s2 + $0x8] sm:$0xff] }
 0x3b6   :  { %323 = vadd.xlane.f32.xlu0 %v322_v0  ;;  %v88_v0 = vmin.f32 %v64_v63, 4.1351666 }
 0x443   :  { %v324_v1 = vpop.xlane.xlu0 %323 }
 0x444   :  { %v325_v2 = vrot.slane %v324_v1, 4 }
 0x446   :  { %v326_v3 = vadd.f32 %v325_v2, %v324_v1  ;;  %v103_v1 = vmul.f32 1.442695, %v88_v0 }
 0x448   :  { %v327_v4 = vrot.slane %v326_v3, 2  ;;  %713 = vpow2.f32 %v103_v1 }
 0x44a   :  { %v328_v5 = vadd.f32 %v327_v4, %v326_v3 }
 0x44c   :  { %v329_v6 = vrot.slane %v328_v5, 1 }
 0x44e   :  { %v330_v7 = vadd.f32 %v329_v6, %v328_v5 }
 0x450   :  { %670 = vpush %v330_v7 }
 0x452   :  { %v714_v5 = vpop.eup %713 }
 0x481   :  { %s671_s14 = spop %670 }
 0x482   :  { %p334_p3 = scmp.gt.f32.partialorder %s671_s14, 0.0 }
 0x484   :  { %s335_s15 = scalar_select %p334_p3, 1, 0 }
 0x486   :  { %v336_v8 = vstv %s335_s15 }
 0x487   :  { %vm337_vm10 = vcmp.eq.s32.totalorder %v336_v8, 1 }
 0x488   :  { %vm338_vm12 = vmand %vm333_vm9, %vm337_vm10  ;;  %vm410_vm9 = vcmp.gt.s32.totalorder %v773_v13, 6 }
 0x489   :  { %v342_v18 = vsel %vm338_vm12, 0.0, %v340_v12  ;;  %vm411_vm10 = vmand %vm259_vm7, %vm410_vm9  ;;  %vm421_vm12 = vcmp.eq.s32.totalorder %v773_v13, 7 }
 0x48a   :  { %v344_v19 = vsel %vm343_vm11, %v342_v18, 0.0  ;;  %v366_v30 = vrot.slane %v342_v18, 7 }
 0x48b   :  { %v346_v20 = vrot.slane %v344_v19, 3 }
 0x48d   :  { %v348_v21 = vsel %vm248_vm2, %v346_v20, 0.0 }
 0x48e   :  { %349 = vadd.xlane.f32.xlu1 %v348_v21 }
 0x51b   :  { %v350_v11 = vpop.xlane.xlu1 %349 }
 0x51c   :  { %v351_v22 = vrot.slane %v350_v11, 4 }
 0x51e   :  { %v352_v23 = vadd.f32 %v351_v22, %v350_v11 }
 0x520   :  { %v353_v24 = vrot.slane %v352_v23, 2 }
 0x522   :  { %v354_v25 = vadd.f32 %v353_v24, %v352_v23 }
 0x524   :  { %v355_v27 = vrot.slane %v354_v25, 1 }
 0x526   :  { %v356_v28 = vadd.f32 %v355_v27, %v354_v25 }
 0x528   :  { %672 = vpush %v356_v28 }
 0x559   :  { %s673_s16 = spop %672 }
 0x55a   :  { %p360_p4 = scmp.gt.f32.partialorder %s673_s16, 0.0 }
 0x55c   :  { %s361_s17 = scalar_select %p360_p4, 1, 0 }
 0x55e   :  { %v362_v29 = vstv %s361_s17 }
 0x55f   :  { %vm363_vm15 = vcmp.eq.s32.totalorder %v362_v29, 1 }
 0x560   :  { %vm364_vm1 = vmand %vm359_vm14, %vm363_vm15  ;;  %vm436_vm14 = vcmp.gt.s32.totalorder %v773_v13, 7 }
 0x561   :  { %v368_v31 = vsel %vm364_vm1, 0.0, %v366_v30  ;;  %vm437_vm15 = vmand %vm259_vm7, %vm436_vm14  ;;  %vm447_vm7 = vcmp.eq.s32.totalorder %v773_v13, 8 }
 0x562   :  { %v370_v32 = vsel %vm369_vm0, %v368_v31, 0.0  ;;  %v392_v44 = vrot.slane %v368_v31, 7 }
 0x563   :  { %v372_v33 = vrot.slane %v370_v32, 4 }
 0x565   :  { %v374_v35 = vsel %vm248_vm2, %v372_v33, 0.0 }
 0x566   :  { %375 = vadd.xlane.f32.xlu1 %v374_v35 }
 0x5f3   :  { %v376_v36 = vpop.xlane.xlu1 %375 }
 0x5f4   :  { %v377_v37 = vrot.slane %v376_v36, 4 }
 0x5f6   :  { %v378_v38 = vadd.f32 %v377_v37, %v376_v36 }
 0x5f8   :  { %v379_v39 = vrot.slane %v378_v38, 2 }
 0x5fa   :  { %v380_v40 = vadd.f32 %v379_v39, %v378_v38 }
 0x5fc   :  { %v381_v41 = vrot.slane %v380_v40, 1 }
 0x5fe   :  { %v382_v42 = vadd.f32 %v381_v41, %v380_v40 }
 0x600   :  { %674 = vpush %v382_v42 }
 0x631   :  { %s675_s18 = spop %674 }
 0x632   :  { %p386_p5 = scmp.gt.f32.partialorder %s675_s18, 0.0 }
 0x634   :  { %s387_s19 = scalar_select %p386_p5, 1, 0 }
 0x636   :  { %v388_v43 = vstv %s387_s19 }
 0x637   :  { %vm389_vm5 = vcmp.eq.s32.totalorder %v388_v43, 1 }
 0x638   :  { %vm390_vm8 = vmand %vm385_vm4, %vm389_vm5 }
 0x639   :  { %v394_v45 = vsel %vm390_vm8, 0.0, %v392_v44  ;;  %vm474_vm8 = vcmp.eq.s32.totalorder %v773_v13, 9 }
 0x63a   :  { %v396_v46 = vsel %vm395_vm6, %v394_v45, 0.0  ;;  %v418_v57 = vrot.slane %v394_v45, 7 }
 0x63b   :  { %v398_v47 = vrot.slane %v396_v46, 5 }
 0x63d   :  { %v400_v15 = vsel %vm248_vm2, %v398_v47, 0.0 }
 0x63e   :  { %401 = vadd.xlane.f32.xlu1 %v400_v15 }
 0x6cb   :  { %v402_v48 = vpop.xlane.xlu1 %401 }
 0x6cc   :  { %v403_v49 = vrot.slane %v402_v48, 4 }
 0x6ce   :  { %v404_v50 = vadd.f32 %v403_v49, %v402_v48 }
 0x6d0   :  { %v405_v51 = vrot.slane %v404_v50, 2 }
 0x6d2   :  { %v406_v52 = vadd.f32 %v405_v51, %v404_v50 }
 0x6d4   :  { %v407_v53 = vrot.slane %v406_v52, 1 }
 0x6d6   :  { %v408_v54 = vadd.f32 %v407_v53, %v406_v52 }
 0x6d8   :  { %676 = vpush %v408_v54 }
 0x709   :  { %s677_s20 = spop %676 }
 0x70a   :  { %p412_p6 = scmp.gt.f32.partialorder %s677_s20, 0.0 }
 0x70c   :  { %s413_s21 = scalar_select %p412_p6, 1, 0 }
 0x70e   :  { %v414_v55 = vstv %s413_s21 }
 0x70f   :  { %vm415_vm11 = vcmp.eq.s32.totalorder %v414_v55, 1 }
 0x710   :  { %vm416_vm13 = vmand %vm411_vm10, %vm415_vm11  ;;  %vm486_vm10 = vcmp.gt.s32.totalorder %v773_v13, 9 }
 0x711   :  { %v420_v58 = vsel %vm416_vm13, 0.0, %v418_v57  ;;  %vm497_vm13 = vcmp.eq.s32.totalorder %v773_v13, 10 }
 0x712   :  { %v422_v59 = vsel %vm421_vm12, %v420_v58, 0.0  ;;  %v444_v23 = vrot.slane %v420_v58, 7 }
 0x713   :  { %v424_v60 = vrot.slane %v422_v59, 6 }
 0x715   :  { %v426_v61 = vsel %vm248_vm2, %v424_v60, 0.0 }
 0x716   :  { %427 = vadd.xlane.f32.xlu1 %v426_v61 }
 0x727   :  { %69 = vrot.lane.b32.xlu1 %v62_v62, %s717_s23 }
 0x7a3   :  { %v428_v2 = vpop.xlane.xlu1 %427 }
 0x7a4   :  { %v429_v3 = vrot.slane %v428_v2, 4 }
 0x7a6   :  { %v430_v4 = vadd.f32 %v429_v3, %v428_v2 }
 0x7a7   :  { %v70_v6 = vpop.permute.xlu1 %69 }
 0x7a8   :  { %v431_v7 = vrot.slane %v430_v4, 2  ;;  %v74_v8 = vsub.f32 %v62_v62, %v70_v6 }
 0x7aa   :  { %93 = vrot.lane.b32.xlu1 %v74_v8, %s718_s26  ;;  %v76_v12 = vmul.f32 0.5, %v74_v8  ;;  %v106_v18 = vmul.f32 %v714_v5, %v74_v8  ;;  %v432_v19 = vadd.f32 %v431_v7, %v430_v4 }
 0x7ac   :  { %81 = vrot.lane.b32.xlu0 %v76_v12, %s718_s26  ;;  %v108_v20 = vmul.f32 0.5, %v106_v18  ;;  %v433_v21 = vrot.slane %v432_v19, 1 }
 0x7ae   :  { %113 = vrot.lane.b32.xlu1 %v108_v20, %s718_s26  ;;  %v434_v11 = vadd.f32 %v433_v21, %v432_v19 }
 0x7b0   :  { %678 = vpush %v434_v11 }
 0x7e1   :  { %s679_s0 = spop %678 }
 0x7e2   :  { %p438_p7 = scmp.gt.f32.partialorder %s679_s0, 0.0 }
 0x7e4   :  { %s439_s2 = scalar_select %p438_p7, 1, 0 }
 0x7e6   :  { %v440_v22 = vstv %s439_s2 }
 0x7e7   :  { %vm441_vm0 = vcmp.eq.s32.totalorder %v440_v22, 1 }
 0x7e8   :  { %vm442_vm1 = vmand %vm437_vm15, %vm441_vm0  ;;  %vm512_vm15 = vcmp.gt.s32.totalorder %v773_v13, 10 }
 0x7e9   :  { %v860_v24 = vsel %vm442_vm1, 0.0, %v444_v23 }
 0x7ea   :  { %v448_v34 = vsel %vm447_vm7, %v860_v24, 0.0  ;;  %vm523_vm7 = vcmp.eq.s32.totalorder %v773_v13, 11 }
 0x7eb   :  { %v450_v40 = vrot.slane %v448_v34, 7 }
 0x7ed   :  { %v452_v41 = vsel %vm248_vm2, %v450_v40, 0.0 }
 0x81c   :  { %v94_v25 = vpop.permute.xlu1 %93 }
 0x81d   :  { %v98_v28 = vmul.f32 %v94_v25, %v64_v63 }
 0x81e   :  { %v82_v27 = vpop.permute.xlu0 %81 }
 0x81f   :  { %v86_v29 = vadd.f32 %v82_v27, %v62_v62 }
 0x820   :  { %v114_v31 = vpop.permute.xlu1 %113 }
 0x821   :  { %v100_v30 = vadd.f32 %v98_v28, %v86_v29 }
 0x823   :  { %v118_v32 = vsub.f32 %v100_v30, %v114_v31  ;;  %v124_v33 = vadd.f32 %v114_v31, %v100_v30 }
 0x825   :  { %v120_v35 = vmax.f32 %v118_v32, 0.0  ;;  %v126_v36 = vmax.f32 %v124_v33, 0.0 }
 0x827   :  { %v122_v37 = vmin.f32 %v120_v35, 64.0  ;;  %v128_v38 = vmin.f32 %v126_v36, 64.0 }
 0x829   :  { %153 = vperm.xlu0 %704, %v122_v37   ;;  %v130_v39 = vsub.f32 %v128_v38, %v122_v37 }
 0x82b   :  { %135 = vrot.lane.b32.xlu1 %v130_v39, %s721_s1 }
 0x82d   :  { %183 = vperm.xlu0 %704, %v128_v38  }
 0x831   :  { %705 = vset.pattern.permute.xlu0 %v722_v56 }
 0x832   :  { %167 = vperm.xlu0 %705, %v122_v37  }
 0x836   :  { %197 = vperm.xlu0 %705, %v128_v38  }
 0x83a   :  { %706 = vset.pattern.permute.xlu0 %v719_v10 }
 0x84f   :  { %453 = vadd.xlane.f32.xlu1 %v452_v41 }
 0x89d   :  { %v136_v42 = vpop.permute.xlu1 %135 }
 0x89e   :  { %v140_v43 = vmul.f32 %v136_v42, %v130_v39 }
 0x8a0   :  { %223 = vperm.xlu0 %706, %v140_v43  }
 0x8a8   :  { %v154_v10 = vpop.permute.xlu0 %153 }
 0x8a9   :  { %v161_v55 = vmax.f32 %v154_v10, %v799_v17 }
 0x8ac   :  { %v184_v49 = vpop.permute.xlu0 %183 }
 0x8ad   :  { %v191_v53 = vmin.f32 %v184_v49, %v795_v14 }
 0x8af   :  { %v207_v58 = vsub.f32 %v191_v53, %v161_v55 }
 0x8b1   :  { %v168_v50 = vpop.permute.xlu0 %167  ;;  %v209_v60 = vmax.f32 %v207_v58, 0.0 }
 0x8b2   :  { %v175_v54 = vmax.f32 %v168_v50, %v797_v16  ;;  %v471_v16 = vrot.slane %v860_v24, 7 }
 0x8b5   :  { %v198_v51 = vpop.permute.xlu0 %197 }
 0x8b6   :  { %v205_v52 = vmin.f32 %v198_v51, %v793_v9 }
 0x8b8   :  { %v211_v57 = vsub.f32 %v205_v52, %v175_v54 }
 0x8ba   :  { %v213_v59 = vmax.f32 %v211_v57, 0.0 }
 0x8bc   :  { %v215_v62 = vmul.f32 %v213_v59, %v209_v60 }
 0x8dc   :  { %v454_v44 = vpop.xlane.xlu1 %453 }
 0x8dd   :  { %v455_v45 = vrot.slane %v454_v44, 4 }
 0x8df   :  { %v456_v46 = vadd.f32 %v455_v45, %v454_v44 }
 0x8e1   :  { %v457_v47 = vrot.slane %v456_v46, 2 }
 0x8e3   :  { %v458_v56 = vadd.f32 %v457_v47, %v456_v46 }
 0x8e5   :  { %v459_v15 = vrot.slane %v458_v56, 1 }
 0x8e7   :  { %v460_v48 = vadd.f32 %v459_v15, %v458_v56 }
 0x8e9   :  { %680 = vpush %v460_v48 }
 0x91a   :  { %s681_s23 = spop %680 }
 0x91b   :  { %p465_p8 = scmp.gt.f32.partialorder %s681_s23, 0.0 }
 0x91d   :  { %s466_s26 = scalar_select %p465_p8, 1, 0 }
 0x91f   :  { %v224_v61 = vpop.permute.xlu0 %223  ;;  %v467_v14 = vstv %s466_s26 }
 0x920   :  { %v231_v63 = vadd.f32 %v805_v26, %v224_v61  ;;  %vm468_vm5 = vcmp.eq.s32.totalorder %v467_v14, 1 }
 0x922   :  { %v233_v0 = vsub.f32 %v231_v63, %v215_v62 }
 0x924   :  { %v235_v1 = vmax.f32 %v233_v0, 1e-06 }
 0x926   :  { %715 = vrcp.f32 %v235_v1 }
 0x930   :  { %v716_v9 = vpop.eup %715 }
 0x931   :  { %v873_v2 = vmul.f32 %v716_v9, %v215_v62 }
 0x933   :  { %vm462_vm4 = vcmp.gt.f32.partialorder %v873_v2, 0.5 }
 0x934   :  { %vm464_vm6 = vmand %vm462_vm4, %vm463_vm3 }
 0x935   :  { %vm469_vm9 = vmand %vm464_vm6, %vm468_vm5  ;;  %vm538_vm5 = vcmp.gt.s32.totalorder %v773_v13, 11 }
 0x936   :  { %v473_v17 = vsel %vm469_vm9, 0.0, %v471_v16  ;;  %vm487_vm11 = vmand %vm462_vm4, %vm486_vm10  ;;  %vm549_vm9 = vcmp.eq.s32.totalorder %v773_v13, 12 }
 0x937   :  { %v475_v26 = vsel %vm474_vm8, %v473_v17, 0.0  ;;  %v494_v20 = vrot.slane %v473_v17, 7  ;;  %vm513_vm0 = vmand %vm462_vm4, %vm512_vm15 }
 0x938   :  { %v476_v3 = vsel %vm248_vm2, %v475_v26, 0.0  ;;  %vm539_vm6 = vmand %vm462_vm4, %vm538_vm5 }
 0x939   :  { %477 = vadd.xlane.f32.xlu1 %v476_v3 }
 0x9c6   :  { %v478_v4 = vpop.xlane.xlu1 %477 }
 0x9c7   :  { %v479_v5 = vrot.slane %v478_v4, 4 }
 0x9c9   :  { %v480_v6 = vadd.f32 %v479_v5, %v478_v4 }
 0x9cb   :  { %v481_v7 = vrot.slane %v480_v6, 2 }
 0x9cd   :  { %v482_v8 = vadd.f32 %v481_v7, %v480_v6 }
 0x9cf   :  { %v483_v12 = vrot.slane %v482_v8, 1 }
 0x9d1   :  { %v484_v18 = vadd.f32 %v483_v12, %v482_v8 }
 0x9d3   :  { %682 = vpush %v484_v18 }
 0xa04   :  { %s683_s28 = spop %682 }
 0xa05   :  { %p488_p9 = scmp.gt.f32.partialorder %s683_s28, 0.0 }
 0xa07   :  { %s489_s29 = scalar_select %p488_p9, 1, 0 }
 0xa09   :  { %v490_v19 = vstv %s489_s29 }
 0xa0a   :  { %vm491_vm12 = vcmp.eq.s32.totalorder %v490_v19, 1 }
 0xa0b   :  { %vm492_vm14 = vmand %vm487_vm11, %vm491_vm12  ;;  %vm564_vm11 = vcmp.gt.s32.totalorder %v773_v13, 12 }
 0xa0c   :  { %v496_v21 = vsel %vm492_vm14, 0.0, %v494_v20  ;;  %vm565_vm12 = vmand %vm462_vm4, %vm564_vm11  ;;  %vm575_vm14 = vcmp.eq.s32.totalorder %v773_v13, 13 }
 0xa0d   :  { %v498_v11 = vsel %vm497_vm13, %v496_v21, 0.0  ;;  %v520_v33 = vrot.slane %v496_v21, 7 }
 0xa0e   :  { %v500_v22 = vrot.slane %v498_v11, 1 }
 0xa10   :  { %v502_v23 = vsel %vm248_vm2, %v500_v22, 0.0 }
 0xa11   :  { %503 = vadd.xlane.f32.xlu1 %v502_v23 }
 0xa9e   :  { %v504_v24 = vpop.xlane.xlu1 %503 }
 0xa9f   :  { %v505_v25 = vrot.slane %v504_v24, 4 }
 0xaa1   :  { %v506_v27 = vadd.f32 %v505_v25, %v504_v24 }
 0xaa3   :  { %v507_v28 = vrot.slane %v506_v27, 2 }
 0xaa5   :  { %v508_v29 = vadd.f32 %v507_v28, %v506_v27 }
 0xaa7   :  { %v509_v30 = vrot.slane %v508_v29, 1 }
 0xaa9   :  { %v510_v31 = vadd.f32 %v509_v30, %v508_v29 }
 0xaab   :  { %684 = vpush %v510_v31 }
 0xadc   :  { %s685_s30 = spop %684 }
 0xadd   :  { %p514_p10 = scmp.gt.f32.partialorder %s685_s30, 0.0 }
 0xadf   :  { %s515_s4 = scalar_select %p514_p10, 1, 0 }
 0xae1   :  { %v516_v32 = vstv %s515_s4 }
 0xae2   :  { %vm517_vm1 = vcmp.eq.s32.totalorder %v516_v32, 1 }
 0xae3   :  { %vm518_vm3 = vmand %vm513_vm0, %vm517_vm1  ;;  %vm590_vm0 = vcmp.gt.s32.totalorder %v773_v13, 13 }
 0xae4   :  { %v522_v35 = vsel %vm518_vm3, 0.0, %v520_v33  ;;  %vm591_vm1 = vmand %vm462_vm4, %vm590_vm0  ;;  %vm601_vm3 = vcmp.eq.s32.totalorder %v773_v13, 14 }
 0xae5   :  { %v524_v36 = vsel %vm523_vm7, %v522_v35, 0.0  ;;  %v546_v46 = vrot.slane %v522_v35, 7 }
 0xae6   :  { %v526_v37 = vrot.slane %v524_v36, 2 }
 0xae8   :  { %v528_v38 = vsel %vm248_vm2, %v526_v37, 0.0 }
 0xae9   :  { %529 = vadd.xlane.f32.xlu0 %v528_v38 }
 0xb76   :  { %v530_v39 = vpop.xlane.xlu0 %529 }
 0xb77   :  { %v531_v34 = vrot.slane %v530_v39, 4 }
 0xb79   :  { %v532_v40 = vadd.f32 %v531_v34, %v530_v39 }
 0xb7b   :  { %v533_v41 = vrot.slane %v532_v40, 2 }
 0xb7d   :  { %v534_v42 = vadd.f32 %v533_v41, %v532_v40 }
 0xb7f   :  { %v535_v43 = vrot.slane %v534_v42, 1 }
 0xb81   :  { %v536_v44 = vadd.f32 %v535_v43, %v534_v42 }
 0xb83   :  { %686 = vpush %v536_v44 }
 0xbb4   :  { %s687_s7 = spop %686 }
 0xbb5   :  { %p540_p11 = scmp.gt.f32.partialorder %s687_s7, 0.0 }
 0xbb7   :  { %s541_s1 = scalar_select %p540_p11, 1, 0 }
 0xbb9   :  { %v542_v45 = vstv %s541_s1 }
 0xbba   :  { %vm543_vm8 = vcmp.eq.s32.totalorder %v542_v45, 1 }
 0xbbb   :  { %vm544_vm10 = vmand %vm539_vm6, %vm543_vm8  ;;  %vm616_vm6 = vcmp.gt.s32.totalorder %v773_v13, 14 }
 0xbbc   :  { %v548_v47 = vsel %vm544_vm10, 0.0, %v546_v46  ;;  %vm617_vm8 = vmand %vm462_vm4, %vm616_vm6  ;;  %vm627_vm10 = vcmp.eq.s32.totalorder %v773_v13, 15 }
 0xbbd   :  { %v550_v56 = vsel %vm549_vm9, %v548_v47, 0.0  ;;  %v572_v57 = vrot.slane %v548_v47, 7 }
 0xbbe   :  { %v552_v15 = vrot.slane %v550_v56, 3 }
 0xbc0   :  { %v554_v48 = vsel %vm248_vm2, %v552_v15, 0.0 }
 0xbc1   :  { %555 = vadd.xlane.f32.xlu1 %v554_v48 }
 0xc4e   :  { %v556_v10 = vpop.xlane.xlu1 %555 }
 0xc4f   :  { %v557_v49 = vrot.slane %v556_v10, 4 }
 0xc51   :  { %v558_v50 = vadd.f32 %v557_v49, %v556_v10 }
 0xc53   :  { %v559_v51 = vrot.slane %v558_v50, 2 }
 0xc55   :  { %v560_v52 = vadd.f32 %v559_v51, %v558_v50 }
 0xc57   :  { %v561_v53 = vrot.slane %v560_v52, 1 }
 0xc59   :  { %v562_v54 = vadd.f32 %v561_v53, %v560_v52 }
 0xc5b   :  { %688 = vpush %v562_v54 }
 0xc8c   :  { %s689_s3 = spop %688 }
 0xc8d   :  { %p566_p12 = scmp.gt.f32.partialorder %s689_s3, 0.0 }
 0xc8f   :  { %s567_s8 = scalar_select %p566_p12, 1, 0 }
 0xc91   :  { %v568_v55 = vstv %s567_s8 }
 0xc92   :  { %vm569_vm13 = vcmp.eq.s32.totalorder %v568_v55, 1 }
 0xc93   :  { %vm570_vm15 = vmand %vm565_vm12, %vm569_vm13  ;;  %vm642_vm12 = vcmp.gt.s32.totalorder %v773_v13, 15 }
 0xc94   :  { %v574_v58 = vsel %vm570_vm15, 0.0, %v572_v57  ;;  %vm643_vm13 = vmand %vm462_vm4, %vm642_vm12 }
 0xc95   :  { %v576_v59 = vsel %vm575_vm14, %v574_v58, 0.0  ;;  %v598_v26 = vrot.slane %v574_v58, 7  ;;  %vm653_vm14 = vcmask 130055  }
 0xc96   :  { %v578_v60 = vrot.slane %v576_v59, 4 }
 0xc98   :  { %v580_v61 = vsel %vm248_vm2, %v578_v60, 0.0 }
 0xc99   :  { %581 = vadd.xlane.f32.xlu1 %v580_v61 }
 0xd26   :  { %v582_v62 = vpop.xlane.xlu1 %581 }
 0xd27   :  { %v583_v63 = vrot.slane %v582_v62, 4 }
 0xd29   :  { %v584_v0 = vadd.f32 %v583_v63, %v582_v62 }
 0xd2b   :  { %v585_v1 = vrot.slane %v584_v0, 2 }
 0xd2d   :  { %v586_v9 = vadd.f32 %v585_v1, %v584_v0 }
 0xd2f   :  { %v587_v14 = vrot.slane %v586_v9, 1 }
 0xd31   :  { %v588_v16 = vadd.f32 %v587_v14, %v586_v9 }
 0xd33   :  { %690 = vpush %v588_v16 }
 0xd64   :  { %s691_s5 = spop %690 }
 0xd65   :  { %p592_p13 = scmp.gt.f32.partialorder %s691_s5, 0.0 }
 0xd67   :  { %s593_s9 = scalar_select %p592_p13, 1, 0 }
 0xd69   :  { %v594_v17 = vstv %s593_s9 }
 0xd6a   :  { %vm595_vm7 = vcmp.eq.s32.totalorder %v594_v17, 1 }
 0xd6b   :  { %vm596_vm5 = vmand %vm591_vm1, %vm595_vm7 }
 0xd6c   :  { %v600_v3 = vsel %vm596_vm5, 0.0, %v598_v26 }
 0xd6d   :  { %v602_v4 = vsel %vm601_vm3, %v600_v3, 0.0  ;;  %v624_v22 = vrot.slane %v600_v3, 7 }
 0xd6e   :  { %v604_v5 = vrot.slane %v602_v4, 5 }
 0xd70   :  { %v606_v6 = vsel %vm248_vm2, %v604_v5, 0.0 }
 0xd71   :  { %607 = vadd.xlane.f32.xlu1 %v606_v6 }
 0xdfe   :  { %v608_v7 = vpop.xlane.xlu1 %607 }
 0xdff   :  { %v609_v8 = vrot.slane %v608_v7, 4 }
 0xe01   :  { %v610_v12 = vadd.f32 %v609_v8, %v608_v7 }
 0xe03   :  { %v611_v18 = vrot.slane %v610_v12, 2 }
 0xe05   :  { %v612_v19 = vadd.f32 %v611_v18, %v610_v12 }
 0xe07   :  { %v613_v20 = vrot.slane %v612_v19, 1 }
 0xe09   :  { %v614_v21 = vadd.f32 %v613_v20, %v612_v19 }
 0xe0b   :  { %692 = vpush %v614_v21 }
 0xe3c   :  { %s693_s10 = spop %692 }
 0xe3d   :  { %p618_p0 = scmp.gt.f32.partialorder %s693_s10, 0.0 }
 0xe3f   :  { %s619_s11 = scalar_select %p618_p0, 1, 0 }
 0xe41   :  { %v620_v11 = vstv %s619_s11 }
 0xe42   :  { %vm621_vm9 = vcmp.eq.s32.totalorder %v620_v11, 1 }
 0xe43   :  { %vm622_vm11 = vmand %vm617_vm8, %vm621_vm9 }
 0xe44   :  { %v626_v23 = vsel %vm622_vm11, 0.0, %v624_v22 }
 0xe45   :  { %v628_v24 = vsel %vm627_vm10, %v626_v23, 0.0  ;;  %v650_v37 = vrot.slane %v626_v23, 7 }
 0xe46   :  { %v630_v25 = vrot.slane %v628_v24, 6 }
 0xe48   :  { %v632_v27 = vsel %vm248_vm2, %v630_v25, 0.0 }
 0xe49   :  { %633 = vadd.xlane.f32.xlu1 %v632_v27 }
 0xed6   :  { %v634_v28 = vpop.xlane.xlu1 %633 }
 0xed7   :  { %v635_v29 = vrot.slane %v634_v28, 4 }
 0xed9   :  { %v636_v30 = vadd.f32 %v635_v29, %v634_v28 }
 0xedb   :  { %v637_v31 = vrot.slane %v636_v30, 2 }
 0xedd   :  { %v638_v32 = vadd.f32 %v637_v31, %v636_v30 }
 0xedf   :  { %v639_v33 = vrot.slane %v638_v32, 1 }
 0xee1   :  { %v640_v35 = vadd.f32 %v639_v33, %v638_v32 }
 0xee3   :  { %694 = vpush %v640_v35 }
 0xf14   :  { %s695_s12 = spop %694 }
 0xf15   :  { %p644_p1 = scmp.gt.f32.partialorder %s695_s12, 0.0 }
 0xf17   :  { %s645_s13 = scalar_select %p644_p1, 1, 0 }
 0xf19   :  { %v646_v36 = vstv %s645_s13 }
 0xf1a   :  { %vm647_vm2 = vcmp.eq.s32.totalorder %v646_v36, 1 }
 0xf1b   :  { %vm648_vm15 = vmand %vm643_vm13, %vm647_vm2 }
 0xf1c   :  { %v652_v38 = vsel %vm648_vm15, 0.0, %v650_v37 }
 0xf1d   :  { %654 = vst.msk [vmem:[%s924_s6 - $0x7] sm:$0x80] %vm653_vm14, %v652_v38 }

</bundles_post_ra>
